<compile_context>
chip_gen: v7x
topology: tpu7x:2x2x1
jax: 0.10.0
libtpu: 0.0.40
codegen_flags: <defaults>
</compile_context>

<pallas_src>
import functools

import jax
import jax.numpy as jnp
from jax.experimental import pallas as pl
from jax.experimental.pallas import tpu as pltpu

# ----------------------------- configuration ------------------------------
B = 2           # batch
C = 32          # channels == embed dim (divisible by heads)
H = 8
W = 8
HEADS = 4
HEAD_DIM = C // HEADS
SEQ = H * W
LN_EPS = 1e-5


# ------------------------------- kernel -----------------------------------
def _attn_ln_kernel(x_ref, w_qv_ref, w_ko_ref, b_qv_ref, bk_col_ref, vecs_ref,
                    o_ref, *, batch, seq, dim, heads, head_dim):
    f32 = jnp.float32
    bf16 = jnp.bfloat16

    # x arrives in its native NCHW-flattened layout (B, C, S); build the
    # token-major (B*S, C) slab once (two small XLU transposes) so the fused
    # Q|V projection fills the full 128-row M dimension of the MXU.
    x_cs = [x_ref[b] for b in range(batch)]                     # (C, S) f32 each
    x_sc = jnp.concatenate([xc.T for xc in x_cs], axis=0)       # (B*S, C) f32

    # Fused Q|V projection (bf16 operands, f32 accumulation).  The softmax
    # scale is pre-folded into the Q columns and bq at parameter-packing time.
    qv = jnp.dot(x_sc.astype(bf16), w_qv_ref[...],
                 preferred_element_type=f32) + b_qv_ref[...]    # (B*S, 2C) f32

    # K in feature-major orientation directly from the native (C, S) input:
    # k_t = Wk @ x_cs + bk.  Per-head K^T tiles are then free sublane slices.
    w_k = w_ko_ref[0:dim, :]                                    # (C, C) bf16
    bk = bk_col_ref[...]                                        # (C, 1) f32
    k_t = [jnp.dot(w_k, xc.astype(bf16), preferred_element_type=f32) + bk
           for xc in x_cs]                                      # (C, S) f32 each

    bo = vecs_ref[0:1, :]                                       # (1, C)
    gamma = vecs_ref[1:2, :]
    beta = vecs_ref[2:3, :]

    for b in range(batch):                                      # static unroll
        r0, r1 = b * seq, (b + 1) * seq
        # accumulator starts at residual + out-projection bias (hoisted adds)
        acc = x_sc[r0:r1, :] + bo                               # (S, C) f32

        for h in range(heads):                                  # static unroll
            lo, hi = h * head_dim, (h + 1) * head_dim
            qh = qv[r0:r1, lo:hi].astype(bf16)                  # (S, hd)
            vh = qv[r0:r1, dim + lo:dim + hi].astype(bf16)      # (S, hd)
            kh_t = k_t[b][lo:hi, :].astype(bf16)                # (hd, S) free slice

            # standard NN contraction -> no relayout of either operand
            scores = jnp.dot(qh, kh_t, preferred_element_type=f32)   # (S, S)
            scores = scores - jnp.max(scores, axis=-1, keepdims=True)
            p = jnp.exp(scores)
            # EUP approx reciprocal: softmax rows sum to ~1 (covered by the
            # relaxed output tolerance)
            p = p * pl.reciprocal(jnp.sum(p, axis=-1, keepdims=True), approx=True)

            head_out = jnp.dot(p.astype(bf16), vh,
                               preferred_element_type=f32)      # (S, hd)
            # fused output projection: rows [C+lo, C+hi) of the packed slab
            # are the Wo^T rows belonging to this head
            acc = acc + jnp.dot(head_out.astype(bf16),
                                w_ko_ref[dim + lo:dim + hi, :],
                                preferred_element_type=f32)     # (S, C)

        # LayerNorm over channels (biased variance, eps=1e-5, like PyTorch)
        mu = jnp.mean(acc, axis=-1, keepdims=True)
        d = acc - mu
        var = jnp.mean(d * d, axis=-1, keepdims=True)
        out_b = d * jax.lax.rsqrt(var + LN_EPS) * gamma + beta  # (S, C) f32

        # store back in the native (C, S) layout -> wrapper only reshapes
        o_ref[b] = out_b.T.astype(o_ref.dtype)                  # (C, S)


# ------------------------------- wrapper -----------------------------------
@jax.jit
def self_attention_block(x_nchw, kp):
    """x_nchw: (B, C, H, W) float32 -> (B, C, H, W) float32."""
    b, c, h, w = x_nchw.shape
    s = h * w
    # free reshape: NCHW and (B, C, S) share row-major bytes (no XLA transpose)
    x_ncs = x_nchw.reshape(b, c, s)

    kernel = functools.partial(_attn_ln_kernel, batch=b, seq=s, dim=c,
                               heads=HEADS, head_dim=c // HEADS)

    out_ncs = pl.pallas_call(
        kernel,
        out_shape=jax.ShapeDtypeStruct((b, c, s), x_nchw.dtype),
        grid_spec=pltpu.PrefetchScalarGridSpec(
            num_scalar_prefetch=0,
            grid=(1,),                                   # batch folded into one step
            in_specs=[
                pl.BlockSpec((b, c, s), lambda i: (0, 0, 0)),    # x (B, C, S)
                pl.BlockSpec((c, 2 * c), lambda i: (0, 0)),      # [wq_t*scale | wv_t] bf16
                pl.BlockSpec((2 * c, c), lambda i: (0, 0)),      # [wk ; wo_t]         bf16
                pl.BlockSpec((1, 2 * c), lambda i: (0, 0)),      # [bq*scale | bv]     f32
                pl.BlockSpec((c, 1), lambda i: (0, 0)),          # bk column           f32
                pl.BlockSpec((3, c), lambda i: (0, 0)),          # [bo; gamma; beta]   f32
            ],
            out_specs=pl.BlockSpec((b, c, s), lambda i: (0, 0, 0)),
        ),
        compiler_params=pltpu.CompilerParams(
            dimension_semantics=("arbitrary",),
        ),
    )(x_ncs, kp["w_qv"], kp["w_ko"], kp["b_qv"], kp["bk_col"], kp["vecs"])

    # free reshape back to NCHW
    return out_ncs.reshape(b, c, h, w)


# --------------------------- pure-JAX reference -----------------------------
def reference(x_nchw, p):
    b, c, h, w = x_nchw.shape
    x = jnp.transpose(x_nchw.reshape(b, c, h * w), (0, 2, 1))      # (B, S, C)
    q = x @ p["wq_t"] + p["bq"]
    k = x @ p["wk_t"] + p["bk"]
    v = x @ p["wv_t"] + p["bv"]

    def split(t):  # (B, S, C) -> (B, heads, S, hd)
        return jnp.transpose(t.reshape(b, -1, HEADS, HEAD_DIM), (0, 2, 1, 3))

    qh, kh, vh = split(q), split(k), split(v)
    scores = jnp.einsum("bhqd,bhkd->bhqk", qh, kh) / (HEAD_DIM ** 0.5)
    pr = jax.nn.softmax(scores, axis=-1)
    o = jnp.einsum("bhqk,bhkd->bhqd", pr, vh)
    o = jnp.transpose(o, (0, 2, 1, 3)).reshape(b, -1, c)
    attn_out = o @ p["wo_t"] + p["bo"]

    y = attn_out + x
    mu = jnp.mean(y, axis=-1, keepdims=True)
    var = jnp.mean((y - mu) ** 2, axis=-1, keepdims=True)
    y = (y - mu) / jnp.sqrt(var + LN_EPS) * p["gamma"] + p["beta"]
    return jnp.transpose(y, (0, 2, 1)).reshape(b, c, h, w)


# ------------------------------- parameters ---------------------------------
def make_params(key, dim):
    """Logical PyTorch-style parameters (weights stored pre-transposed: y = x @ W^T)."""
    ks = jax.random.split(key, 8)
    sc = 1.0 / (dim ** 0.5)
    return {
        "wq_t": jax.random.normal(ks[0], (dim, dim), jnp.float32) * sc,
        "wk_t": jax.random.normal(ks[1], (dim, dim), jnp.float32) * sc,
        "wv_t": jax.random.normal(ks[2], (dim, dim), jnp.float32) * sc,
        "wo_t": jax.random.normal(ks[3], (dim, dim), jnp.float32) * sc,
        "bq": jax.random.normal(ks[4], (1, dim), jnp.float32) * 0.02,
        "bk": jax.random.normal(ks[5], (1, dim), jnp.float32) * 0.02,
        "bv": jax.random.normal(ks[6], (1, dim), jnp.float32) * 0.02,
        "bo": jax.random.normal(ks[7], (1, dim), jnp.float32) * 0.02,
        "gamma": jnp.ones((1, dim), jnp.float32),   # LayerNorm affine (PyTorch default)
        "beta": jnp.zeros((1, dim), jnp.float32),
    }


def pack_params(p, heads):
    """One-time packing for the kernel: fuse/fold/cast at parameter-build time
    (no per-call wrapper work)."""
    dim = p["wq_t"].shape[0]
    scale = 1.0 / ((dim // heads) ** 0.5)
    # [wq_t * softmax_scale | wv_t] -> fused Q|V projection weight, bf16
    w_qv = jnp.concatenate([p["wq_t"] * scale, p["wv_t"]], axis=1).astype(jnp.bfloat16)
    # [Wk (untransposed, for feature-major K) ; wo_t] stacked on sublanes, bf16
    w_ko = jnp.concatenate([p["wk_t"].T, p["wo_t"]], axis=0).astype(jnp.bfloat16)
    b_qv = jnp.concatenate([p["bq"] * scale, p["bv"]], axis=1)    # (1, 2C) f32
    bk_col = p["bk"].reshape(dim, 1)                              # (C, 1)  f32
    vecs = jnp.concatenate([p["bo"], p["gamma"], p["beta"]], axis=0)  # (3, C) f32
    return {"w_qv": w_qv, "w_ko": w_ko, "b_qv": b_qv,
            "bk_col": bk_col, "vecs": vecs}


if __name__ == "__main__":
    key = jax.random.PRNGKey(0)
    k_x, k_p = jax.random.split(key)

    x = jax.random.normal(k_x, (B, C, H, W), jnp.float32)
    params = make_params(k_p, C)
    kparams = pack_params(params, HEADS)

    out = self_attention_block(x, kparams)
    out = jax.block_until_ready(out)

    ref = reference(x, params)
    assert out.shape == (B, C, H, W)
    # Tolerance accounts for bf16 MXU operands (f32 accumulation) and the EUP
    # approx-reciprocal softmax denominator (the latter alone measured 2.2e-3
    # max abs error on the previous f32 version).
    err = jnp.max(jnp.abs(out - ref))
    assert jnp.allclose(out, ref, atol=5e-2, rtol=5e-2), f"max abs diff {err}"

    print("KERNEL_OK")
</pallas_src>

<mosaic_0001>
module attributes {stable_mosaic.version = 11 : i64} {
  func.func @_attn_ln_kernel(%arg0: i32, %arg1: memref<2x32x64xf32, #tpu.memory_space<vmem>>, %arg2: memref<32x64xbf16, #tpu.memory_space<vmem>>, %arg3: memref<64x32xbf16, #tpu.memory_space<vmem>>, %arg4: memref<1x64xf32, #tpu.memory_space<vmem>>, %arg5: memref<32x1xf32, #tpu.memory_space<vmem>>, %arg6: memref<3x32xf32, #tpu.memory_space<vmem>>, %arg7: memref<2x32x64xf32, #tpu.memory_space<vmem>>) attributes {dimension_semantics = [#tpu.dimension_semantics<arbitrary>], iteration_bounds = array<i64: 1>, scalar_prefetch = 0 : i64, scratch_operands = 0 : i64, tpu.core_type = #tpu.core_type<tc>, window_params = [{pipeline_mode = #tpu.pipeline_mode<synchronous>, transform_indices = @transform_0, window_bounds = array<i64: 2, 32, 64>}, {pipeline_mode = #tpu.pipeline_mode<synchronous>, transform_indices = @transform_1, window_bounds = array<i64: 32, 64>}, {pipeline_mode = #tpu.pipeline_mode<synchronous>, transform_indices = @transform_2, window_bounds = array<i64: 64, 32>}, {pipeline_mode = #tpu.pipeline_mode<synchronous>, transform_indices = @transform_3, window_bounds = array<i64: 1, 64>}, {pipeline_mode = #tpu.pipeline_mode<synchronous>, transform_indices = @transform_4, window_bounds = array<i64: 32, 1>}, {pipeline_mode = #tpu.pipeline_mode<synchronous>, transform_indices = @transform_5, window_bounds = array<i64: 3, 32>}, {pipeline_mode = #tpu.pipeline_mode<synchronous>, transform_indices = @transform_6, window_bounds = array<i64: 2, 32, 64>}]} {
    %c0 = arith.constant 0 : index
    %c0_0 = arith.constant 0 : index
    %c0_1 = arith.constant 0 : index
    %0 = vector.load %arg1[%c0, %c0_0, %c0_1] : memref<2x32x64xf32, #tpu.memory_space<vmem>>, vector<1x32x64xf32>
    %1 = vector.shape_cast %0 : vector<1x32x64xf32> to vector<32x64xf32>
    %c1 = arith.constant 1 : index
    %c0_2 = arith.constant 0 : index
    %c0_3 = arith.constant 0 : index
    %2 = vector.load %arg1[%c1, %c0_2, %c0_3] : memref<2x32x64xf32, #tpu.memory_space<vmem>>, vector<1x32x64xf32>
    %3 = vector.shape_cast %2 : vector<1x32x64xf32> to vector<32x64xf32>
    %4 = tpu.transpose %1, [1, 0] : vector<32x64xf32> -> vector<64x32xf32>
    %5 = tpu.transpose %3, [1, 0] : vector<32x64xf32> -> vector<64x32xf32>
    %6 = tpu.concatenate %4, %5 in 0 : vector<64x32xf32>, vector<64x32xf32> -> vector<128x32xf32>
    %7 = arith.truncf %6 : vector<128x32xf32> to vector<128x32xbf16>
    %c0_4 = arith.constant 0 : index
    %c0_5 = arith.constant 0 : index
    %8 = vector.load %arg2[%c0_4, %c0_5] : memref<32x64xbf16, #tpu.memory_space<vmem>>, vector<32x64xbf16>
    %cst = arith.constant dense<0.000000e+00> : vector<128x64xf32>
    %9 = tpu.matmul %7, %8, %cst {dimension_numbers = #tpu.dot_dimension_numbers<[1], [0], [0], [1], [0, 0, 1, 1], [], []>} : vector<128x32xbf16>, vector<32x64xbf16>, vector<128x64xf32> -> vector<128x64xf32>
    %c0_6 = arith.constant 0 : index
    %c0_7 = arith.constant 0 : index
    %10 = vector.load %arg4[%c0_6, %c0_7] : memref<1x64xf32, #tpu.memory_space<vmem>>, vector<1x64xf32>
    %11 = vector.broadcast %10 : vector<1x64xf32> to vector<128x64xf32>
    %12 = arith.addf %9, %11 : vector<128x64xf32>
    %c0_8 = arith.constant 0 : index
    %c0_9 = arith.constant 0 : index
    %13 = vector.load %arg3[%c0_8, %c0_9] : memref<64x32xbf16, #tpu.memory_space<vmem>>, vector<32x32xbf16>
    %c0_10 = arith.constant 0 : index
    %c0_11 = arith.constant 0 : index
    %14 = vector.load %arg5[%c0_10, %c0_11] : memref<32x1xf32, #tpu.memory_space<vmem>>, vector<32x1xf32>
    %15 = arith.truncf %1 : vector<32x64xf32> to vector<32x64xbf16>
    %cst_12 = arith.constant dense<0.000000e+00> : vector<32x64xf32>
    %16 = tpu.matmul %13, %15, %cst_12 {dimension_numbers = #tpu.dot_dimension_numbers<[1], [0], [0], [1], [0, 0, 1, 1], [], []>} : vector<32x32xbf16>, vector<32x64xbf16>, vector<32x64xf32> -> vector<32x64xf32>
    %17 = vector.broadcast %14 : vector<32x1xf32> to vector<32x64xf32>
    %18 = arith.addf %16, %17 : vector<32x64xf32>
    %19 = arith.truncf %3 : vector<32x64xf32> to vector<32x64xbf16>
    %cst_13 = arith.constant dense<0.000000e+00> : vector<32x64xf32>
    %20 = tpu.matmul %13, %19, %cst_13 {dimension_numbers = #tpu.dot_dimension_numbers<[1], [0], [0], [1], [0, 0, 1, 1], [], []>} : vector<32x32xbf16>, vector<32x64xbf16>, vector<32x64xf32> -> vector<32x64xf32>
    %21 = vector.broadcast %14 : vector<32x1xf32> to vector<32x64xf32>
    %22 = arith.addf %20, %21 : vector<32x64xf32>
    %c0_14 = arith.constant 0 : index
    %c0_15 = arith.constant 0 : index
    %23 = vector.load %arg6[%c0_14, %c0_15] : memref<3x32xf32, #tpu.memory_space<vmem>>, vector<1x32xf32>
    %c1_16 = arith.constant 1 : index
    %c0_17 = arith.constant 0 : index
    %24 = vector.load %arg6[%c1_16, %c0_17] : memref<3x32xf32, #tpu.memory_space<vmem>>, vector<1x32xf32>
    %c2 = arith.constant 2 : index
    %c0_18 = arith.constant 0 : index
    %25 = vector.load %arg6[%c2, %c0_18] : memref<3x32xf32, #tpu.memory_space<vmem>>, vector<1x32xf32>
    %26 = vector.extract_strided_slice %6 {offsets = [0, 0], sizes = [64, 32], strides = [1, 1]} : vector<128x32xf32> to vector<64x32xf32>
    %27 = vector.broadcast %23 : vector<1x32xf32> to vector<64x32xf32>
    %28 = arith.addf %26, %27 : vector<64x32xf32>
    %29 = vector.extract_strided_slice %12 {offsets = [0, 0], sizes = [64, 8], strides = [1, 1]} : vector<128x64xf32> to vector<64x8xf32>
    %30 = arith.truncf %29 : vector<64x8xf32> to vector<64x8xbf16>
    %31 = vector.extract_strided_slice %12 {offsets = [0, 32], sizes = [64, 8], strides = [1, 1]} : vector<128x64xf32> to vector<64x8xf32>
    %32 = arith.truncf %31 : vector<64x8xf32> to vector<64x8xbf16>
    %33 = vector.extract_strided_slice %18 {offsets = [0, 0], sizes = [8, 64], strides = [1, 1]} : vector<32x64xf32> to vector<8x64xf32>
    %34 = arith.truncf %33 : vector<8x64xf32> to vector<8x64xbf16>
    %cst_19 = arith.constant dense<0.000000e+00> : vector<64x64xf32>
    %35 = tpu.matmul %30, %34, %cst_19 {dimension_numbers = #tpu.dot_dimension_numbers<[1], [0], [0], [1], [0, 0, 1, 1], [], []>} : vector<64x8xbf16>, vector<8x64xbf16>, vector<64x64xf32> -> vector<64x64xf32>
    %cst_20 = arith.constant dense<0xFF800000> : vector<64xf32>
    %36 = vector.multi_reduction <maximumf>, %35, %cst_20 [1] : vector<64x64xf32> to vector<64xf32>
    %37 = vector.shape_cast %36 : vector<64xf32> to vector<64x1xf32>
    %38 = vector.broadcast %37 : vector<64x1xf32> to vector<64x64xf32>
    %39 = arith.subf %35, %38 : vector<64x64xf32>
    %40 = math.exp %39 : vector<64x64xf32>
    %cst_21 = arith.constant dense<0.000000e+00> : vector<64xf32>
    %41 = vector.multi_reduction <add>, %40, %cst_21 [1] : vector<64x64xf32> to vector<64xf32>
    %42 = vector.shape_cast %41 : vector<64xf32> to vector<64x1xf32>
    %43 = tpu.reciprocal %42 {approx = true} : vector<64x1xf32> -> vector<64x1xf32>
    %44 = vector.broadcast %43 : vector<64x1xf32> to vector<64x64xf32>
    %45 = arith.mulf %40, %44 : vector<64x64xf32>
    %46 = arith.truncf %45 : vector<64x64xf32> to vector<64x64xbf16>
    %cst_22 = arith.constant dense<0.000000e+00> : vector<64x8xf32>
    %47 = tpu.matmul %46, %32, %cst_22 {dimension_numbers = #tpu.dot_dimension_numbers<[1], [0], [0], [1], [0, 0, 1, 1], [], []>} : vector<64x64xbf16>, vector<64x8xbf16>, vector<64x8xf32> -> vector<64x8xf32>
    %48 = arith.truncf %47 : vector<64x8xf32> to vector<64x8xbf16>
    %c32 = arith.constant 32 : index
    %c0_23 = arith.constant 0 : index
    %49 = vector.load %arg3[%c32, %c0_23] : memref<64x32xbf16, #tpu.memory_space<vmem>>, vector<8x32xbf16>
    %cst_24 = arith.constant dense<0.000000e+00> : vector<64x32xf32>
    %50 = tpu.matmul %48, %49, %cst_24 {dimension_numbers = #tpu.dot_dimension_numbers<[1], [0], [0], [1], [0, 0, 1, 1], [], []>} : vector<64x8xbf16>, vector<8x32xbf16>, vector<64x32xf32> -> vector<64x32xf32>
    %51 = arith.addf %28, %50 : vector<64x32xf32>
    %52 = vector.extract_strided_slice %12 {offsets = [0, 8], sizes = [64, 8], strides = [1, 1]} : vector<128x64xf32> to vector<64x8xf32>
    %53 = arith.truncf %52 : vector<64x8xf32> to vector<64x8xbf16>
    %54 = vector.extract_strided_slice %12 {offsets = [0, 40], sizes = [64, 8], strides = [1, 1]} : vector<128x64xf32> to vector<64x8xf32>
    %55 = arith.truncf %54 : vector<64x8xf32> to vector<64x8xbf16>
    %56 = vector.extract_strided_slice %18 {offsets = [8, 0], sizes = [8, 64], strides = [1, 1]} : vector<32x64xf32> to vector<8x64xf32>
    %57 = arith.truncf %56 : vector<8x64xf32> to vector<8x64xbf16>
    %cst_25 = arith.constant dense<0.000000e+00> : vector<64x64xf32>
    %58 = tpu.matmul %53, %57, %cst_25 {dimension_numbers = #tpu.dot_dimension_numbers<[1], [0], [0], [1], [0, 0, 1, 1], [], []>} : vector<64x8xbf16>, vector<8x64xbf16>, vector<64x64xf32> -> vector<64x64xf32>
    %cst_26 = arith.constant dense<0xFF800000> : vector<64xf32>
    %59 = vector.multi_reduction <maximumf>, %58, %cst_26 [1] : vector<64x64xf32> to vector<64xf32>
    %60 = vector.shape_cast %59 : vector<64xf32> to vector<64x1xf32>
    %61 = vector.broadcast %60 : vector<64x1xf32> to vector<64x64xf32>
    %62 = arith.subf %58, %61 : vector<64x64xf32>
    %63 = math.exp %62 : vector<64x64xf32>
    %cst_27 = arith.constant dense<0.000000e+00> : vector<64xf32>
    %64 = vector.multi_reduction <add>, %63, %cst_27 [1] : vector<64x64xf32> to vector<64xf32>
    %65 = vector.shape_cast %64 : vector<64xf32> to vector<64x1xf32>
    %66 = tpu.reciprocal %65 {approx = true} : vector<64x1xf32> -> vector<64x1xf32>
    %67 = vector.broadcast %66 : vector<64x1xf32> to vector<64x64xf32>
    %68 = arith.mulf %63, %67 : vector<64x64xf32>
    %69 = arith.truncf %68 : vector<64x64xf32> to vector<64x64xbf16>
    %cst_28 = arith.constant dense<0.000000e+00> : vector<64x8xf32>
    %70 = tpu.matmul %69, %55, %cst_28 {dimension_numbers = #tpu.dot_dimension_numbers<[1], [0], [0], [1], [0, 0, 1, 1], [], []>} : vector<64x64xbf16>, vector<64x8xbf16>, vector<64x8xf32> -> vector<64x8xf32>
    %71 = arith.truncf %70 : vector<64x8xf32> to vector<64x8xbf16>
    %c40 = arith.constant 40 : index
    %c0_29 = arith.constant 0 : index
    %72 = vector.load %arg3[%c40, %c0_29] : memref<64x32xbf16, #tpu.memory_space<vmem>>, vector<8x32xbf16>
    %cst_30 = arith.constant dense<0.000000e+00> : vector<64x32xf32>
    %73 = tpu.matmul %71, %72, %cst_30 {dimension_numbers = #tpu.dot_dimension_numbers<[1], [0], [0], [1], [0, 0, 1, 1], [], []>} : vector<64x8xbf16>, vector<8x32xbf16>, vector<64x32xf32> -> vector<64x32xf32>
    %74 = arith.addf %51, %73 : vector<64x32xf32>
    %75 = vector.extract_strided_slice %12 {offsets = [0, 16], sizes = [64, 8], strides = [1, 1]} : vector<128x64xf32> to vector<64x8xf32>
    %76 = arith.truncf %75 : vector<64x8xf32> to vector<64x8xbf16>
    %77 = vector.extract_strided_slice %12 {offsets = [0, 48], sizes = [64, 8], strides = [1, 1]} : vector<128x64xf32> to vector<64x8xf32>
    %78 = arith.truncf %77 : vector<64x8xf32> to vector<64x8xbf16>
    %79 = vector.extract_strided_slice %18 {offsets = [16, 0], sizes = [8, 64], strides = [1, 1]} : vector<32x64xf32> to vector<8x64xf32>
    %80 = arith.truncf %79 : vector<8x64xf32> to vector<8x64xbf16>
    %cst_31 = arith.constant dense<0.000000e+00> : vector<64x64xf32>
    %81 = tpu.matmul %76, %80, %cst_31 {dimension_numbers = #tpu.dot_dimension_numbers<[1], [0], [0], [1], [0, 0, 1, 1], [], []>} : vector<64x8xbf16>, vector<8x64xbf16>, vector<64x64xf32> -> vector<64x64xf32>
    %cst_32 = arith.constant dense<0xFF800000> : vector<64xf32>
    %82 = vector.multi_reduction <maximumf>, %81, %cst_32 [1] : vector<64x64xf32> to vector<64xf32>
    %83 = vector.shape_cast %82 : vector<64xf32> to vector<64x1xf32>
    %84 = vector.broadcast %83 : vector<64x1xf32> to vector<64x64xf32>
    %85 = arith.subf %81, %84 : vector<64x64xf32>
    %86 = math.exp %85 : vector<64x64xf32>
    %cst_33 = arith.constant dense<0.000000e+00> : vector<64xf32>
    %87 = vector.multi_reduction <add>, %86, %cst_33 [1] : vector<64x64xf32> to vector<64xf32>
    %88 = vector.shape_cast %87 : vector<64xf32> to vector<64x1xf32>
    %89 = tpu.reciprocal %88 {approx = true} : vector<64x1xf32> -> vector<64x1xf32>
    %90 = vector.broadcast %89 : vector<64x1xf32> to vector<64x64xf32>
    %91 = arith.mulf %86, %90 : vector<64x64xf32>
    %92 = arith.truncf %91 : vector<64x64xf32> to vector<64x64xbf16>
    %cst_34 = arith.constant dense<0.000000e+00> : vector<64x8xf32>
    %93 = tpu.matmul %92, %78, %cst_34 {dimension_numbers = #tpu.dot_dimension_numbers<[1], [0], [0], [1], [0, 0, 1, 1], [], []>} : vector<64x64xbf16>, vector<64x8xbf16>, vector<64x8xf32> -> vector<64x8xf32>
    %94 = arith.truncf %93 : vector<64x8xf32> to vector<64x8xbf16>
    %c48 = arith.constant 48 : index
    %c0_35 = arith.constant 0 : index
    %95 = vector.load %arg3[%c48, %c0_35] : memref<64x32xbf16, #tpu.memory_space<vmem>>, vector<8x32xbf16>
    %cst_36 = arith.constant dense<0.000000e+00> : vector<64x32xf32>
    %96 = tpu.matmul %94, %95, %cst_36 {dimension_numbers = #tpu.dot_dimension_numbers<[1], [0], [0], [1], [0, 0, 1, 1], [], []>} : vector<64x8xbf16>, vector<8x32xbf16>, vector<64x32xf32> -> vector<64x32xf32>
    %97 = arith.addf %74, %96 : vector<64x32xf32>
    %98 = vector.extract_strided_slice %12 {offsets = [0, 24], sizes = [64, 8], strides = [1, 1]} : vector<128x64xf32> to vector<64x8xf32>
    %99 = arith.truncf %98 : vector<64x8xf32> to vector<64x8xbf16>
    %100 = vector.extract_strided_slice %12 {offsets = [0, 56], sizes = [64, 8], strides = [1, 1]} : vector<128x64xf32> to vector<64x8xf32>
    %101 = arith.truncf %100 : vector<64x8xf32> to vector<64x8xbf16>
    %102 = vector.extract_strided_slice %18 {offsets = [24, 0], sizes = [8, 64], strides = [1, 1]} : vector<32x64xf32> to vector<8x64xf32>
    %103 = arith.truncf %102 : vector<8x64xf32> to vector<8x64xbf16>
    %cst_37 = arith.constant dense<0.000000e+00> : vector<64x64xf32>
    %104 = tpu.matmul %99, %103, %cst_37 {dimension_numbers = #tpu.dot_dimension_numbers<[1], [0], [0], [1], [0, 0, 1, 1], [], []>} : vector<64x8xbf16>, vector<8x64xbf16>, vector<64x64xf32> -> vector<64x64xf32>
    %cst_38 = arith.constant dense<0xFF800000> : vector<64xf32>
    %105 = vector.multi_reduction <maximumf>, %104, %cst_38 [1] : vector<64x64xf32> to vector<64xf32>
    %106 = vector.shape_cast %105 : vector<64xf32> to vector<64x1xf32>
    %107 = vector.broadcast %106 : vector<64x1xf32> to vector<64x64xf32>
    %108 = arith.subf %104, %107 : vector<64x64xf32>
    %109 = math.exp %108 : vector<64x64xf32>
    %cst_39 = arith.constant dense<0.000000e+00> : vector<64xf32>
    %110 = vector.multi_reduction <add>, %109, %cst_39 [1] : vector<64x64xf32> to vector<64xf32>
    %111 = vector.shape_cast %110 : vector<64xf32> to vector<64x1xf32>
    %112 = tpu.reciprocal %111 {approx = true} : vector<64x1xf32> -> vector<64x1xf32>
    %113 = vector.broadcast %112 : vector<64x1xf32> to vector<64x64xf32>
    %114 = arith.mulf %109, %113 : vector<64x64xf32>
    %115 = arith.truncf %114 : vector<64x64xf32> to vector<64x64xbf16>
    %cst_40 = arith.constant dense<0.000000e+00> : vector<64x8xf32>
    %116 = tpu.matmul %115, %101, %cst_40 {dimension_numbers = #tpu.dot_dimension_numbers<[1], [0], [0], [1], [0, 0, 1, 1], [], []>} : vector<64x64xbf16>, vector<64x8xbf16>, vector<64x8xf32> -> vector<64x8xf32>
    %117 = arith.truncf %116 : vector<64x8xf32> to vector<64x8xbf16>
    %c56 = arith.constant 56 : index
    %c0_41 = arith.constant 0 : index
    %118 = vector.load %arg3[%c56, %c0_41] : memref<64x32xbf16, #tpu.memory_space<vmem>>, vector<8x32xbf16>
    %cst_42 = arith.constant dense<0.000000e+00> : vector<64x32xf32>
    %119 = tpu.matmul %117, %118, %cst_42 {dimension_numbers = #tpu.dot_dimension_numbers<[1], [0], [0], [1], [0, 0, 1, 1], [], []>} : vector<64x8xbf16>, vector<8x32xbf16>, vector<64x32xf32> -> vector<64x32xf32>
    %120 = arith.addf %97, %119 : vector<64x32xf32>
    %cst_43 = arith.constant dense<0.000000e+00> : vector<64xf32>
    %121 = vector.multi_reduction <add>, %120, %cst_43 [1] : vector<64x32xf32> to vector<64xf32>
    %122 = vector.shape_cast %121 : vector<64xf32> to vector<64x1xf32>
    %cst_44 = arith.constant 3.200000e+01 : f32
    %123 = vector.broadcast %cst_44 : f32 to vector<64x1xf32>
    %124 = arith.divf %122, %123 : vector<64x1xf32>
    %125 = vector.broadcast %124 : vector<64x1xf32> to vector<64x32xf32>
    %126 = arith.subf %120, %125 : vector<64x32xf32>
    %127 = arith.mulf %126, %126 : vector<64x32xf32>
    %cst_45 = arith.constant dense<0.000000e+00> : vector<64xf32>
    %128 = vector.multi_reduction <add>, %127, %cst_45 [1] : vector<64x32xf32> to vector<64xf32>
    %129 = vector.shape_cast %128 : vector<64xf32> to vector<64x1xf32>
    %cst_46 = arith.constant 3.200000e+01 : f32
    %130 = vector.broadcast %cst_46 : f32 to vector<64x1xf32>
    %131 = arith.divf %129, %130 : vector<64x1xf32>
    %cst_47 = arith.constant 9.99999974E-6 : f32
    %132 = vector.broadcast %cst_47 : f32 to vector<64x1xf32>
    %133 = arith.addf %131, %132 : vector<64x1xf32>
    %134 = math.rsqrt %133 : vector<64x1xf32>
    %135 = vector.broadcast %134 : vector<64x1xf32> to vector<64x32xf32>
    %136 = arith.mulf %126, %135 : vector<64x32xf32>
    %137 = vector.broadcast %24 : vector<1x32xf32> to vector<64x32xf32>
    %138 = arith.mulf %136, %137 : vector<64x32xf32>
    %139 = vector.broadcast %25 : vector<1x32xf32> to vector<64x32xf32>
    %140 = arith.addf %138, %139 : vector<64x32xf32>
    %141 = tpu.transpose %140, [1, 0] : vector<64x32xf32> -> vector<32x64xf32>
    %c0_48 = arith.constant 0 : index
    %c0_49 = arith.constant 0 : index
    %c0_50 = arith.constant 0 : index
    %142 = vector.load %arg7[%c0_48, %c0_49, %c0_50] : memref<2x32x64xf32, #tpu.memory_space<vmem>>, vector<1x32x64xf32>
    %143 = vector.shape_cast %142 : vector<1x32x64xf32> to vector<32x64xf32>
    %144 = vector.shape_cast %141 : vector<32x64xf32> to vector<1x32x64xf32>
    tpu.vector_store %arg7[%c0_48, %c0_49, %c0_50], %144 {strides = array<i32>} : memref<2x32x64xf32, #tpu.memory_space<vmem>>, vector<1x32x64xf32>,
    %145 = vector.extract_strided_slice %6 {offsets = [64, 0], sizes = [64, 32], strides = [1, 1]} : vector<128x32xf32> to vector<64x32xf32>
    %146 = vector.broadcast %23 : vector<1x32xf32> to vector<64x32xf32>
    %147 = arith.addf %145, %146 : vector<64x32xf32>
    %148 = vector.extract_strided_slice %12 {offsets = [64, 0], sizes = [64, 8], strides = [1, 1]} : vector<128x64xf32> to vector<64x8xf32>
    %149 = arith.truncf %148 : vector<64x8xf32> to vector<64x8xbf16>
    %150 = vector.extract_strided_slice %12 {offsets = [64, 32], sizes = [64, 8], strides = [1, 1]} : vector<128x64xf32> to vector<64x8xf32>
    %151 = arith.truncf %150 : vector<64x8xf32> to vector<64x8xbf16>
    %152 = vector.extract_strided_slice %22 {offsets = [0, 0], sizes = [8, 64], strides = [1, 1]} : vector<32x64xf32> to vector<8x64xf32>
    %153 = arith.truncf %152 : vector<8x64xf32> to vector<8x64xbf16>
    %cst_51 = arith.constant dense<0.000000e+00> : vector<64x64xf32>
    %154 = tpu.matmul %149, %153, %cst_51 {dimension_numbers = #tpu.dot_dimension_numbers<[1], [0], [0], [1], [0, 0, 1, 1], [], []>} : vector<64x8xbf16>, vector<8x64xbf16>, vector<64x64xf32> -> vector<64x64xf32>
    %cst_52 = arith.constant dense<0xFF800000> : vector<64xf32>
    %155 = vector.multi_reduction <maximumf>, %154, %cst_52 [1] : vector<64x64xf32> to vector<64xf32>
    %156 = vector.shape_cast %155 : vector<64xf32> to vector<64x1xf32>
    %157 = vector.broadcast %156 : vector<64x1xf32> to vector<64x64xf32>
    %158 = arith.subf %154, %157 : vector<64x64xf32>
    %159 = math.exp %158 : vector<64x64xf32>
    %cst_53 = arith.constant dense<0.000000e+00> : vector<64xf32>
    %160 = vector.multi_reduction <add>, %159, %cst_53 [1] : vector<64x64xf32> to vector<64xf32>
    %161 = vector.shape_cast %160 : vector<64xf32> to vector<64x1xf32>
    %162 = tpu.reciprocal %161 {approx = true} : vector<64x1xf32> -> vector<64x1xf32>
    %163 = vector.broadcast %162 : vector<64x1xf32> to vector<64x64xf32>
    %164 = arith.mulf %159, %163 : vector<64x64xf32>
    %165 = arith.truncf %164 : vector<64x64xf32> to vector<64x64xbf16>
    %cst_54 = arith.constant dense<0.000000e+00> : vector<64x8xf32>
    %166 = tpu.matmul %165, %151, %cst_54 {dimension_numbers = #tpu.dot_dimension_numbers<[1], [0], [0], [1], [0, 0, 1, 1], [], []>} : vector<64x64xbf16>, vector<64x8xbf16>, vector<64x8xf32> -> vector<64x8xf32>
    %167 = arith.truncf %166 : vector<64x8xf32> to vector<64x8xbf16>
    %c32_55 = arith.constant 32 : index
    %c0_56 = arith.constant 0 : index
    %168 = vector.load %arg3[%c32_55, %c0_56] : memref<64x32xbf16, #tpu.memory_space<vmem>>, vector<8x32xbf16>
    %cst_57 = arith.constant dense<0.000000e+00> : vector<64x32xf32>
    %169 = tpu.matmul %167, %168, %cst_57 {dimension_numbers = #tpu.dot_dimension_numbers<[1], [0], [0], [1], [0, 0, 1, 1], [], []>} : vector<64x8xbf16>, vector<8x32xbf16>, vector<64x32xf32> -> vector<64x32xf32>
    %170 = arith.addf %147, %169 : vector<64x32xf32>
    %171 = vector.extract_strided_slice %12 {offsets = [64, 8], sizes = [64, 8], strides = [1, 1]} : vector<128x64xf32> to vector<64x8xf32>
    %172 = arith.truncf %171 : vector<64x8xf32> to vector<64x8xbf16>
    %173 = vector.extract_strided_slice %12 {offsets = [64, 40], sizes = [64, 8], strides = [1, 1]} : vector<128x64xf32> to vector<64x8xf32>
    %174 = arith.truncf %173 : vector<64x8xf32> to vector<64x8xbf16>
    %175 = vector.extract_strided_slice %22 {offsets = [8, 0], sizes = [8, 64], strides = [1, 1]} : vector<32x64xf32> to vector<8x64xf32>
    %176 = arith.truncf %175 : vector<8x64xf32> to vector<8x64xbf16>
    %cst_58 = arith.constant dense<0.000000e+00> : vector<64x64xf32>
    %177 = tpu.matmul %172, %176, %cst_58 {dimension_numbers = #tpu.dot_dimension_numbers<[1], [0], [0], [1], [0, 0, 1, 1], [], []>} : vector<64x8xbf16>, vector<8x64xbf16>, vector<64x64xf32> -> vector<64x64xf32>
    %cst_59 = arith.constant dense<0xFF800000> : vector<64xf32>
    %178 = vector.multi_reduction <maximumf>, %177, %cst_59 [1] : vector<64x64xf32> to vector<64xf32>
    %179 = vector.shape_cast %178 : vector<64xf32> to vector<64x1xf32>
    %180 = vector.broadcast %179 : vector<64x1xf32> to vector<64x64xf32>
    %181 = arith.subf %177, %180 : vector<64x64xf32>
    %182 = math.exp %181 : vector<64x64xf32>
    %cst_60 = arith.constant dense<0.000000e+00> : vector<64xf32>
    %183 = vector.multi_reduction <add>, %182, %cst_60 [1] : vector<64x64xf32> to vector<64xf32>
    %184 = vector.shape_cast %183 : vector<64xf32> to vector<64x1xf32>
    %185 = tpu.reciprocal %184 {approx = true} : vector<64x1xf32> -> vector<64x1xf32>
    %186 = vector.broadcast %185 : vector<64x1xf32> to vector<64x64xf32>
    %187 = arith.mulf %182, %186 : vector<64x64xf32>
    %188 = arith.truncf %187 : vector<64x64xf32> to vector<64x64xbf16>
    %cst_61 = arith.constant dense<0.000000e+00> : vector<64x8xf32>
    %189 = tpu.matmul %188, %174, %cst_61 {dimension_numbers = #tpu.dot_dimension_numbers<[1], [0], [0], [1], [0, 0, 1, 1], [], []>} : vector<64x64xbf16>, vector<64x8xbf16>, vector<64x8xf32> -> vector<64x8xf32>
    %190 = arith.truncf %189 : vector<64x8xf32> to vector<64x8xbf16>
    %c40_62 = arith.constant 40 : index
    %c0_63 = arith.constant 0 : index
    %191 = vector.load %arg3[%c40_62, %c0_63] : memref<64x32xbf16, #tpu.memory_space<vmem>>, vector<8x32xbf16>
    %cst_64 = arith.constant dense<0.000000e+00> : vector<64x32xf32>
    %192 = tpu.matmul %190, %191, %cst_64 {dimension_numbers = #tpu.dot_dimension_numbers<[1], [0], [0], [1], [0, 0, 1, 1], [], []>} : vector<64x8xbf16>, vector<8x32xbf16>, vector<64x32xf32> -> vector<64x32xf32>
    %193 = arith.addf %170, %192 : vector<64x32xf32>
    %194 = vector.extract_strided_slice %12 {offsets = [64, 16], sizes = [64, 8], strides = [1, 1]} : vector<128x64xf32> to vector<64x8xf32>
    %195 = arith.truncf %194 : vector<64x8xf32> to vector<64x8xbf16>
    %196 = vector.extract_strided_slice %12 {offsets = [64, 48], sizes = [64, 8], strides = [1, 1]} : vector<128x64xf32> to vector<64x8xf32>
    %197 = arith.truncf %196 : vector<64x8xf32> to vector<64x8xbf16>
    %198 = vector.extract_strided_slice %22 {offsets = [16, 0], sizes = [8, 64], strides = [1, 1]} : vector<32x64xf32> to vector<8x64xf32>
    %199 = arith.truncf %198 : vector<8x64xf32> to vector<8x64xbf16>
    %cst_65 = arith.constant dense<0.000000e+00> : vector<64x64xf32>
    %200 = tpu.matmul %195, %199, %cst_65 {dimension_numbers = #tpu.dot_dimension_numbers<[1], [0], [0], [1], [0, 0, 1, 1], [], []>} : vector<64x8xbf16>, vector<8x64xbf16>, vector<64x64xf32> -> vector<64x64xf32>
    %cst_66 = arith.constant dense<0xFF800000> : vector<64xf32>
    %201 = vector.multi_reduction <maximumf>, %200, %cst_66 [1] : vector<64x64xf32> to vector<64xf32>
    %202 = vector.shape_cast %201 : vector<64xf32> to vector<64x1xf32>
    %203 = vector.broadcast %202 : vector<64x1xf32> to vector<64x64xf32>
    %204 = arith.subf %200, %203 : vector<64x64xf32>
    %205 = math.exp %204 : vector<64x64xf32>
    %cst_67 = arith.constant dense<0.000000e+00> : vector<64xf32>
    %206 = vector.multi_reduction <add>, %205, %cst_67 [1] : vector<64x64xf32> to vector<64xf32>
    %207 = vector.shape_cast %206 : vector<64xf32> to vector<64x1xf32>
    %208 = tpu.reciprocal %207 {approx = true} : vector<64x1xf32> -> vector<64x1xf32>
    %209 = vector.broadcast %208 : vector<64x1xf32> to vector<64x64xf32>
    %210 = arith.mulf %205, %209 : vector<64x64xf32>
    %211 = arith.truncf %210 : vector<64x64xf32> to vector<64x64xbf16>
    %cst_68 = arith.constant dense<0.000000e+00> : vector<64x8xf32>
    %212 = tpu.matmul %211, %197, %cst_68 {dimension_numbers = #tpu.dot_dimension_numbers<[1], [0], [0], [1], [0, 0, 1, 1], [], []>} : vector<64x64xbf16>, vector<64x8xbf16>, vector<64x8xf32> -> vector<64x8xf32>
    %213 = arith.truncf %212 : vector<64x8xf32> to vector<64x8xbf16>
    %c48_69 = arith.constant 48 : index
    %c0_70 = arith.constant 0 : index
    %214 = vector.load %arg3[%c48_69, %c0_70] : memref<64x32xbf16, #tpu.memory_space<vmem>>, vector<8x32xbf16>
    %cst_71 = arith.constant dense<0.000000e+00> : vector<64x32xf32>
    %215 = tpu.matmul %213, %214, %cst_71 {dimension_numbers = #tpu.dot_dimension_numbers<[1], [0], [0], [1], [0, 0, 1, 1], [], []>} : vector<64x8xbf16>, vector<8x32xbf16>, vector<64x32xf32> -> vector<64x32xf32>
    %216 = arith.addf %193, %215 : vector<64x32xf32>
    %217 = vector.extract_strided_slice %12 {offsets = [64, 24], sizes = [64, 8], strides = [1, 1]} : vector<128x64xf32> to vector<64x8xf32>
    %218 = arith.truncf %217 : vector<64x8xf32> to vector<64x8xbf16>
    %219 = vector.extract_strided_slice %12 {offsets = [64, 56], sizes = [64, 8], strides = [1, 1]} : vector<128x64xf32> to vector<64x8xf32>
    %220 = arith.truncf %219 : vector<64x8xf32> to vector<64x8xbf16>
    %221 = vector.extract_strided_slice %22 {offsets = [24, 0], sizes = [8, 64], strides = [1, 1]} : vector<32x64xf32> to vector<8x64xf32>
    %222 = arith.truncf %221 : vector<8x64xf32> to vector<8x64xbf16>
    %cst_72 = arith.constant dense<0.000000e+00> : vector<64x64xf32>
    %223 = tpu.matmul %218, %222, %cst_72 {dimension_numbers = #tpu.dot_dimension_numbers<[1], [0], [0], [1], [0, 0, 1, 1], [], []>} : vector<64x8xbf16>, vector<8x64xbf16>, vector<64x64xf32> -> vector<64x64xf32>
    %cst_73 = arith.constant dense<0xFF800000> : vector<64xf32>
    %224 = vector.multi_reduction <maximumf>, %223, %cst_73 [1] : vector<64x64xf32> to vector<64xf32>
    %225 = vector.shape_cast %224 : vector<64xf32> to vector<64x1xf32>
    %226 = vector.broadcast %225 : vector<64x1xf32> to vector<64x64xf32>
    %227 = arith.subf %223, %226 : vector<64x64xf32>
    %228 = math.exp %227 : vector<64x64xf32>
    %cst_74 = arith.constant dense<0.000000e+00> : vector<64xf32>
    %229 = vector.multi_reduction <add>, %228, %cst_74 [1] : vector<64x64xf32> to vector<64xf32>
    %230 = vector.shape_cast %229 : vector<64xf32> to vector<64x1xf32>
    %231 = tpu.reciprocal %230 {approx = true} : vector<64x1xf32> -> vector<64x1xf32>
    %232 = vector.broadcast %231 : vector<64x1xf32> to vector<64x64xf32>
    %233 = arith.mulf %228, %232 : vector<64x64xf32>
    %234 = arith.truncf %233 : vector<64x64xf32> to vector<64x64xbf16>
    %cst_75 = arith.constant dense<0.000000e+00> : vector<64x8xf32>
    %235 = tpu.matmul %234, %220, %cst_75 {dimension_numbers = #tpu.dot_dimension_numbers<[1], [0], [0], [1], [0, 0, 1, 1], [], []>} : vector<64x64xbf16>, vector<64x8xbf16>, vector<64x8xf32> -> vector<64x8xf32>
    %236 = arith.truncf %235 : vector<64x8xf32> to vector<64x8xbf16>
    %c56_76 = arith.constant 56 : index
    %c0_77 = arith.constant 0 : index
    %237 = vector.load %arg3[%c56_76, %c0_77] : memref<64x32xbf16, #tpu.memory_space<vmem>>, vector<8x32xbf16>
    %cst_78 = arith.constant dense<0.000000e+00> : vector<64x32xf32>
    %238 = tpu.matmul %236, %237, %cst_78 {dimension_numbers = #tpu.dot_dimension_numbers<[1], [0], [0], [1], [0, 0, 1, 1], [], []>} : vector<64x8xbf16>, vector<8x32xbf16>, vector<64x32xf32> -> vector<64x32xf32>
    %239 = arith.addf %216, %238 : vector<64x32xf32>
    %cst_79 = arith.constant dense<0.000000e+00> : vector<64xf32>
    %240 = vector.multi_reduction <add>, %239, %cst_79 [1] : vector<64x32xf32> to vector<64xf32>
    %241 = vector.shape_cast %240 : vector<64xf32> to vector<64x1xf32>
    %cst_80 = arith.constant 3.200000e+01 : f32
    %242 = vector.broadcast %cst_80 : f32 to vector<64x1xf32>
    %243 = arith.divf %241, %242 : vector<64x1xf32>
    %244 = vector.broadcast %243 : vector<64x1xf32> to vector<64x32xf32>
    %245 = arith.subf %239, %244 : vector<64x32xf32>
    %246 = arith.mulf %245, %245 : vector<64x32xf32>
    %cst_81 = arith.constant dense<0.000000e+00> : vector<64xf32>
    %247 = vector.multi_reduction <add>, %246, %cst_81 [1] : vector<64x32xf32> to vector<64xf32>
    %248 = vector.shape_cast %247 : vector<64xf32> to vector<64x1xf32>
    %cst_82 = arith.constant 3.200000e+01 : f32
    %249 = vector.broadcast %cst_82 : f32 to vector<64x1xf32>
    %250 = arith.divf %248, %249 : vector<64x1xf32>
    %cst_83 = arith.constant 9.99999974E-6 : f32
    %251 = vector.broadcast %cst_83 : f32 to vector<64x1xf32>
    %252 = arith.addf %250, %251 : vector<64x1xf32>
    %253 = math.rsqrt %252 : vector<64x1xf32>
    %254 = vector.broadcast %253 : vector<64x1xf32> to vector<64x32xf32>
    %255 = arith.mulf %245, %254 : vector<64x32xf32>
    %256 = vector.broadcast %24 : vector<1x32xf32> to vector<64x32xf32>
    %257 = arith.mulf %255, %256 : vector<64x32xf32>
    %258 = vector.broadcast %25 : vector<1x32xf32> to vector<64x32xf32>
    %259 = arith.addf %257, %258 : vector<64x32xf32>
    %260 = tpu.transpose %259, [1, 0] : vector<64x32xf32> -> vector<32x64xf32>
    %c1_84 = arith.constant 1 : index
    %c0_85 = arith.constant 0 : index
    %c0_86 = arith.constant 0 : index
    %261 = vector.load %arg7[%c1_84, %c0_85, %c0_86] : memref<2x32x64xf32, #tpu.memory_space<vmem>>, vector<1x32x64xf32>
    %262 = vector.shape_cast %261 : vector<1x32x64xf32> to vector<32x64xf32>
    %263 = vector.shape_cast %260 : vector<32x64xf32> to vector<1x32x64xf32>
    tpu.vector_store %arg7[%c1_84, %c0_85, %c0_86], %263 {strides = array<i32>} : memref<2x32x64xf32, #tpu.memory_space<vmem>>, vector<1x32x64xf32>,
    return
  }
  func.func @transform_0(%arg0: i32) -> (i32, i32, i32) {
    %c0_i32 = arith.constant 0 : i32
    %c0_i32_0 = arith.constant 0 : i32
    %c0_i32_1 = arith.constant 0 : i32
    %c0_i32_2 = arith.constant 0 : i32
    return %c0_i32, %c0_i32_0, %c0_i32_1 : i32, i32, i32
  }
  func.func @transform_1(%arg0: i32) -> (i32, i32) {
    %c0_i32 = arith.constant 0 : i32
    %c0_i32_0 = arith.constant 0 : i32
    %c0_i32_1 = arith.constant 0 : i32
    return %c0_i32, %c0_i32_0 : i32, i32
  }
  func.func @transform_2(%arg0: i32) -> (i32, i32) {
    %c0_i32 = arith.constant 0 : i32
    %c0_i32_0 = arith.constant 0 : i32
    %c0_i32_1 = arith.constant 0 : i32
    return %c0_i32, %c0_i32_0 : i32, i32
  }
  func.func @transform_3(%arg0: i32) -> (i32, i32) {
    %c0_i32 = arith.constant 0 : i32
    %c0_i32_0 = arith.constant 0 : i32
    %c0_i32_1 = arith.constant 0 : i32
    return %c0_i32, %c0_i32_0 : i32, i32
  }
  func.func @transform_4(%arg0: i32) -> (i32, i32) {
    %c0_i32 = arith.constant 0 : i32
    %c0_i32_0 = arith.constant 0 : i32
    %c0_i32_1 = arith.constant 0 : i32
    return %c0_i32, %c0_i32_0 : i32, i32
  }
  func.func @transform_5(%arg0: i32) -> (i32, i32) {
    %c0_i32 = arith.constant 0 : i32
    %c0_i32_0 = arith.constant 0 : i32
    %c0_i32_1 = arith.constant 0 : i32
    return %c0_i32, %c0_i32_0 : i32, i32
  }
  func.func @transform_6(%arg0: i32) -> (i32, i32, i32) {
    %c0_i32 = arith.constant 0 : i32
    %c0_i32_0 = arith.constant 0 : i32
    %c0_i32_1 = arith.constant 0 : i32
    %c0_i32_2 = arith.constant 0 : i32
    return %c0_i32, %c0_i32_0, %c0_i32_1 : i32, i32, i32
  }
}

</mosaic_0001>

<bundles_post_ra>
// kernel: self_attention_block.1
= control target key start
LH: loop header
LB: loop body
LE: loop exit
PB: predicated region body
PF: predicated region fallthrough
CT: control target
= control target key end

     0   :  { %vm128_vm0 = vcmask 261120   ;;  %v4653_v16 = vmov 0   ;;  %vm429_vm1 = vcmask 1043456   ;;  %vm416_vm2 = vcmask 64512   ;;  %s4655_s25 = smov 120   ;;  %s4656_s30 = smov 112   ;;  %s6087_s0 = inlined_call_operand.vmem [shape: f32[2,32,64], index: 0, kind: input, shape index: {}]   ;;  %s6088_s2 = inlined_call_operand.vmem [shape: bf16[64,32], index: 2, kind: input, shape index: {}]   ;;  %s6089_s1 = inlined_call_operand.vmem [shape: bf16[32,64], index: 1, kind: input, shape index: {}]   ;;  %s6090_s4 = inlined_call_operand.vmem [shape: f32[32,1], index: 4, kind: input, shape index: {}]   ;;  %s6091_s3 = inlined_call_operand.vmem [shape: f32[1,64], index: 3, kind: input, shape index: {}]   ;;  %s6092_s5 = inlined_call_operand.vmem [shape: f32[3,32], index: 5, kind: input, shape index: {}]   ;;  %s6093_s6 = inlined_call_operand.vmem [shape: f32[2,32,64], index: 6, kind: output, shape index: {}]  }
   0x1   :  { %v24_v0 = vld [vmem:[%s6087_s0] sm:$0xff]  ;;  %v25_v1 = vld [vmem:[%s6087_s0 + $0x8] sm:$0xff]  ;;  %v26_v2 = vld [vmem:[%s6087_s0 + $0x10] sm:$0xff]  ;;  %4359 = vset.pattern.permute.xlu1 %v4653_v16  ;;  %vm498_vm3 = vcmask 523264   ;;  %s4657_s7 = smov 88   ;;  %s4658_s8 = smov 80  }
   0x2   :  { %33 = vxpose.xlu0.b32.start [1/4] (short) (narrow) %v24_v0, 64  ;;  %v27_v3 = vld [vmem:[%s6087_s0 + $0x18] sm:$0xff]  ;;  %v258_v4 = vpack.c.bf16 %v25_v1, %v24_v0  ;;  %v4361_v6 = vld [vmem:[%s6088_s2] sm:$0xff]   ;;  %v4362_v7 = vld [vmem:[%s6088_s2 + $0x8] sm:$0xff]   ;;  %s4659_s9 = smov 104   ;;  %s4660_s13 = smov 72  }
   0x3   :  { %v259_v5 = vpack.c.bf16 %v27_v3, %v26_v2  ;;  %3962 = vmatprep.mubr.msk.bf16.mxu1 %vm128_vm0, %v4361_v6  ;;  %v4718_v8 = vld [vmem:[%s6087_s0 + $0x20] sm:$0xff]  ;;  %v4723_v9 = vld [vmem:[%s6087_s0 + $0x28] sm:$0xff]  ;;  %v4733_v12 = vld [vmem:[%s6087_s0 + $0x30] sm:$0xff] }
   0x4   :  { %3958 = vmatprep.subr.bf16.mxu1 %v258_v4  ;;  %v345_v10 = vpack.c.bf16 %v4723_v9, %v4718_v8  ;;  %v4363_v11 = vld [vmem:[%s6089_s1] sm:$0xff]   ;;  %v4738_v13 = vld [vmem:[%s6087_s0 + $0x38] sm:$0xff]  ;;  %v4364_v15 = vld [vmem:[%s6089_s1 + $0x8] sm:$0xff]  }
   0x5   :  { %3959 = vmatpush3.bf16.msra.mxu1 %v258_v4  ;;  %v346_v14 = vpack.c.bf16 %v4738_v13, %v4733_v12  ;;  %3938 = vmatprep.subr.bf16.mxu0 %v4363_v11  ;;  %v254_v17 = vld [vmem:[%s6090_s4] sm:$0xff] }
   0x6   :  { %34 = vxpose.xlu0.b32.cont [2/4] (short) (narrow) %v25_v1, 64  ;;  %3960 = vmatprep.subr.bf16.mxu1 %v259_v5  ;;  %v4801_v43 = vld [vmem:[%s6091_s3] ss:$0 sm:$0xff]  ;;  %s4654_s3 = smov 96  }
   0x7   :  { %3939 = vmatpush3.bf16.msra.mxu0 %v4363_v11  ;;  %262 = vperm.xlu1 %4359, %v254_v17  }
   0x8   :  { %3940 = vmatprep.subr.bf16.mxu0 %v4364_v15 }
   0x9   :  { %3961 = vmatpush3.bf16.msra.mxu1 %v259_v5 }
   0xa   :  { %35 = vxpose.xlu0.b32.cont [3/4] (short) (narrow) %v26_v2, 64  ;;  %3966 = vmatprep.subr.bf16.mxu1 %v345_v10 }
   0xb   :  { %3941 = vmatpush3.bf16.msra.mxu0 %v4364_v15 }
   0xc   :  { %3963 = vmatmul.mubr.msk.bf16.vlgmr.msra.gmra.mrb[0].mxu1 %vm128_vm0, %v4362_v7 }
   0xd   :  { %3967 = vmatpush3.bf16.msra.mxu1 %v345_v10  ;;  %3970 = vmatprep.mubr.msk.bf16.mxu1 %vm128_vm0, %v4361_v6 }
   0xe   :  { %36 = vxpose.xlu0.b32.end [4/4] (short) (narrow) %v27_v3, 64  ;;  %3968 = vmatprep.subr.bf16.mxu1 %v346_v14 }
  0x11   :  { %3969 = vmatpush3.bf16.msra.mxu1 %v346_v14 }
  0x14   :  { %3971 = vmatmul.mubr.msk.bf16.vlgmr.msra.gmra.mrb[4].mxu1 %vm128_vm0, %v4362_v7 }
  0x37   :  { %4360 = vset.pattern.permute.xlu0 %v4653_v16 }
  0x82   :  { %v4751_v18 = vpop.trf.xlu0 }
  0x83   :  { %6110 = vst [vmem:[#allocation2_spill] sm:$0xff] %v4751_v18 }
  0x86   :  { %v4753_v19 = vpop.trf.xlu0  ;;  %v4779_v30 = vpop.permute.xlu1 %262 }
  0x87   :  { %6111 = vst [vmem:[#allocation3_spill] sm:$0xff] %v4753_v19  ;;  %v97_v20 = vpack.c.bf16 %v4753_v19, %v4751_v18 }
  0x89   :  { %3942 = vmatprep.mubr.msk.bf16.mxu0 %vm128_vm0, %v97_v20 }
  0x8a   :  { %v4758_v21 = vpop.trf.xlu0 }
  0x8b   :  { %6112 = vst [vmem:[#allocation4_spill] sm:$0xff] %v4758_v21 }
  0x8e   :  { %v4760_v22 = vpop.trf.xlu0 }
  0x8f   :  { %6113 = vst [vmem:[#allocation5_spill] sm:$0xff] %v4760_v22  ;;  %v98_v23 = vpack.c.bf16 %v4760_v22, %v4758_v21 }
  0x91   :  { %3943 = vmatmul.mubr.msk.bf16.vlgmr.msra.gmra.mrb[0].mxu0 %vm128_vm0, %v98_v23 }
  0x92   :  { %v4765_v24 = vpop.trf.xlu0 }
  0x93   :  { %6114 = vst [vmem:[#allocation6_spill] sm:$0xff] %v4765_v24 }
  0x96   :  { %v4767_v25 = vpop.trf.xlu0 }
  0x97   :  { %6115 = vst [vmem:[#allocation7_spill] sm:$0xff] %v4767_v25  ;;  %v99_v26 = vpack.c.bf16 %v4767_v25, %v4765_v24 }
  0x99   :  { %3946 = vmatprep.mubr.msk.bf16.mxu0 %vm128_vm0, %v99_v26 }
  0x9a   :  { %v4772_v27 = vpop.trf.xlu0 }
  0x9b   :  { %6116 = vst [vmem:[#allocation8_spill] sm:$0xff] %v4772_v27 }
  0x9e   :  { %v4774_v28 = vpop.trf.xlu0 }
  0x9f   :  { %6117 = vst [vmem:[#allocation9_spill] sm:$0xff] %v4774_v28  ;;  %v100_v29 = vpack.c.bf16 %v4774_v28, %v4772_v27 }
  0xa1   :  { %3947 = vmatmul.mubr.msk.bf16.gmra.mrb[4].mxu0 %vm128_vm0, %v100_v29 }
  0xdf   :  { %v4781_v31 = vpop.f32.mrb[0].mxu1 }
  0xe0   :  { %v330_v32 = vpop.f32.mrb[1].mxu1 }
  0xe1   :  { %v4783_v33 = vpop.f32.mrb[2].mxu1  ;;  %v331_v34 = vadd.f32 %v330_v32, %v4779_v30 }
  0xe2   :  { %v4786_v35 = vpop.f32.mrb[3].mxu1 }
  0xe3   :  { %v415_v36 = vpack.c.bf16 %v331_v34, %v331_v34 }
  0xe5   :  { %4334 = vmatprep.subr.msk.bf16.mxu1 %vm429_vm1, %v415_v36  ;;  %v431_v39 = vsel %vm429_vm1, %v415_v36, 0 }
  0xe6   :  { %3975 = vmatpush3.bf16.msra.mxu1 %v431_v39 }
  0xe7   :  { %v4789_v37 = vpop.f32.mrb[4].mxu1 }
  0xe8   :  { %v4791_v38 = vpop.f32.mrb[5].mxu1 }
  0xe9   :  { %v4794_v40 = vpop.f32.mrb[6].mxu1 }
  0xea   :  { %v4796_v41 = vpop.f32.mrb[7].mxu1 }
 0x164   :  { %v3944_v42 = vpop.f32.mrb[0].mxu0 }
 0x165   :  { %v187_v44 = vpop.f32.mrb[1].mxu0  ;;  %v196_v46 = vadd.f32 %v3944_v42, %v4801_v43 }
 0x166   :  { %v3945_v45 = vpop.f32.mrb[2].mxu0  ;;  %v188_v49 = vadd.f32 %v4801_v43, %v187_v44 }
 0x167   :  { %v199_v47 = vadd.f32 %v3945_v45, %v4801_v43  ;;  %v190_v48 = vpop.f32.mrb[3].mxu0 }
 0x168   :  { %v191_v50 = vadd.f32 %v4801_v43, %v190_v48 }
 0x169   :  { %v4807_v51 = vpack.c.bf16 %v199_v47, %v196_v46 }
 0x16a   :  { %v4809_v52 = vpack.c.bf16 %v191_v50, %v188_v49 }
 0x16c   :  { %3976 = vmatprep.mubr.msk.bf16.mxu1 %vm416_vm2, %v4809_v52 }
 0x16d   :  { %3977 = vmatmul.mubr.msk.bf16.vlgmr.msra.gmra.mrb[8].mxu1 %vm416_vm2, %v4807_v51 }
 0x174   :  { %v3948_v53 = vpop.f32.mrb[4].mxu0 }
 0x175   :  { %v212_v54 = vadd.f32 %v3948_v53, %v4801_v43  ;;  %v203_v55 = vpop.f32.mrb[5].mxu0 }
 0x176   :  { %v204_v56 = vadd.f32 %v4801_v43, %v203_v55  ;;  %v3949_v57 = vpop.f32.mrb[6].mxu0 }
 0x177   :  { %v215_v58 = vadd.f32 %v3949_v57, %v4801_v43  ;;  %v206_v59 = vpop.f32.mrb[7].mxu0 }
 0x178   :  { %v207_v60 = vadd.f32 %v4801_v43, %v206_v59 }
 0x179   :  { %v4819_v61 = vpack.c.bf16 %v215_v58, %v212_v54 }
 0x17a   :  { %v4821_v62 = vpack.c.bf16 %v207_v60, %v204_v56 }
 0x17c   :  { %3980 = vmatprep.mubr.msk.bf16.mxu1 %vm416_vm2, %v4821_v62 }
 0x17d   :  { %3981 = vmatmul.mubr.msk.bf16.gmra.mrb[12].mxu1 %vm416_vm2, %v4819_v61 }
 0x240   :  { %v3978_v63 = vpop.f32.mrb[8].mxu1 }
 0x241   :  { %v467_v0 = vpop.f32.mrb[9].mxu1  ;;  %v505_v5 = vsel %vm498_vm3, %v3978_v63, -inf }
 0x242   :  { %v3979_v1 = vpop.f32.mrb[10].mxu1  ;;  %v499_v2 = vsel %vm498_vm3, %v467_v0, -inf }
 0x243   :  { %500 = vmax.xlane.f32.xlu1 %v499_v2  ;;  %v470_v3 = vpop.f32.mrb[11].mxu1  ;;  %v508_v6 = vsel %vm498_vm3, %v3979_v1, -inf }
 0x244   :  { %v502_v4 = vsel %vm498_vm3, %v470_v3, -inf }
 0x245   :  { %503 = vmax.xlane.f32.xlu0 %v502_v4 }
 0x247   :  { %506 = vmax.xlane.f32.xlu1 %v505_v5 }
 0x24b   :  { %509 = vmax.xlane.f32.xlu1 %v508_v6 }
 0x250   :  { %v3982_v7 = vpop.f32.mrb[12].mxu1 }
 0x251   :  { %v483_v10 = vpop.f32.mrb[13].mxu1  ;;  %v517_v15 = vsel %vm498_vm3, %v3982_v7, -inf }
 0x252   :  { %v3983_v11 = vpop.f32.mrb[14].mxu1  ;;  %v511_v16 = vsel %vm498_vm3, %v483_v10, -inf }
 0x253   :  { %v4831_v14 = vpop.f32.mrb[15].mxu1  ;;  %v520_v17 = vsel %vm498_vm3, %v3983_v11, -inf }
 0x254   :  { %v514_v20 = vsel %vm498_vm3, %v4831_v14, -inf }
 0x25b   :  { %595 = vrot.lane.b32.xlu0 %v4809_v52, %s4654_s3 }
 0x25c   :  { %597 = vrot.lane.b32.xlu1 %v4807_v51, %s4654_s3 }
 0x25f   :  { %601 = vrot.lane.b32.xlu0 %v4819_v61, %s4654_s3 }
 0x280   :  { %518 = vmax.xlane.f32.xlu1 %v517_v15 }
 0x284   :  { %512 = vmax.xlane.f32.xlu1 %v511_v16 }
 0x288   :  { %521 = vmax.xlane.f32.xlu1 %v520_v17 }
 0x28c   :  { %515 = vmax.xlane.f32.xlu1 %v514_v20 }
 0x29d   :  { %599 = vrot.lane.b32.xlu1 %v4821_v62, %s4654_s3 }
 0x2d0   :  { %v501_v23 = vpop.xlane.xlu1 %500 }
 0x2d1   :  { %v523_v29 = vsub.f32 %v467_v0, %v501_v23 }
 0x2d2   :  { %v504_v26 = vpop.xlane.xlu0 %503 }
 0x2d3   :  { %v531_v39 = vmul.f32 1.442695, %v523_v29  ;;  %v524_v46 = vsub.f32 %v470_v3, %v504_v26 }
 0x2d4   :  { %v507_v32 = vpop.xlane.xlu1 %506 }
 0x2d5   :  { %v525_v34 = vsub.f32 %v3978_v63, %v507_v32  ;;  %v533_v49 = vmul.f32 1.442695, %v524_v46 }
 0x2d6   :  { %v596_v36 = vpop.permute.xlu0 %595 }
 0x2d7   :  { %v535_v42 = vmul.f32 1.442695, %v525_v34  ;;  %3984 = vmatprep.subr.bf16.mxu0 %v596_v36 }
 0x2d8   :  { %v510_v44 = vpop.xlane.xlu1 %509  ;;  %3985 = vmatpush3.bf16.msra.mxu0 %v596_v36  ;;  %v255_v36 = vld [vmem:[%s6090_s4 + $0x8] sm:$0xff] }
 0x2d9   :  { %4365 = vpow2.f32 %v535_v42  ;;  %v526_v45 = vsub.f32 %v3979_v1, %v510_v44 }
 0x2da   :  { %4367 = vpow2.f32 %v531_v39 }
 0x2db   :  { %v537_v47 = vmul.f32 1.442695, %v526_v45 }
 0x2dc   :  { %v598_v48 = vpop.permute.xlu1 %597 }
 0x2dd   :  { %3986 = vmatprep.subr.bf16.mxu0 %v598_v48  ;;  %4369 = vpow2.f32 %v537_v47 }
 0x2de   :  { %3987 = vmatpush3.bf16.msra.mxu0 %v598_v48  ;;  %4371 = vpow2.f32 %v533_v49 }
 0x2e3   :  { %v4846_v50 = vpop.eup %4365 }
 0x2e4   :  { %v553_v53 = vsel %vm498_vm3, %v4846_v50, 0.0  ;;  %v4850_v54 = vpop.eup %4367 }
 0x2e5   :  { %554 = vadd.xlane.f32.xlu1 %v553_v53  ;;  %v547_v55 = vsel %vm498_vm3, %v4850_v54, 0.0 }
 0x2e7   :  { %v4854_v56 = vpop.eup %4369 }
 0x2e8   :  { %v556_v57 = vsel %vm498_vm3, %v4854_v56, 0.0  ;;  %v4858_v58 = vpop.eup %4371 }
 0x2e9   :  { %548 = vadd.xlane.f32.xlu1 %v547_v55  ;;  %v550_v59 = vsel %vm498_vm3, %v4858_v58, 0.0 }
 0x2ed   :  { %557 = vadd.xlane.f32.xlu1 %v556_v57 }
 0x2f1   :  { %551 = vadd.xlane.f32.xlu1 %v550_v59 }
 0x30d   :  { %v519_v60 = vpop.xlane.xlu1 %518 }
 0x30e   :  { %v529_v63 = vsub.f32 %v3982_v7, %v519_v60 }
 0x310   :  { %v543_v0 = vmul.f32 1.442695, %v529_v63 }
 0x311   :  { %v513_v1 = vpop.xlane.xlu1 %512 }
 0x312   :  { %4373 = vpow2.f32 %v543_v0  ;;  %v527_v2 = vsub.f32 %v483_v10, %v513_v1  ;;  %v602_v10 = vpop.permute.xlu0 %601 }
 0x314   :  { %v539_v3 = vmul.f32 1.442695, %v527_v2 }
 0x315   :  { %v522_v4 = vpop.xlane.xlu1 %521 }
 0x316   :  { %4375 = vpow2.f32 %v539_v3  ;;  %v530_v5 = vsub.f32 %v3983_v11, %v522_v4 }
 0x318   :  { %v545_v6 = vmul.f32 1.442695, %v530_v5 }
 0x319   :  { %v516_v15 = vpop.xlane.xlu1 %515 }
 0x31a   :  { %4377 = vpow2.f32 %v545_v6  ;;  %v528_v16 = vsub.f32 %v4831_v14, %v516_v15 }
 0x31c   :  { %v4863_v17 = vpop.eup %4373  ;;  %v541_v20 = vmul.f32 1.442695, %v528_v16 }
 0x31d   :  { %v600_v23 = vpop.permute.xlu1 %599  ;;  %v565_v7 = vsel %vm498_vm3, %v4863_v17, 0.0 }
 0x31e   :  { %4379 = vpow2.f32 %v541_v20  ;;  %566 = vadd.xlane.f32.xlu0 %v565_v7  ;;  %3988 = vmatprep.subr.bf16.mxu0 %v600_v23 }
 0x31f   :  { %3989 = vmatpush3.bf16.msra.mxu0 %v600_v23 }
 0x320   :  { %v4867_v26 = vpop.eup %4375  ;;  %3990 = vmatprep.subr.bf16.mxu0 %v602_v10 }
 0x321   :  { %v559_v11 = vsel %vm498_vm3, %v4867_v26, 0.0 }
 0x322   :  { %560 = vadd.xlane.f32.xlu0 %v559_v11 }
 0x323   :  { %3991 = vmatpush3.bf16.msra.mxu0 %v602_v10 }
 0x324   :  { %v4871_v14 = vpop.eup %4377 }
 0x325   :  { %v568_v29 = vsel %vm498_vm3, %v4871_v14, 0.0 }
 0x326   :  { %569 = vadd.xlane.f32.xlu1 %v568_v29 }
 0x328   :  { %v4380_v32 = vpop.eup %4379 }
 0x329   :  { %v562_v34 = vsel %vm498_vm3, %v4380_v32, 0.0 }
 0x32a   :  { %563 = vadd.xlane.f32.xlu1 %v562_v34 }
 0x338   :  { %267 = vperm.xlu0 %4360, %v255_v36  }
 0x33c   :  { %778 = vrot.lane.b32.xlu0 %v4809_v52, %s4655_s25 }
 0x340   :  { %780 = vrot.lane.b32.xlu0 %v4807_v51, %s4655_s25 }
 0x35d   :  { %65 = vxpose.xlu1.b32.start [1/4] (short) (narrow) %v4718_v8, 64 }
 0x361   :  { %66 = vxpose.xlu1.b32.cont [2/4] (short) (narrow) %v4723_v9, 64 }
 0x365   :  { %67 = vxpose.xlu1.b32.cont [3/4] (short) (narrow) %v4733_v12, 64 }
 0x369   :  { %68 = vxpose.xlu1.b32.end [4/4] (short) (narrow) %v4738_v13, 64 }
 0x372   :  { %v555_v47 = vpop.xlane.xlu1 %554 }
 0x376   :  { %v549_v48 = vpop.xlane.xlu1 %548 }
 0x37a   :  { %v558_v49 = vpop.xlane.xlu1 %557 }
 0x37e   :  { %v552_v8 = vpop.xlane.xlu1 %551 }
 0x37f   :  { %4381 = vrcp.f32 %v552_v8 }
 0x380   :  { %4383 = vrcp.f32 %v549_v48 }
 0x381   :  { %4385 = vrcp.f32 %v558_v49 }
 0x389   :  { %v4382_v1 = vpop.eup %4381 }
 0x38a   :  { %v4384_v3 = vpop.eup %4383  ;;  %v580_v4 = vmul.f32 %v4382_v1, %v4858_v58 }
 0x38b   :  { %v579_v6 = vmul.f32 %v4384_v3, %v4850_v54  ;;  %v4386_v16 = vpop.eup %4385 }
 0x38c   :  { %v582_v58 = vmul.f32 %v4386_v16, %v4854_v56 }
 0x38d   :  { %v587_v20 = vpack.c.bf16 %v580_v4, %v579_v6 }
 0x3ab   :  { %v567_v39 = vpop.xlane.xlu0 %566 }
 0x3af   :  { %v561_v42 = vpop.xlane.xlu0 %560 }
 0x3b3   :  { %v570_v53 = vpop.xlane.xlu1 %569 }
 0x3b7   :  { %v4887_v44 = vpop.permute.xlu0 %267  ;;  %v564_v9 = vpop.xlane.xlu1 %563 }
 0x3b8   :  { %v334_v45 = vadd.f32 %v4786_v35, %v4887_v44  ;;  %4387 = vrcp.f32 %v564_v9 }
 0x3b9   :  { %4389 = vrcp.f32 %v555_v47 }
 0x3ba   :  { %v777_v46 = vpack.c.bf16 %v334_v45, %v334_v45  ;;  %4391 = vrcp.f32 %v561_v42 }
 0x3bb   :  { %4393 = vrcp.f32 %v570_v53  ;;  %v779_v48 = vpop.permute.xlu0 %778 }
 0x3bc   :  { %4336 = vmatprep.subr.msk.bf16.mxu0 %vm429_vm1, %v777_v46  ;;  %4395 = vrcp.f32 %v567_v39  ;;  %v799_v39 = vsel %vm429_vm1, %v777_v46, 0 }
 0x3c2   :  { %v4388_v23 = vpop.eup %4387 }
 0x3c3   :  { %v4390_v7 = vpop.eup %4389  ;;  %v584_v11 = vmul.f32 %v4388_v23, %v4380_v32 }
 0x3c4   :  { %v4392_v10 = vpop.eup %4391  ;;  %v581_v29 = vmul.f32 %v4390_v7, %v4846_v50  ;;  %v781_v50 = vpop.permute.xlu0 %780 }
 0x3c5   :  { %v583_v54 = vmul.f32 %v4392_v10, %v4867_v26  ;;  %v4394_v36 = vpop.eup %4393  ;;  %v688_v26 = vld [vmem:[%s6088_s2 + $0x10] sm:$0xf] }
 0x3c6   :  { %v588_v34 = vpack.c.bf16 %v582_v58, %v581_v29  ;;  %v4396_v45 = vpop.eup %4395  ;;  %v586_v47 = vmul.f32 %v4394_v36, %v4871_v14  ;;  %4335 = vmatprep.subr.msk.bf16.mxu1 %vm429_vm1, %v688_v26  ;;  %v702_v46 = vsel %vm429_vm1, %v688_v26, 0 }
 0x3c7   :  { %v589_v42 = vpack.c.bf16 %v584_v11, %v583_v54  ;;  %v585_v56 = vmul.f32 %v4396_v45, %v4863_v17  ;;  %4001 = vmatpush3.bf16.msra.mxu1 %v702_v46 }
 0x3c9   :  { %v590_v32 = vpack.c.bf16 %v586_v47, %v585_v56 }
 0x3dd   :  { %v4892_v55 = vpop.trf.xlu1 }
 0x3de   :  { %6118 = vst [vmem:[#allocation10_spill] sm:$0xff] %v4892_v55 }
 0x3e1   :  { %v4894_v12 = vpop.trf.xlu1 }
 0x3e2   :  { %6119 = vst [vmem:[#allocation11_spill] sm:$0xff] %v4894_v12  ;;  %v101_v13 = vpack.c.bf16 %v4894_v12, %v4892_v55 }
 0x3e4   :  { %3950 = vmatprep.mubr.msk.bf16.mxu0 %vm128_vm0, %v101_v13 }
 0x3e5   :  { %v4899_v57 = vpop.trf.xlu1 }
 0x3e6   :  { %6120 = vst [vmem:[#allocation12_spill] sm:$0xff] %v4899_v57 }
 0x3e9   :  { %v4901_v35 = vpop.trf.xlu1 }
 0x3ea   :  { %6121 = vst [vmem:[#allocation13_spill] sm:$0xff] %v4901_v35  ;;  %v102_v59 = vpack.c.bf16 %v4901_v35, %v4899_v57 }
 0x3ec   :  { %3951 = vmatmul.mubr.msk.bf16.gmra.mrb[8].mxu0 %vm128_vm0, %v102_v59 }
 0x3ed   :  { %v4906_v60 = vpop.trf.xlu1 }
 0x3ee   :  { %6122 = vst [vmem:[#allocation14_spill] sm:$0xff] %v4906_v60 }
 0x3f1   :  { %v4908_v63 = vpop.trf.xlu1 }
 0x3f2   :  { %6123 = vst [vmem:[#allocation15_spill] sm:$0xff] %v4908_v63  ;;  %v103_v0 = vpack.c.bf16 %v4908_v63, %v4906_v60 }
 0x3f4   :  { %3954 = vmatprep.mubr.msk.bf16.mxu0 %vm128_vm0, %v103_v0 }
 0x3f5   :  { %v4913_v2 = vpop.trf.xlu1 }
 0x3f6   :  { %6124 = vst [vmem:[#allocation16_spill] sm:$0xff] %v4913_v2 }
 0x3f9   :  { %v4916_v5 = vpop.trf.xlu1 }
 0x3fa   :  { %6125 = vst [vmem:[#allocation17_spill] sm:$0xff] %v4916_v5  ;;  %v104_v15 = vpack.c.bf16 %v4916_v5, %v4913_v2 }
 0x3fc   :  { %3955 = vmatmul.mubr.msk.bf16.gmra.mrb[12].mxu0 %vm128_vm0, %v104_v15 }
 0x3fd   :  { %3992 = vmatprep.mubr.msk.bf16.mxu0 %vm498_vm3, %v587_v20 }
 0x404   :  { %3993 = vmatmul.mubr.msk.bf16.vlgmr.msra.gmra.mrb[16].mxu0 %vm498_vm3, %v588_v34 }
 0x405   :  { %4011 = vmatpush3.bf16.msra.mxu0 %v799_v39  ;;  %3996 = vmatprep.mubr.msk.bf16.mxu0 %vm498_vm3, %v589_v42 }
 0x40c   :  { %3997 = vmatmul.mubr.msk.bf16.gmra.mrb[20].mxu0 %vm498_vm3, %v590_v32 }
 0x40d   :  { %4012 = vmatprep.mubr.msk.bf16.mxu0 %vm416_vm2, %v779_v48 }
 0x414   :  { %4013 = vmatmul.mubr.msk.bf16.vlgmr.msra.gmra.mrb[24].mxu0 %vm416_vm2, %v781_v50 }
 0x4bf   :  { %v3952_v14 = vpop.f32.mrb[8].mxu0 }
 0x4c0   :  { %v219_v17 = vpop.f32.mrb[9].mxu0  ;;  %v228_v8 = vadd.f32 %v3952_v14, %v4801_v43 }
 0x4c1   :  { %v3953_v49 = vpop.f32.mrb[10].mxu0  ;;  %v220_v13 = vadd.f32 %v4801_v43, %v219_v17 }
 0x4c2   :  { %v231_v53 = vadd.f32 %v3953_v49, %v4801_v43  ;;  %v222_v9 = vpop.f32.mrb[11].mxu0 }
 0x4c3   :  { %v223_v59 = vadd.f32 %v4801_v43, %v222_v9 }
 0x4c4   :  { %v4943_v0 = vpack.c.bf16 %v231_v53, %v228_v8  ;;  %v256_v53 = vld [vmem:[%s6090_s4 + $0x10] sm:$0xff] }
 0x4c5   :  { %v4945_v1 = vpack.c.bf16 %v223_v59, %v220_v13 }
 0x4cf   :  { %v3956_v3 = vpop.f32.mrb[12].mxu0 }
 0x4d0   :  { %v235_v4 = vpop.f32.mrb[13].mxu0  ;;  %v244_v15 = vadd.f32 %v3956_v3, %v4801_v43 }
 0x4d1   :  { %v3957_v6 = vpop.f32.mrb[14].mxu0  ;;  %v236_v23 = vadd.f32 %v4801_v43, %v235_v4 }
 0x4d2   :  { %v247_v16 = vadd.f32 %v3957_v6, %v4801_v43  ;;  %v238_v20 = vpop.f32.mrb[15].mxu0 }
 0x4d3   :  { %v239_v7 = vadd.f32 %v4801_v43, %v238_v20 }
 0x4d4   :  { %v4951_v10 = vpack.c.bf16 %v247_v16, %v244_v15 }
 0x4d5   :  { %v4953_v58 = vpack.c.bf16 %v239_v7, %v236_v23 }
 0x4d7   :  { %v3994_v11 = vpop.f32.mrb[16].mxu0 }
 0x4d8   :  { %v653_v29 = vpop.f32.mrb[17].mxu0 }
 0x4d9   :  { %v3995_v54 = vpop.f32.mrb[18].mxu0 }
 0x4da   :  { %v685_v34 = vpack.c.bf16 %v3995_v54, %v3994_v11  ;;  %v656_v36 = vpop.f32.mrb[19].mxu0 }
 0x4db   :  { %v684_v42 = vpack.c.bf16 %v656_v36, %v653_v29 }
 0x4dd   :  { %4002 = vmatprep.mubr.msk.bf16.mxu1 %vm416_vm2, %v684_v42 }
 0x4de   :  { %4003 = vmatmul.mubr.msk.bf16.vlgmr.msra.gmra.mrb[16].mxu1 %vm416_vm2, %v685_v34 }
 0x4df   :  { %v3998_v39 = vpop.f32.mrb[20].mxu0 }
 0x4e0   :  { %v669_v45 = vpop.f32.mrb[21].mxu0 }
 0x4e1   :  { %v3999_v47 = vpop.f32.mrb[22].mxu0 }
 0x4e2   :  { %v687_v56 = vpack.c.bf16 %v3999_v47, %v3998_v39  ;;  %v672_v32 = vpop.f32.mrb[23].mxu0 }
 0x4e3   :  { %v686_v43 = vpack.c.bf16 %v672_v32, %v669_v45 }
 0x4e5   :  { %4006 = vmatprep.mubr.msk.bf16.mxu1 %vm416_vm2, %v686_v43 }
 0x4e6   :  { %4007 = vmatmul.mubr.msk.bf16.gmra.mrb[20].mxu1 %vm416_vm2, %v687_v56 }
 0x4e7   :  { %v4014_v48 = vpop.f32.mrb[24].mxu0 }
 0x4e8   :  { %v835_v50 = vpop.f32.mrb[25].mxu0  ;;  %v872_v8 = vsel %vm498_vm3, %v4014_v48, -inf }
 0x4e9   :  { %v4015_v26 = vpop.f32.mrb[26].mxu0  ;;  %v866_v46 = vsel %vm498_vm3, %v835_v50, -inf }
 0x4ea   :  { %867 = vmax.xlane.f32.xlu0 %v866_v46  ;;  %v838_v14 = vpop.f32.mrb[27].mxu0  ;;  %v875_v17 = vsel %vm498_vm3, %v4015_v26, -inf }
 0x4eb   :  { %876 = vmax.xlane.f32.xlu1 %v875_v17  ;;  %v869_v49 = vsel %vm498_vm3, %v838_v14, -inf }
 0x4ee   :  { %870 = vmax.xlane.f32.xlu0 %v869_v49 }
 0x4f2   :  { %873 = vmax.xlane.f32.xlu0 %v872_v8 }
 0x4fc   :  { %272 = vperm.xlu1 %4359, %v256_v53  }
 0x500   :  { %1147 = vrot.lane.b32.xlu1 %v4819_v61, %s4656_s30 }
 0x508   :  { %958 = vrot.lane.b32.xlu0 %v4809_v52, %s4657_s7 }
 0x50c   :  { %960 = vrot.lane.b32.xlu0 %v4807_v51, %s4657_s7 }
 0x510   :  { %782 = vrot.lane.b32.xlu0 %v4821_v62, %s4655_s25 }
 0x514   :  { %784 = vrot.lane.b32.xlu0 %v4819_v61, %s4655_s25 }
 0x518   :  { %962 = vrot.lane.b32.xlu0 %v4821_v62, %s4657_s7 }
 0x577   :  { %v868_v9 = vpop.xlane.xlu0 %867 }
 0x578   :  { %v890_v59 = vsub.f32 %v835_v50, %v868_v9  ;;  %v877_v3 = vpop.xlane.xlu1 %876 }
 0x579   :  { %v893_v16 = vsub.f32 %v4015_v26, %v877_v3 }
 0x57a   :  { %v898_v15 = vmul.f32 1.442695, %v890_v59 }
 0x57b   :  { %v871_v13 = vpop.xlane.xlu0 %870  ;;  %v904_v7 = vmul.f32 1.442695, %v893_v16 }
 0x57c   :  { %v891_v11 = vsub.f32 %v838_v14, %v871_v13  ;;  %v4992_v17 = vpop.permute.xlu1 %272 }
 0x57d   :  { %v339_v8 = vadd.f32 %v4781_v31, %v4992_v17 }
 0x57e   :  { %v900_v54 = vmul.f32 1.442695, %v891_v11 }
 0x57f   :  { %v874_v4 = vpop.xlane.xlu0 %873  ;;  %v1140_v9 = vpack.c.bf16 %v339_v8, %v339_v8 }
 0x580   :  { %v892_v6 = vsub.f32 %v4014_v48, %v874_v4 }
 0x581   :  { %v1162_v11 = vsel %vm429_vm1, %v1140_v9, 0 }
 0x582   :  { %v902_v20 = vmul.f32 1.442695, %v892_v6 }
 0x583   :  { %v959_v23 = vpop.permute.xlu0 %958 }
 0x584   :  { %4397 = vpow2.f32 %v902_v20  ;;  %4020 = vmatprep.subr.bf16.mxu0 %v959_v23  ;;  %4262 = vmatprep.subr.bf16.mxu1 %v959_v23 }
 0x585   :  { %4021 = vmatpush3.bf16.msra.mxu0 %v959_v23  ;;  %4266 = vmatpush3.bf16.msra.mxu1 %v959_v23  ;;  %4399 = vpow2.f32 %v898_v15 }
 0x586   :  { %4401 = vpow2.f32 %v904_v7 }
 0x587   :  { %v961_v29 = vpop.permute.xlu0 %960  ;;  %4403 = vpow2.f32 %v900_v54 }
 0x588   :  { %4022 = vmatprep.subr.bf16.mxu0 %v961_v29  ;;  %4263 = vmatprep.subr.bf16.mxu1 %v961_v29 }
 0x589   :  { %4023 = vmatpush3.bf16.msra.mxu0 %v961_v29  ;;  %4267 = vmatpush3.bf16.msra.mxu1 %v961_v29 }
 0x58b   :  { %v783_v34 = vpop.permute.xlu0 %782 }
 0x58c   :  { %4016 = vmatprep.mubr.msk.bf16.mxu0 %vm416_vm2, %v783_v34  ;;  %v1148_v34 = vpop.permute.xlu1 %1147 }
 0x58e   :  { %v4398_v36 = vpop.eup %4397 }
 0x58f   :  { %v785_v42 = vpop.permute.xlu0 %784  ;;  %v920_v39 = vsel %vm498_vm3, %v4398_v36, 0.0  ;;  %v4400_v45 = vpop.eup %4399 }
 0x590   :  { %921 = vadd.xlane.f32.xlu0 %v920_v39  ;;  %4017 = vmatmul.mubr.msk.bf16.gmra.mrb[28].mxu0 %vm416_vm2, %v785_v42  ;;  %v914_v56 = vsel %vm498_vm3, %v4400_v45, 0.0  ;;  %v4402_v32 = vpop.eup %4401 }
 0x591   :  { %v923_v43 = vsel %vm498_vm3, %v4402_v32, 0.0  ;;  %v4404_v48 = vpop.eup %4403 }
 0x592   :  { %v917_v50 = vsel %vm498_vm3, %v4404_v48, 0.0 }
 0x593   :  { %v963_v47 = vpop.permute.xlu0 %962 }
 0x594   :  { %915 = vadd.xlane.f32.xlu0 %v914_v56  ;;  %4024 = vmatprep.subr.bf16.mxu0 %v963_v47 }
 0x595   :  { %4264 = vmatprep.subr.bf16.mxu1 %v963_v47  ;;  %4025 = vmatpush3.bf16.msra.mxu0 %v963_v47 }
 0x596   :  { %4268 = vmatpush3.bf16.msra.mxu1 %v963_v47 }
 0x598   :  { %924 = vadd.xlane.f32.xlu0 %v923_v43 }
 0x59c   :  { %918 = vadd.xlane.f32.xlu0 %v917_v50 }
 0x5b2   :  { %964 = vrot.lane.b32.xlu0 %v4819_v61, %s4657_s7 }
 0x5b6   :  { %1141 = vrot.lane.b32.xlu0 %v4809_v52, %s4656_s30 }
 0x5ba   :  { %1143 = vrot.lane.b32.xlu0 %v4807_v51, %s4656_s30 }
 0x5be   :  { %1145 = vrot.lane.b32.xlu0 %v4821_v62, %s4656_s30 }
 0x61d   :  { %v922_v26 = vpop.xlane.xlu0 %921 }
 0x621   :  { %v916_v46 = vpop.xlane.xlu0 %915 }
 0x625   :  { %v925_v14 = vpop.xlane.xlu0 %924 }
 0x626   :  { %4405 = vrcp.f32 %v925_v14 }
 0x627   :  { %4407 = vrcp.f32 %v916_v46 }
 0x628   :  { %4409 = vrcp.f32 %v922_v26 }
 0x629   :  { %v919_v49 = vpop.xlane.xlu0 %918 }
 0x62a   :  { %4411 = vrcp.f32 %v919_v49 }
 0x62d   :  { %v965_v53 = vpop.permute.xlu0 %964 }
 0x62e   :  { %4026 = vmatprep.subr.bf16.mxu0 %v965_v53  ;;  %4265 = vmatprep.subr.bf16.mxu1 %v965_v53 }
 0x62f   :  { %4027 = vmatpush3.bf16.msra.mxu0 %v965_v53  ;;  %4269 = vmatpush3.bf16.msra.mxu1 %v965_v53 }
 0x630   :  { %4338 = vmatprep.subr.msk.bf16.mxu0 %vm429_vm1, %v1140_v9  ;;  %v4406_v13 = vpop.eup %4405 }
 0x631   :  { %v4408_v59 = vpop.eup %4407  ;;  %v949_v6 = vmul.f32 %v4406_v13, %v4402_v32  ;;  %v1142_v23 = vpop.permute.xlu0 %1141 }
 0x632   :  { %v4410_v3 = vpop.eup %4409  ;;  %v946_v15 = vmul.f32 %v4408_v59, %v4400_v45 }
 0x633   :  { %v948_v20 = vmul.f32 %v4410_v3, %v4398_v36 }
 0x634   :  { %v4412_v4 = vpop.eup %4411 }
 0x635   :  { %v947_v16 = vmul.f32 %v4412_v4, %v4404_v48  ;;  %v955_v31 = vpack.c.bf16 %v949_v6, %v948_v20  ;;  %v1144_v29 = vpop.permute.xlu0 %1143 }
 0x637   :  { %v954_v7 = vpack.c.bf16 %v947_v16, %v946_v15 }
 0x639   :  { %4028 = vmatprep.mubr.msk.bf16.mxu0 %vm498_vm3, %v954_v7  ;;  %v1146_v54 = vpop.permute.xlu0 %1145 }
 0x63a   :  { %4029 = vmatmul.mubr.msk.bf16.vlgmr.msra.gmra.mrb[32].mxu0 %vm498_vm3, %v955_v31 }
 0x63b   :  { %4047 = vmatpush3.bf16.msra.mxu0 %v1162_v11  ;;  %4048 = vmatprep.mubr.msk.bf16.mxu0 %vm416_vm2, %v1142_v23 }
 0x642   :  { %4049 = vmatmul.mubr.msk.bf16.vlgmr.msra.gmra.mrb[36].mxu0 %vm416_vm2, %v1144_v29 }
 0x643   :  { %4052 = vmatprep.mubr.msk.bf16.mxu0 %vm416_vm2, %v1146_v54 }
 0x64a   :  { %4053 = vmatmul.mubr.msk.bf16.gmra.mrb[40].mxu0 %vm416_vm2, %v1148_v34 }
 0x663   :  { %v5004_v36 = vpop.f32.mrb[28].mxu0 }
 0x664   :  { %v5006_v42 = vpop.f32.mrb[29].mxu0 }
 0x665   :  { %v5008_v39 = vpop.f32.mrb[30].mxu0 }
 0x666   :  { %v5010_v45 = vpop.f32.mrb[31].mxu0 }
 0x70d   :  { %v5012_v47 = vpop.f32.mrb[32].mxu0 }
 0x70e   :  { %v5014_v56 = vpop.f32.mrb[33].mxu0 }
 0x70f   :  { %v5016_v32 = vpop.f32.mrb[34].mxu0 }
 0x710   :  { %v5020_v48 = vpop.f32.mrb[35].mxu0 }
 0x715   :  { %v4050_v26 = vpop.f32.mrb[36].mxu0 }
 0x716   :  { %v1198_v46 = vpop.f32.mrb[37].mxu0  ;;  %v1235_v9 = vsel %vm498_vm3, %v4050_v26, -inf }
 0x717   :  { %v4051_v14 = vpop.f32.mrb[38].mxu0  ;;  %v1229_v49 = vsel %vm498_vm3, %v1198_v46, -inf }
 0x718   :  { %1230 = vmax.xlane.f32.xlu0 %v1229_v49  ;;  %v1201_v8 = vpop.f32.mrb[39].mxu0  ;;  %v1238_v4 = vsel %vm498_vm3, %v4051_v14, -inf }
 0x719   :  { %v1232_v53 = vsel %vm498_vm3, %v1201_v8, -inf }
 0x71a   :  { %1233 = vmax.xlane.f32.xlu1 %v1232_v53 }
 0x71c   :  { %1236 = vmax.xlane.f32.xlu0 %v1235_v9 }
 0x71d   :  { %v4054_v13 = vpop.f32.mrb[40].mxu0 }
 0x71e   :  { %v1214_v59 = vpop.f32.mrb[41].mxu0  ;;  %v1247_v16 = vsel %vm498_vm3, %v4054_v13, -inf }
 0x71f   :  { %v4055_v3 = vpop.f32.mrb[42].mxu0  ;;  %v1241_v6 = vsel %vm498_vm3, %v1214_v59, -inf }
 0x720   :  { %1239 = vmax.xlane.f32.xlu0 %v1238_v4  ;;  %1242 = vmax.xlane.f32.xlu1 %v1241_v6  ;;  %v1217_v15 = vpop.f32.mrb[43].mxu0  ;;  %v1250_v23 = vsel %vm498_vm3, %v4055_v3, -inf }
 0x721   :  { %v1244_v20 = vsel %vm498_vm3, %v1217_v15, -inf }
 0x724   :  { %1248 = vmax.xlane.f32.xlu1 %v1247_v16  ;;  %1245 = vmax.xlane.f32.xlu0 %v1244_v20 }
 0x728   :  { %1251 = vmax.xlane.f32.xlu0 %v1250_v23 }
 0x735   :  { %1321 = vrot.lane.b32.xlu1 %v4809_v52, %s4658_s8 }
 0x739   :  { %1325 = vrot.lane.b32.xlu1 %v4821_v62, %s4658_s8 }
 0x73e   :  { %1323 = vrot.lane.b32.xlu0 %v4807_v51, %s4658_s8 }
 0x7a5   :  { %v1231_v7 = vpop.xlane.xlu0 %1230 }
 0x7a6   :  { %v1253_v31 = vsub.f32 %v1198_v46, %v1231_v7 }
 0x7a7   :  { %v1234_v11 = vpop.xlane.xlu1 %1233 }
 0x7a8   :  { %v1261_v34 = vmul.f32 1.442695, %v1253_v31  ;;  %v1254_v53 = vsub.f32 %v1201_v8, %v1234_v11 }
 0x7a9   :  { %v1237_v29 = vpop.xlane.xlu0 %1236 }
 0x7aa   :  { %v1255_v54 = vsub.f32 %v4050_v26, %v1237_v29  ;;  %v1263_v23 = vmul.f32 1.442695, %v1254_v53 }
 0x7ac   :  { %v1265_v49 = vmul.f32 1.442695, %v1255_v54 }
 0x7ad   :  { %v1243_v9 = vpop.xlane.xlu1 %1242  ;;  %v1240_v4 = vpop.xlane.xlu0 %1239 }
 0x7ae   :  { %4413 = vpow2.f32 %v1265_v49  ;;  %v1256_v6 = vsub.f32 %v4051_v14, %v1240_v4  ;;  %v1257_v16 = vsub.f32 %v1214_v59, %v1243_v9 }
 0x7af   :  { %4415 = vpow2.f32 %v1261_v34 }
 0x7b0   :  { %v1267_v20 = vmul.f32 1.442695, %v1256_v6  ;;  %v1269_v63 = vmul.f32 1.442695, %v1257_v16 }
 0x7b1   :  { %v1249_v43 = vpop.xlane.xlu1 %1248  ;;  %v1246_v50 = vpop.xlane.xlu0 %1245 }
 0x7b2   :  { %v1259_v5 = vsub.f32 %v4054_v13, %v1249_v43  ;;  %4417 = vpow2.f32 %v1267_v20  ;;  %v1258_v7 = vsub.f32 %v1217_v15, %v1246_v50 }
 0x7b3   :  { %4419 = vpow2.f32 %v1263_v23  ;;  %v257_v23 = vld [vmem:[%s6090_s4 + $0x18] sm:$0xff] }
 0x7b4   :  { %v1273_v46 = vmul.f32 1.442695, %v1259_v5  ;;  %v1271_v59 = vmul.f32 1.442695, %v1258_v7 }
 0x7b5   :  { %v1322_v26 = vpop.permute.xlu1 %1321  ;;  %v1252_v31 = vpop.xlane.xlu0 %1251 }
 0x7b6   :  { %4421 = vpow2.f32 %v1273_v46  ;;  %v1260_v8 = vsub.f32 %v4055_v3, %v1252_v31  ;;  %4056 = vmatprep.subr.bf16.mxu0 %v1322_v26 }
 0x7b7   :  { %4057 = vmatpush3.bf16.msra.mxu0 %v1322_v26  ;;  %4423 = vpow2.f32 %v1269_v63 }
 0x7b8   :  { %v5038_v11 = vpop.eup %4413  ;;  %v1275_v14 = vmul.f32 1.442695, %v1260_v8 }
 0x7b9   :  { %v1324_v29 = vpop.permute.xlu0 %1323  ;;  %v1283_v43 = vsel %vm498_vm3, %v5038_v11, 0.0  ;;  %v4416_v13 = vpop.eup %4415 }
 0x7ba   :  { %4425 = vpow2.f32 %v1275_v14  ;;  %1284 = vadd.xlane.f32.xlu1 %v1283_v43  ;;  %4058 = vmatprep.subr.bf16.mxu0 %v1324_v29  ;;  %v1326_v5 = vpop.permute.xlu1 %1325  ;;  %v1277_v3 = vsel %vm498_vm3, %v4416_v13, 0.0 }
 0x7bb   :  { %4059 = vmatpush3.bf16.msra.mxu0 %v1324_v29  ;;  %4427 = vpow2.f32 %v1271_v59 }
 0x7bc   :  { %4060 = vmatprep.subr.bf16.mxu0 %v1326_v5  ;;  %v4418_v50 = vpop.eup %4417 }
 0x7bd   :  { %v1286_v63 = vsel %vm498_vm3, %v4418_v50, 0.0  ;;  %v4420_v15 = vpop.eup %4419 }
 0x7be   :  { %1278 = vadd.xlane.f32.xlu1 %v1277_v3  ;;  %1287 = vadd.xlane.f32.xlu0 %v1286_v63  ;;  %v1280_v53 = vsel %vm498_vm3, %v4420_v15, 0.0 }
 0x7bf   :  { %4061 = vmatpush3.bf16.msra.mxu0 %v1326_v5 }
 0x7c0   :  { %v5044_v54 = vpop.eup %4421 }
 0x7c1   :  { %v1295_v34 = vsel %vm498_vm3, %v5044_v54, 0.0  ;;  %v4424_v49 = vpop.eup %4423 }
 0x7c2   :  { %1296 = vadd.xlane.f32.xlu1 %v1295_v34  ;;  %1281 = vadd.xlane.f32.xlu0 %v1280_v53  ;;  %v1289_v4 = vsel %vm498_vm3, %v4424_v49, 0.0 }
 0x7c4   :  { %v4426_v9 = vpop.eup %4425 }
 0x7c5   :  { %v1298_v6 = vsel %vm498_vm3, %v4426_v9, 0.0  ;;  %v4428_v16 = vpop.eup %4427 }
 0x7c6   :  { %1290 = vadd.xlane.f32.xlu1 %v1289_v4  ;;  %1299 = vadd.xlane.f32.xlu0 %v1298_v6  ;;  %v1292_v20 = vsel %vm498_vm3, %v4428_v16, 0.0 }
 0x7ca   :  { %1293 = vadd.xlane.f32.xlu0 %v1292_v20 }
 0x7d7   :  { %1327 = vrot.lane.b32.xlu1 %v4819_v61, %s4658_s8 }
 0x7db   :  { %1504 = vrot.lane.b32.xlu1 %v4809_v52, %s4659_s9 }
 0x7df   :  { %1508 = vrot.lane.b32.xlu1 %v4821_v62, %s4659_s9 }
 0x7e0   :  { %277 = vperm.xlu0 %4360, %v257_v23  }
 0x7e4   :  { %1506 = vrot.lane.b32.xlu0 %v4807_v51, %s4659_s9 }
 0x7e8   :  { %1510 = vrot.lane.b32.xlu0 %v4819_v61, %s4659_s9 }
 0x847   :  { %v1285_v46 = vpop.xlane.xlu1 %1284 }
 0x84b   :  { %v1279_v7 = vpop.xlane.xlu1 %1278  ;;  %v1288_v26 = vpop.xlane.xlu0 %1287 }
 0x84c   :  { %4429 = vrcp.f32 %v1288_v26 }
 0x84d   :  { %4431 = vrcp.f32 %v1279_v7 }
 0x84e   :  { %4433 = vrcp.f32 %v1285_v46 }
 0x84f   :  { %v1297_v31 = vpop.xlane.xlu1 %1296  ;;  %v1282_v8 = vpop.xlane.xlu0 %1281 }
 0x850   :  { %4435 = vrcp.f32 %v1282_v8  ;;  %v382_v8 = vadd.f32 %v4791_v38, %v4779_v30 }
 0x853   :  { %v1291_v14 = vpop.xlane.xlu1 %1290  ;;  %v1300_v59 = vpop.xlane.xlu0 %1299 }
 0x854   :  { %4437 = vrcp.f32 %v1300_v59 }
 0x855   :  { %4439 = vrcp.f32 %v1291_v14 }
 0x856   :  { %v4430_v43 = vpop.eup %4429  ;;  %4441 = vrcp.f32 %v1297_v31 }
 0x857   :  { %v1328_v29 = vpop.permute.xlu1 %1327  ;;  %v1294_v5 = vpop.xlane.xlu0 %1293  ;;  %v1312_v53 = vmul.f32 %v4430_v43, %v4418_v50  ;;  %v2043_v43 = vpack.c.bf16 %v382_v8, %v382_v8 }
 0x858   :  { %4062 = vmatprep.subr.bf16.mxu0 %v1328_v29  ;;  %v4432_v3 = vpop.eup %4431  ;;  %4443 = vrcp.f32 %v1294_v5 }
 0x859   :  { %4063 = vmatpush3.bf16.msra.mxu0 %v1328_v29  ;;  %v4434_v63 = vpop.eup %4433  ;;  %v1309_v4 = vmul.f32 %v4432_v3, %v4416_v13 }
 0x85a   :  { %v4436_v34 = vpop.eup %4435  ;;  %v1311_v20 = vmul.f32 %v4434_v63, %v5038_v11 }
 0x85b   :  { %v1310_v6 = vmul.f32 %v4436_v34, %v4420_v15  ;;  %v1505_v38 = vpop.permute.xlu1 %1504 }
 0x85c   :  { %v1318_v46 = vpack.c.bf16 %v1312_v53, %v1311_v20  ;;  %v881_v20 = vsel %vm498_vm3, %v5010_v45, -inf }
 0x85d   :  { %v1317_v23 = vpack.c.bf16 %v1310_v6, %v1309_v4 }
 0x85e   :  { %v4438_v7 = vpop.eup %4437 }
 0x85f   :  { %4064 = vmatprep.mubr.msk.bf16.mxu0 %vm498_vm3, %v1317_v23  ;;  %v5067_v26 = vpop.permute.xlu0 %277  ;;  %v4440_v31 = vpop.eup %4439  ;;  %v1316_v11 = vmul.f32 %v4438_v7, %v4426_v9  ;;  %v2057_v9 = vsel %vm429_vm1, %v2043_v43, 0 }
 0x860   :  { %v342_v14 = vadd.f32 %v4783_v33, %v5067_v26  ;;  %4065 = vmatmul.mubr.msk.bf16.vlgmr.msra.gmra.mrb[44].mxu0 %vm498_vm3, %v1318_v46  ;;  %v4442_v13 = vpop.eup %4441  ;;  %v1313_v59 = vmul.f32 %v4440_v31, %v4424_v49 }
 0x861   :  { %v1315_v3 = vmul.f32 %v4442_v13, %v5044_v54 }
 0x862   :  { %v4444_v50 = vpop.eup %4443  ;;  %v1503_v15 = vpack.c.bf16 %v342_v14, %v342_v14 }
 0x863   :  { %v1314_v29 = vmul.f32 %v4444_v50, %v4428_v16  ;;  %v1320_v33 = vpack.c.bf16 %v1316_v11, %v1315_v3  ;;  %v1507_v49 = vpop.permute.xlu0 %1506  ;;  %v1509_v16 = vpop.permute.xlu1 %1508 }
 0x864   :  { %4340 = vmatprep.subr.msk.bf16.mxu0 %vm429_vm1, %v1503_v15  ;;  %v1525_v5 = vsel %vm429_vm1, %v1503_v15, 0 }
 0x865   :  { %4083 = vmatpush3.bf16.msra.mxu0 %v1525_v5  ;;  %v1319_v30 = vpack.c.bf16 %v1314_v29, %v1313_v59 }
 0x866   :  { %4342 = vmatprep.subr.msk.bf16.mxu0 %vm429_vm1, %v2043_v43 }
 0x867   :  { %4068 = vmatprep.mubr.msk.bf16.mxu0 %vm498_vm3, %v1319_v30  ;;  %v1511_v54 = vpop.permute.xlu0 %1510 }
 0x868   :  { %4069 = vmatmul.mubr.msk.bf16.gmra.mrb[48].mxu0 %vm498_vm3, %v1320_v33 }
 0x869   :  { %4084 = vmatprep.mubr.msk.bf16.mxu0 %vm416_vm2, %v1505_v38 }
 0x870   :  { %4085 = vmatmul.mubr.msk.bf16.vlgmr.msra.gmra.mrb[52].mxu0 %vm416_vm2, %v1507_v49 }
 0x871   :  { %4119 = vmatpush3.bf16.msra.mxu0 %v2057_v9  ;;  %4088 = vmatprep.mubr.msk.bf16.mxu0 %vm416_vm2, %v1509_v16 }
 0x878   :  { %4089 = vmatmul.mubr.msk.bf16.gmra.mrb[56].mxu0 %vm416_vm2, %v1511_v54 }
 0x879   :  { %4120 = vmatprep.mubr.msk.bf16.mxu0 %vm416_vm2, %v4945_v1 }
 0x880   :  { %4121 = vmatmul.mubr.msk.bf16.vlgmr.msra.gmra.mrb[60].mxu0 %vm416_vm2, %v4943_v0 }
 0x881   :  { %4124 = vmatprep.mubr.msk.bf16.mxu0 %vm416_vm2, %v4953_v58 }
 0x888   :  { %4125 = vmatmul.mubr.msk.bf16.gmra.mrb[64].mxu0 %vm416_vm2, %v4951_v10 }
 0x933   :  { %v5093_v63 = vpop.f32.mrb[44].mxu0 }
 0x934   :  { %v5095_v34 = vpop.f32.mrb[45].mxu0 }
 0x935   :  { %v5097_v53 = vpop.f32.mrb[46].mxu0 }
 0x936   :  { %v5101_v6 = vpop.f32.mrb[47].mxu0  ;;  %v6129_v19 = vpack.c.bf16 %v5097_v53, %v5093_v63 }
 0x93b   :  { %v5105_v23 = vpop.f32.mrb[48].mxu0 }
 0x93c   :  { %v5107_v46 = vpop.f32.mrb[49].mxu0 }
 0x93d   :  { %v5109_v7 = vpop.f32.mrb[50].mxu0 }
 0x93e   :  { %v5113_v8 = vpop.f32.mrb[51].mxu0  ;;  %v6131_v63 = vpack.c.bf16 %v5109_v7, %v5105_v23 }
 0x943   :  { %v5117_v13 = vpop.f32.mrb[52].mxu0 }
 0x944   :  { %v5119_v50 = vpop.f32.mrb[53].mxu0 }
 0x945   :  { %v5121_v15 = vpop.f32.mrb[54].mxu0 }
 0x946   :  { %v5123_v11 = vpop.f32.mrb[55].mxu0 }
 0x94b   :  { %v5125_v59 = vpop.f32.mrb[56].mxu0 }
 0x94c   :  { %v5127_v29 = vpop.f32.mrb[57].mxu0 }
 0x94d   :  { %v5129_v43 = vpop.f32.mrb[58].mxu0 }
 0x94e   :  { %v5131_v5 = vpop.f32.mrb[59].mxu0 }
 0x953   :  { %v4122_v3 = vpop.f32.mrb[60].mxu0 }
 0x954   :  { %v2093_v30 = vpop.f32.mrb[61].mxu0  ;;  %v2130_v31 = vsel %vm498_vm3, %v4122_v3, -inf }
 0x955   :  { %v4123_v33 = vpop.f32.mrb[62].mxu0  ;;  %v2124_v38 = vsel %vm498_vm3, %v2093_v30, -inf }
 0x956   :  { %2125 = vmax.xlane.f32.xlu1 %v2124_v38  ;;  %v2096_v49 = vpop.f32.mrb[63].mxu0  ;;  %v2133_v16 = vsel %vm498_vm3, %v4123_v33, -inf }
 0x957   :  { %v2127_v9 = vsel %vm498_vm3, %v2096_v49, -inf }
 0x958   :  { %2128 = vmax.xlane.f32.xlu0 %v2127_v9 }
 0x95a   :  { %2134 = vmax.xlane.f32.xlu1 %v2133_v16 }
 0x95b   :  { %v4126_v54 = vpop.f32.mrb[64].mxu0 }
 0x95c   :  { %2131 = vmax.xlane.f32.xlu0 %v2130_v31  ;;  %v2109_v14 = vpop.f32.mrb[65].mxu0  ;;  %v2142_v9 = vsel %vm498_vm3, %v4126_v54, -inf  ;;  %v878_v31 = vsel %vm498_vm3, %v5006_v42, -inf }
 0x95d   :  { %v4127_v4 = vpop.f32.mrb[66].mxu0  ;;  %v2136_v38 = vsel %vm498_vm3, %v2109_v14, -inf }
 0x95e   :  { %882 = vmax.xlane.f32.xlu1 %v881_v20  ;;  %v2112_v28 = vpop.f32.mrb[67].mxu0  ;;  %v2145_v60 = vsel %vm498_vm3, %v4127_v4, -inf  ;;  %v887_v20 = vsel %vm498_vm3, %v5008_v39, -inf }
 0x95f   :  { %v2139_v16 = vsel %vm498_vm3, %v2112_v28, -inf }
 0x960   :  { %2137 = vmax.xlane.f32.xlu0 %v2136_v38  ;;  %v884_v38 = vsel %vm498_vm3, %v5004_v36, -inf }
 0x962   :  { %2146 = vmax.xlane.f32.xlu1 %v2145_v60 }
 0x964   :  { %2143 = vmax.xlane.f32.xlu0 %v2142_v9 }
 0x966   :  { %2140 = vmax.xlane.f32.xlu1 %v2139_v16 }
 0x968   :  { %879 = vmax.xlane.f32.xlu0 %v878_v31 }
 0x96a   :  { %888 = vmax.xlane.f32.xlu1 %v887_v20 }
 0x96c   :  { %885 = vmax.xlane.f32.xlu0 %v884_v38 }
 0x97b   :  { %2222 = vrot.lane.b32.xlu1 %v4943_v0, %s4654_s3 }
 0x982   :  { %2220 = vrot.lane.b32.xlu0 %v4945_v1, %s4654_s3 }
 0x9e3   :  { %v2126_v60 = vpop.xlane.xlu1 %2125 }
 0x9e4   :  { %v2148_v2 = vsub.f32 %v2093_v30, %v2126_v60 }
 0x9e5   :  { %v2129_v9 = vpop.xlane.xlu0 %2128 }
 0x9e6   :  { %v2149_v16 = vsub.f32 %v2096_v49, %v2129_v9  ;;  %v2156_v55 = vmul.f32 1.442695, %v2148_v2 }
 0x9e7   :  { %v2135_v27 = vpop.xlane.xlu1 %2134 }
 0x9e8   :  { %v2151_v31 = vsub.f32 %v4123_v33, %v2135_v27  ;;  %v2158_v25 = vmul.f32 1.442695, %v2149_v16 }
 0x9e9   :  { %v2132_v12 = vpop.xlane.xlu0 %2131 }
 0x9ea   :  { %v2162_v24 = vmul.f32 1.442695, %v2151_v31  ;;  %v2150_v20 = vsub.f32 %v4122_v3, %v2132_v12 }
 0x9eb   :  { %v5153_v35 = vpop.xlane.xlu1 %882 }
 0x9ec   :  { %4445 = vpow2.f32 %v2162_v24  ;;  %v2160_v38 = vmul.f32 1.442695, %v2150_v20 }
 0x9ed   :  { %4447 = vpow2.f32 %v2158_v25  ;;  %v2138_v57 = vpop.xlane.xlu0 %2137 }
 0x9ee   :  { %4449 = vpow2.f32 %v2160_v38  ;;  %v2152_v22 = vsub.f32 %v2109_v14, %v2138_v57 }
 0x9ef   :  { %v2147_v21 = vpop.xlane.xlu1 %2146  ;;  %4451 = vpow2.f32 %v2156_v55 }
 0x9f0   :  { %v2155_v18 = vsub.f32 %v4127_v4, %v2147_v21  ;;  %v2164_v27 = vmul.f32 1.442695, %v2152_v22 }
 0x9f1   :  { %v2144_v49 = vpop.xlane.xlu0 %2143 }
 0x9f2   :  { %v2170_v9 = vmul.f32 1.442695, %v2155_v18  ;;  %v2154_v30 = vsub.f32 %v4126_v54, %v2144_v49 }
 0x9f3   :  { %v2141_v33 = vpop.xlane.xlu1 %2140 }
 0x9f4   :  { %4453 = vpow2.f32 %v2170_v9  ;;  %v2168_v60 = vmul.f32 1.442695, %v2154_v30  ;;  %v2153_v12 = vsub.f32 %v2112_v28, %v2141_v33 }
 0x9f5   :  { %v880_v3 = vpop.xlane.xlu0 %879 }
 0x9f6   :  { %v5155_v16 = vpop.eup %4445  ;;  %4455 = vpow2.f32 %v2168_v60  ;;  %v2166_v24 = vmul.f32 1.442695, %v2153_v12  ;;  %v894_v60 = vsub.f32 %v5006_v42, %v880_v3  ;;  %v895_v12 = vsub.f32 %v5010_v45, %v5153_v35 }
 0x9f7   :  { %v5157_v25 = vpop.eup %4447  ;;  %4457 = vpow2.f32 %v2164_v27  ;;  %v2181_v55 = vsel %vm498_vm3, %v5155_v16, 0.0  ;;  %v889_v18 = vpop.xlane.xlu1 %888 }
 0x9f8   :  { %v5161_v21 = vpop.eup %4449  ;;  %4459 = vpow2.f32 %v2166_v24  ;;  %2182 = vadd.xlane.f32.xlu1 %v2181_v55  ;;  %v2175_v2 = vsel %vm498_vm3, %v5157_v25, 0.0  ;;  %v906_v24 = vmul.f32 1.442695, %v894_v60  ;;  %v897_v55 = vsub.f32 %v5008_v39, %v889_v18 }
 0x9f9   :  { %v886_v22 = vpop.xlane.xlu0 %885  ;;  %v2178_v28 = vsel %vm498_vm3, %v5161_v21, 0.0  ;;  %v5165_v57 = vpop.eup %4451  ;;  %v1595_v18 = vsel %vm498_vm3, %v5123_v11, -inf  ;;  %v1604_v60 = vsel %vm498_vm3, %v5127_v29, -inf }
 0x9fa   :  { %2179 = vadd.xlane.f32.xlu0 %v2178_v28  ;;  %v2172_v14 = vsel %vm498_vm3, %v5165_v57, 0.0  ;;  %v908_v28 = vmul.f32 1.442695, %v895_v12  ;;  %4461 = vpow2.f32 %v906_v24  ;;  %v1613_v12 = vsel %vm498_vm3, %v5129_v43, -inf }
 0x9fb   :  { %v2223_v31 = vpop.permute.xlu1 %2222  ;;  %v1610_v24 = vsel %vm498_vm3, %v5125_v59, -inf }
 0x9fc   :  { %2176 = vadd.xlane.f32.xlu1 %v2175_v2  ;;  %v896_v2 = vsub.f32 %v5004_v36, %v886_v22  ;;  %4463 = vpow2.f32 %v908_v28  ;;  %v1592_v22 = vsel %vm498_vm3, %v5119_v50, -inf }
 0x9fd   :  { %v2221_v4 = vpop.permute.xlu0 %2220 }
 0x9fe   :  { %v5171_v54 = vpop.eup %4453  ;;  %2173 = vadd.xlane.f32.xlu0 %v2172_v14  ;;  %4128 = vmatprep.subr.bf16.mxu0 %v2221_v4  ;;  %v910_v14 = vmul.f32 1.442695, %v896_v2 }
 0x9ff   :  { %4129 = vmatpush3.bf16.msra.mxu0 %v2221_v4  ;;  %v2193_v20 = vsel %vm498_vm3, %v5171_v54, 0.0  ;;  %v912_v4 = vmul.f32 1.442695, %v897_v55  ;;  %v5247_v55 = vld [vmem:[%s6088_s2 + $0x14] sm:$0xf] }
 0xa00   :  { %v5175_v38 = vpop.eup %4455  ;;  %2194 = vadd.xlane.f32.xlu1 %v2193_v20  ;;  %4130 = vmatprep.subr.bf16.mxu0 %v2223_v31 }
 0xa01   :  { %v5177_v49 = vpop.eup %4457  ;;  %v2190_v9 = vsel %vm498_vm3, %v5175_v38, 0.0  ;;  %4465 = vpow2.f32 %v912_v4  ;;  %4337 = vmatprep.subr.msk.bf16.mxu1 %vm429_vm1, %v5247_v55 }
 0xa02   :  { %v5181_v30 = vpop.eup %4459  ;;  %2191 = vadd.xlane.f32.xlu0 %v2190_v9  ;;  %v2184_v33 = vsel %vm498_vm3, %v5177_v49, 0.0  ;;  %4467 = vpow2.f32 %v910_v14  ;;  %v1601_v9 = vsel %vm498_vm3, %v5121_v15, -inf }
 0xa03   :  { %4131 = vmatpush3.bf16.msra.mxu0 %v2223_v31  ;;  %v2187_v27 = vsel %vm498_vm3, %v5181_v30, 0.0 }
 0xa04   :  { %2188 = vadd.xlane.f32.xlu1 %v2187_v27  ;;  %v5212_v31 = vpop.eup %4461  ;;  %v1598_v27 = vsel %vm498_vm3, %v5117_v13, -inf }
 0xa05   :  { %v926_v42 = vsel %vm498_vm3, %v5212_v31, 0.0 }
 0xa06   :  { %2185 = vadd.xlane.f32.xlu0 %v2184_v33  ;;  %v5214_v20 = vpop.eup %4463  ;;  %v1607_v33 = vsel %vm498_vm3, %v5131_v5, -inf }
 0xa07   :  { %v929_v39 = vsel %vm498_vm3, %v5214_v20, 0.0 }
 0xa0b   :  { %v5218_v35 = vpop.eup %4465 }
 0xa0c   :  { %v5222_v36 = vpop.eup %4467  ;;  %v935_v45 = vsel %vm498_vm3, %v5218_v35, 0.0 }
 0xa0d   :  { %v932_v3 = vsel %vm498_vm3, %v5222_v36, 0.0 }
 0xa15   :  { %2224 = vrot.lane.b32.xlu1 %v4953_v58, %s4654_s3 }
 0xa19   :  { %2403 = vrot.lane.b32.xlu1 %v4945_v1, %s4655_s25 }
 0xa1c   :  { %2226 = vrot.lane.b32.xlu0 %v4951_v10, %s4654_s3 }
 0xa1d   :  { %2407 = vrot.lane.b32.xlu1 %v4953_v58, %s4655_s25 }
 0xa20   :  { %2405 = vrot.lane.b32.xlu0 %v4943_v0, %s4655_s25 }
 0xa21   :  { %2766 = vrot.lane.b32.xlu1 %v4945_v1, %s4656_s30 }
 0xa24   :  { %2409 = vrot.lane.b32.xlu0 %v4951_v10, %s4655_s25 }
 0xa25   :  { %2770 = vrot.lane.b32.xlu1 %v4953_v58, %s4656_s30 }
 0xa28   :  { %2768 = vrot.lane.b32.xlu0 %v4943_v0, %s4656_s30 }
 0xa2c   :  { %2772 = vrot.lane.b32.xlu0 %v4951_v10, %s4656_s30 }
 0xa49   :  { %927 = vadd.xlane.f32.xlu1 %v926_v42 }
 0xa4b   :  { %930 = vadd.xlane.f32.xlu0 %v929_v39 }
 0xa4d   :  { %936 = vadd.xlane.f32.xlu1 %v935_v45 }
 0xa4f   :  { %933 = vadd.xlane.f32.xlu0 %v932_v3 }
 0xa51   :  { %1596 = vmax.xlane.f32.xlu1 %v1595_v18 }
 0xa53   :  { %1593 = vmax.xlane.f32.xlu0 %v1592_v22 }
 0xa55   :  { %1602 = vmax.xlane.f32.xlu1 %v1601_v9 }
 0xa57   :  { %1599 = vmax.xlane.f32.xlu0 %v1598_v27 }
 0xa59   :  { %1608 = vmax.xlane.f32.xlu1 %v1607_v33  ;;  %v385_v33 = vadd.f32 %v4796_v41, %v4887_v44 }
 0xa5b   :  { %1605 = vmax.xlane.f32.xlu0 %v1604_v60 }
 0xa5d   :  { %1614 = vmax.xlane.f32.xlu1 %v1613_v12 }
 0xa5f   :  { %1611 = vmax.xlane.f32.xlu0 %v1610_v24 }
 0xa85   :  { %v2183_v28 = vpop.xlane.xlu1 %2182 }
 0xa87   :  { %v2180_v2 = vpop.xlane.xlu0 %2179 }
 0xa89   :  { %v2177_v4 = vpop.xlane.xlu1 %2176 }
 0xa8a   :  { %4469 = vrcp.f32 %v2177_v4 }
 0xa8b   :  { %4471 = vrcp.f32 %v2180_v2  ;;  %v2174_v14 = vpop.xlane.xlu0 %2173 }
 0xa8c   :  { %4473 = vrcp.f32 %v2174_v14  ;;  %v2402_v14 = vpack.c.bf16 %v385_v33, %v385_v33 }
 0xa8d   :  { %4475 = vrcp.f32 %v2183_v28  ;;  %v2195_v42 = vpop.xlane.xlu1 %2194 }
 0xa8f   :  { %v2192_v39 = vpop.xlane.xlu0 %2191 }
 0xa91   :  { %v2189_v45 = vpop.xlane.xlu1 %2188 }
 0xa92   :  { %4477 = vrcp.f32 %v2189_v45 }
 0xa93   :  { %4479 = vrcp.f32 %v2192_v39  ;;  %v2186_v3 = vpop.xlane.xlu0 %2185 }
 0xa94   :  { %v4470_v18 = vpop.eup %4469  ;;  %4481 = vrcp.f32 %v2186_v3 }
 0xa95   :  { %v4472_v22 = vpop.eup %4471  ;;  %4483 = vrcp.f32 %v2195_v42  ;;  %v2225_v9 = vpop.permute.xlu1 %2224  ;;  %v2205_v28 = vmul.f32 %v4470_v18, %v5157_v25  ;;  %v390_v42 = vadd.f32 %v4789_v37, %v4992_v17 }
 0xa96   :  { %v4474_v27 = vpop.eup %4473  ;;  %4132 = vmatprep.subr.bf16.mxu0 %v2225_v9  ;;  %v2206_v2 = vmul.f32 %v4472_v22, %v5161_v21  ;;  %v2424_v21 = vsel %vm429_vm1, %v2402_v14, 0 }
 0xa97   :  { %v4476_v60 = vpop.eup %4475  ;;  %v2227_v12 = vpop.permute.xlu0 %2226  ;;  %4133 = vmatpush3.bf16.msra.mxu0 %v2225_v9  ;;  %v2204_v24 = vmul.f32 %v4474_v27, %v5165_v57  ;;  %v2765_v25 = vpack.c.bf16 %v390_v42, %v390_v42 }
 0xa98   :  { %4134 = vmatprep.subr.bf16.mxu0 %v2227_v12  ;;  %v2207_v39 = vmul.f32 %v4476_v60, %v5155_v16 }
 0xa99   :  { %v2212_v4 = vpack.c.bf16 %v2205_v28, %v2204_v24  ;;  %v2404_v27 = vpop.permute.xlu1 %2403 }
 0xa9a   :  { %v2213_v44 = vpack.c.bf16 %v2207_v39, %v2206_v2 }
 0xa9b   :  { %4135 = vmatpush3.bf16.msra.mxu0 %v2227_v12  ;;  %4136 = vmatprep.mubr.msk.bf16.mxu0 %vm498_vm3, %v2212_v4  ;;  %v2406_v33 = vpop.permute.xlu0 %2405 }
 0xa9c   :  { %v4478_v41 = vpop.eup %4477  ;;  %4344 = vmatprep.subr.msk.bf16.mxu0 %vm429_vm1, %v2402_v14 }
 0xa9d   :  { %v4480_v57 = vpop.eup %4479  ;;  %v2209_v17 = vmul.f32 %v4478_v41, %v5181_v30  ;;  %v2408_v60 = vpop.permute.xlu1 %2407 }
 0xa9e   :  { %v4482_v45 = vpop.eup %4481  ;;  %4137 = vmatmul.mubr.msk.bf16.vlgmr.msra.gmra.mrb[68].mxu0 %vm498_vm3, %v2213_v44  ;;  %v2210_v16 = vmul.f32 %v4480_v57, %v5175_v38 }
 0xa9f   :  { %v4484_v3 = vpop.eup %4483  ;;  %4155 = vmatpush3.bf16.msra.mxu0 %v2424_v21  ;;  %v2208_v37 = vmul.f32 %v4482_v45, %v5177_v49  ;;  %v2787_v49 = vsel %vm429_vm1, %v2765_v25, 0  ;;  %v2410_v38 = vpop.permute.xlu0 %2409 }
 0xaa0   :  { %4346 = vmatprep.subr.msk.bf16.mxu0 %vm429_vm1, %v2765_v25  ;;  %v2211_v22 = vmul.f32 %v4484_v3, %v5171_v54 }
 0xaa1   :  { %v2214_v18 = vpack.c.bf16 %v2209_v17, %v2208_v37  ;;  %v2767_v30 = vpop.permute.xlu1 %2766 }
 0xaa2   :  { %v2215_v9 = vpack.c.bf16 %v2211_v22, %v2210_v16 }
 0xaa3   :  { %4140 = vmatprep.mubr.msk.bf16.mxu0 %vm498_vm3, %v2214_v18  ;;  %v2769_v54 = vpop.permute.xlu0 %2768 }
 0xaa5   :  { %v2771_v12 = vpop.permute.xlu1 %2770 }
 0xaa6   :  { %4141 = vmatmul.mubr.msk.bf16.gmra.mrb[72].mxu0 %vm498_vm3, %v2215_v9 }
 0xaa7   :  { %4156 = vmatprep.mubr.msk.bf16.mxu0 %vm416_vm2, %v2404_v27  ;;  %v2773_v24 = vpop.permute.xlu0 %2772 }
 0xaae   :  { %4157 = vmatmul.mubr.msk.bf16.vlgmr.msra.gmra.mrb[76].mxu0 %vm416_vm2, %v2406_v33 }
 0xaaf   :  { %4191 = vmatpush3.bf16.msra.mxu0 %v2787_v49  ;;  %4160 = vmatprep.mubr.msk.bf16.mxu0 %vm416_vm2, %v2408_v60 }
 0xab6   :  { %4161 = vmatmul.mubr.msk.bf16.gmra.mrb[80].mxu0 %vm416_vm2, %v2410_v38 }
 0xab7   :  { %4192 = vmatprep.mubr.msk.bf16.mxu0 %vm416_vm2, %v2767_v30 }
 0xabe   :  { %4193 = vmatmul.mubr.msk.bf16.vlgmr.msra.gmra.mrb[84].mxu0 %vm416_vm2, %v2769_v54 }
 0xabf   :  { %4196 = vmatprep.mubr.msk.bf16.mxu0 %vm416_vm2, %v2771_v12  ;;  %v1065_v12 = vsel %vm429_vm1, %v5247_v55, 0 }
 0xac6   :  { %4197 = vmatmul.mubr.msk.bf16.gmra.mrb[88].mxu0 %vm416_vm2, %v2773_v24 }
 0xad6   :  { %v928_v28 = vpop.xlane.xlu1 %927 }
 0xad7   :  { %4485 = vrcp.f32 %v928_v28 }
 0xad8   :  { %v931_v2 = vpop.xlane.xlu0 %930 }
 0xad9   :  { %4487 = vrcp.f32 %v931_v2 }
 0xada   :  { %v937_v4 = vpop.xlane.xlu1 %936 }
 0xadb   :  { %4489 = vrcp.f32 %v937_v4 }
 0xadc   :  { %v934_v14 = vpop.xlane.xlu0 %933 }
 0xadd   :  { %4491 = vrcp.f32 %v934_v14 }
 0xade   :  { %v1597_v42 = vpop.xlane.xlu1 %1596 }
 0xadf   :  { %v1617_v39 = vsub.f32 %v5123_v11, %v1597_v42 }
 0xae0   :  { %v1594_v41 = vpop.xlane.xlu0 %1593 }
 0xae1   :  { %v4486_v44 = vpop.eup %4485  ;;  %v1626_v57 = vmul.f32 1.442695, %v1617_v39  ;;  %v1616_v45 = vsub.f32 %v5119_v50, %v1594_v41 }
 0xae2   :  { %v1603_v25 = vpop.xlane.xlu1 %1602  ;;  %v950_v16 = vmul.f32 %v4486_v44, %v5212_v31 }
 0xae3   :  { %v4488_v21 = vpop.eup %4487  ;;  %4493 = vpow2.f32 %v1626_v57  ;;  %v1624_v3 = vmul.f32 1.442695, %v1616_v45  ;;  %v1619_v37 = vsub.f32 %v5121_v15, %v1603_v25 }
 0xae4   :  { %v1600_v17 = vpop.xlane.xlu0 %1599  ;;  %v951_v18 = vmul.f32 %v4488_v21, %v5214_v20 }
 0xae5   :  { %v4490_v22 = vpop.eup %4489  ;;  %4495 = vpow2.f32 %v1624_v3  ;;  %v1630_v9 = vmul.f32 1.442695, %v1619_v37  ;;  %v1618_v11 = vsub.f32 %v5117_v13, %v1600_v17  ;;  %v1414_v3 = vld [vmem:[%s6088_s2 + $0x18] sm:$0xf] }
 0xae6   :  { %v1609_v27 = vpop.xlane.xlu1 %1608  ;;  %v956_v33 = vpack.c.bf16 %v951_v18, %v950_v16  ;;  %v953_v38 = vmul.f32 %v4490_v22, %v5218_v35  ;;  %v1428_v37 = vsel %vm429_vm1, %v1414_v3, 0 }
 0xae7   :  { %v4492_v60 = vpop.eup %4491  ;;  %4497 = vpow2.f32 %v1630_v9  ;;  %v1628_v50 = vmul.f32 1.442695, %v1618_v11  ;;  %v1621_v49 = vsub.f32 %v5131_v5, %v1609_v27 }
 0xae8   :  { %v952_v15 = vmul.f32 %v4492_v60, %v5222_v36  ;;  %v1606_v30 = vpop.xlane.xlu0 %1605  ;;  %4032 = vmatprep.mubr.msk.bf16.mxu1 %vm498_vm3, %v956_v33 }
 0xae9   :  { %4499 = vpow2.f32 %v1628_v50  ;;  %v1634_v31 = vmul.f32 1.442695, %v1621_v49  ;;  %v1620_v20 = vsub.f32 %v5127_v29, %v1606_v30  ;;  %v6126_v29 = vpack.c.bf16 %v5020_v48, %v5014_v56 }
 0xaea   :  { %v957_v54 = vpack.c.bf16 %v953_v38, %v952_v15  ;;  %v1615_v13 = vpop.xlane.xlu1 %1614 }
 0xaeb   :  { %4501 = vpow2.f32 %v1634_v31  ;;  %v1632_v24 = vmul.f32 1.442695, %v1620_v20  ;;  %v1623_v5 = vsub.f32 %v5129_v43, %v1615_v13 }
 0xaec   :  { %v1612_v28 = vpop.xlane.xlu0 %1611  ;;  %4033 = vmatmul.mubr.msk.bf16.vlgmr.msra.gmra.mrb[24].mxu1 %vm498_vm3, %v957_v54 }
 0xaed   :  { %v5294_v35 = vpop.eup %4493  ;;  %4503 = vpow2.f32 %v1632_v24  ;;  %v1638_v36 = vmul.f32 1.442695, %v1623_v5  ;;  %v1622_v2 = vsub.f32 %v5125_v59, %v1612_v28  ;;  %4038 = vmatprep.mubr.msk.bf16.mxu1 %vm416_vm2, %v6126_v29  ;;  %4037 = vmatpush3.bf16.msra.mxu1 %v1065_v12  ;;  %v6127_v59 = vpack.c.bf16 %v5016_v32, %v5012_v47 }
 0xaee   :  { %v1643_v55 = vsel %vm498_vm3, %v5294_v35, 0.0  ;;  %4339 = vmatprep.subr.msk.bf16.mxu1 %vm429_vm1, %v1414_v3 }
 0xaef   :  { %v5303_v4 = vpop.eup %4495  ;;  %4505 = vpow2.f32 %v1638_v36  ;;  %v1636_v43 = vmul.f32 1.442695, %v1622_v2  ;;  %1644 = vadd.xlane.f32.xlu1 %v1643_v55 }
 0xaf0   :  { %v1640_v14 = vsel %vm498_vm3, %v5303_v4, 0.0 }
 0xaf1   :  { %v5307_v42 = vpop.eup %4497  ;;  %4507 = vpow2.f32 %v1636_v43  ;;  %1641 = vadd.xlane.f32.xlu0 %v1640_v14 }
 0xaf2   :  { %v1649_v56 = vsel %vm498_vm3, %v5307_v42, 0.0 }
 0xaf3   :  { %v5311_v48 = vpop.eup %4499  ;;  %1650 = vadd.xlane.f32.xlu1 %v1649_v56 }
 0xaf4   :  { %4039 = vmatmul.mubr.msk.bf16.vlgmr.msra.gmra.mrb[16].mxu1 %vm416_vm2, %v6127_v59  ;;  %v1646_v39 = vsel %vm498_vm3, %v5311_v48, 0.0 }
 0xaf5   :  { %v5319_v41 = vpop.eup %4501  ;;  %1647 = vadd.xlane.f32.xlu0 %v1646_v39  ;;  %4073 = vmatpush3.bf16.msra.mxu1 %v1428_v37 }
 0xaf6   :  { %v1655_v44 = vsel %vm498_vm3, %v5319_v41, 0.0 }
 0xaf7   :  { %v5323_v57 = vpop.eup %4503  ;;  %1656 = vadd.xlane.f32.xlu1 %v1655_v44 }
 0xaf8   :  { %v1652_v45 = vsel %vm498_vm3, %v5323_v57, 0.0 }
 0xaf9   :  { %v5327_v25 = vpop.eup %4505  ;;  %1653 = vadd.xlane.f32.xlu0 %v1652_v45 }
 0xafa   :  { %v1661_v47 = vsel %vm498_vm3, %v5327_v25, 0.0 }
 0xafb   :  { %v5331_v32 = vpop.eup %4507  ;;  %1662 = vadd.xlane.f32.xlu1 %v1661_v47 }
 0xafc   :  { %v1658_v21 = vsel %vm498_vm3, %v5331_v32, 0.0 }
 0xafd   :  { %1659 = vadd.xlane.f32.xlu0 %v1658_v21 }
 0xb0c   :  { %1686 = vrot.lane.b32.xlu1 %v4807_v51, %s4660_s13 }
 0xb13   :  { %1684 = vrot.lane.b32.xlu0 %v4809_v52, %s4660_s13 }
 0xb71   :  { %v5344_v17 = vpop.f32.mrb[68].mxu0 }
 0xb72   :  { %v5346_v16 = vpop.f32.mrb[69].mxu0 }
 0xb73   :  { %v5348_v18 = vpop.f32.mrb[70].mxu0 }
 0xb74   :  { %v5352_v22 = vpop.f32.mrb[71].mxu0 }
 0xb79   :  { %v5356_v11 = vpop.f32.mrb[72].mxu0 }
 0xb7a   :  { %v5358_v27 = vpop.f32.mrb[73].mxu0 }
 0xb7b   :  { %v5360_v33 = vpop.f32.mrb[74].mxu0 }
 0xb7c   :  { %v5364_v60 = vpop.f32.mrb[75].mxu0 }
 0xb7e   :  { %v1642_v49 = vpop.xlane.xlu0 %1641 }
 0xb7f   :  { %4509 = vrcp.f32 %v1642_v49 }
 0xb81   :  { %v5368_v38 = vpop.f32.mrb[76].mxu0 }
 0xb82   :  { %v5370_v15 = vpop.xlane.xlu0 %1647  ;;  %v5372_v30 = vpop.f32.mrb[77].mxu0 }
 0xb83   :  { %v5374_v31 = vpop.f32.mrb[78].mxu0 }
 0xb84   :  { %v5376_v20 = vpop.f32.mrb[79].mxu0 }
 0xb86   :  { %v5378_v54 = vpop.xlane.xlu0 %1653 }
 0xb89   :  { %v5380_v13 = vpop.f32.mrb[80].mxu0  ;;  %v4510_v9 = vpop.eup %4509 }
 0xb8a   :  { %v5382_v12 = vpop.xlane.xlu0 %1659  ;;  %v5384_v24 = vpop.f32.mrb[81].mxu0 }
 0xb8b   :  { %v5386_v5 = vpop.f32.mrb[82].mxu0 }
 0xb8c   :  { %v5388_v28 = vpop.f32.mrb[83].mxu0 }
 0xb8e   :  { %v1685_v36 = vpop.permute.xlu0 %1684 }
 0xb8f   :  { %4092 = vmatprep.subr.bf16.mxu1 %v1685_v36 }
 0xb91   :  { %v4194_v2 = vpop.f32.mrb[84].mxu0 }
 0xb92   :  { %v5390_v29 = vpop.f32.mrb[85].mxu0  ;;  %v2860_v55 = vsel %vm498_vm3, %v4194_v2, -inf }
 0xb93   :  { %2861 = vmax.xlane.f32.xlu0 %v2860_v55  ;;  %v4195_v43 = vpop.f32.mrb[86].mxu0  ;;  %v2854_v59 = vsel %vm498_vm3, %v5390_v29, -inf }
 0xb94   :  { %v5393_v14 = vpop.f32.mrb[87].mxu0  ;;  %v2863_v56 = vsel %vm498_vm3, %v4195_v43, -inf }
 0xb95   :  { %2864 = vmax.xlane.f32.xlu1 %v2863_v56  ;;  %v2857_v39 = vsel %vm498_vm3, %v5393_v14, -inf }
 0xb97   :  { %2855 = vmax.xlane.f32.xlu0 %v2854_v59  ;;  %v1645_v59 = vpop.xlane.xlu1 %1644 }
 0xb98   :  { %4511 = vrcp.f32 %v1645_v59 }
 0xb99   :  { %v5400_v44 = vpop.f32.mrb[88].mxu0  ;;  %2858 = vmax.xlane.f32.xlu1 %v2857_v39 }
 0xb9a   :  { %v5402_v45 = vpop.f32.mrb[89].mxu0  ;;  %v2872_v47 = vsel %vm498_vm3, %v5400_v44, -inf }
 0xb9b   :  { %2873 = vmax.xlane.f32.xlu0 %v2872_v47  ;;  %v5406_v21 = vpop.f32.mrb[90].mxu0  ;;  %v2866_v55 = vsel %vm498_vm3, %v5402_v45, -inf  ;;  %v1651_v39 = vpop.xlane.xlu1 %1650 }
 0xb9c   :  { %v5408_v3 = vpop.f32.mrb[91].mxu0  ;;  %v2875_v37 = vsel %vm498_vm3, %v5406_v21, -inf  ;;  %4513 = vrcp.f32 %v1651_v39 }
 0xb9d   :  { %2876 = vmax.xlane.f32.xlu1 %v2875_v37  ;;  %v2869_v56 = vsel %vm498_vm3, %v5408_v3, -inf }
 0xb9f   :  { %2867 = vmax.xlane.f32.xlu0 %v2866_v55 }
 0xba1   :  { %2870 = vmax.xlane.f32.xlu1 %v2869_v56  ;;  %v1657_v56 = vpop.xlane.xlu1 %1656 }
 0xbb2   :  { %1688 = vrot.lane.b32.xlu1 %v4821_v62, %s4660_s13  ;;  %v1663_v62 = vpop.xlane.xlu1 %1662 }
 0xbb5   :  { %1690 = vrot.lane.b32.xlu0 %v4819_v61, %s4660_s13  ;;  %v6128_v61 = vpack.c.bf16 %v5101_v6, %v5095_v34  ;;  %v1672_v34 = vmul.f32 %v4510_v9, %v5303_v4 }
 0xbb6   :  { %2948 = vrot.lane.b32.xlu1 %v4943_v0, %s4658_s8 }
 0xbb9   :  { %2946 = vrot.lane.b32.xlu0 %v4945_v1, %s4658_s8 }
 0xbbf   :  { %v4034_v47 = vpop.f32.mrb[24].mxu1 }
 0xbc0   :  { %v1032_v37 = vpop.f32.mrb[25].mxu1 }
 0xbc1   :  { %v4035_v55 = vpop.f32.mrb[26].mxu1 }
 0xbc2   :  { %v1050_v52 = vpack.c.bf16 %v4035_v55, %v4034_v47  ;;  %v1035_v50 = vpop.f32.mrb[27].mxu1  ;;  %v1687_v47 = vpop.permute.xlu1 %1686 }
 0xbc3   :  { %v1049_v51 = vpack.c.bf16 %v1035_v50, %v1032_v37 }
 0xbc5   :  { %4042 = vmatprep.mubr.msk.bf16.mxu1 %vm416_vm2, %v1049_v51  ;;  %v6130_v51 = vpack.c.bf16 %v5113_v8, %v5107_v46 }
 0xbc6   :  { %4043 = vmatmul.mubr.msk.bf16.gmra.mrb[20].mxu1 %vm416_vm2, %v1050_v52  ;;  %v4512_v52 = vpop.eup %4511 }
 0xbc7   :  { %4074 = vmatprep.mubr.msk.bf16.mxu1 %vm416_vm2, %v6128_v61  ;;  %v1673_v6 = vmul.f32 %v4512_v52, %v5294_v35  ;;  %v4514_v61 = vpop.eup %4513 }
 0xbc9   :  { %v1680_v50 = vpack.c.bf16 %v1673_v6, %v1672_v34 }
 0xbce   :  { %4075 = vmatmul.mubr.msk.bf16.vlgmr.msra.gmra.mrb[16].mxu1 %vm416_vm2, %v6129_v19 }
 0xbcf   :  { %4093 = vmatpush3.bf16.msra.mxu1 %v1685_v36  ;;  %4078 = vmatprep.mubr.msk.bf16.mxu1 %vm416_vm2, %v6130_v51 }
 0xbd0   :  { %4094 = vmatprep.subr.bf16.mxu1 %v1687_v47 }
 0xbd3   :  { %4095 = vmatpush3.bf16.msra.mxu1 %v1687_v47 }
 0xbd6   :  { %4079 = vmatmul.mubr.msk.bf16.gmra.mrb[20].mxu1 %vm416_vm2, %v6131_v63 }
 0xbd7   :  { %4100 = vmatprep.mubr.msk.bf16.mxu1 %vm498_vm3, %v1680_v50 }
 0xc20   :  { %v2862_v19 = vpop.xlane.xlu0 %2861 }
 0xc21   :  { %v2880_v53 = vsub.f32 %v4194_v2, %v2862_v19 }
 0xc22   :  { %v2865_v46 = vpop.xlane.xlu1 %2864 }
 0xc23   :  { %v2890_v8 = vmul.f32 1.442695, %v2880_v53  ;;  %v2881_v49 = vsub.f32 %v4195_v43, %v2865_v46 }
 0xc24   :  { %v2856_v36 = vpop.xlane.xlu0 %2855 }
 0xc25   :  { %4515 = vpow2.f32 %v2890_v8  ;;  %v2878_v4 = vsub.f32 %v5390_v29, %v2856_v36  ;;  %v2892_v35 = vmul.f32 1.442695, %v2881_v49 }
 0xc26   :  { %4517 = vrcp.f32 %v5370_v15  ;;  %v2859_v9 = vpop.xlane.xlu1 %2858 }
 0xc27   :  { %4519 = vrcp.f32 %v1657_v56  ;;  %v2886_v23 = vmul.f32 1.442695, %v2878_v4  ;;  %v2879_v7 = vsub.f32 %v5393_v14, %v2859_v9  ;;  %v1675_v4 = vmul.f32 %v4514_v61, %v5307_v42 }
 0xc28   :  { %4521 = vrcp.f32 %v5378_v54  ;;  %v2874_v59 = vpop.xlane.xlu0 %2873  ;;  %v2500_v61 = vsel %vm498_vm3, %v5374_v31, -inf }
 0xc29   :  { %4523 = vpow2.f32 %v2886_v23  ;;  %v2888_v2 = vmul.f32 1.442695, %v2879_v7  ;;  %v2884_v43 = vsub.f32 %v5400_v44, %v2874_v59 }
 0xc2a   :  { %4525 = vpow2.f32 %v2892_v35  ;;  %v2877_v39 = vpop.xlane.xlu1 %2876 }
 0xc2b   :  { %4527 = vpow2.f32 %v2888_v2  ;;  %v2898_v37 = vmul.f32 1.442695, %v2884_v43  ;;  %v2885_v29 = vsub.f32 %v5406_v21, %v2877_v39 }
 0xc2c   :  { %v2868_v15 = vpop.xlane.xlu0 %2867 }
 0xc2d   :  { %4529 = vpow2.f32 %v2898_v37  ;;  %v2900_v55 = vmul.f32 1.442695, %v2885_v29  ;;  %v2882_v56 = vsub.f32 %v5402_v45, %v2868_v15 }
 0xc2e   :  { %v2871_v14 = vpop.xlane.xlu1 %2870 }
 0xc2f   :  { %v5452_v47 = vpop.eup %4515  ;;  %4531 = vpow2.f32 %v2900_v55  ;;  %v2894_v54 = vmul.f32 1.442695, %v2882_v56  ;;  %v2883_v51 = vsub.f32 %v5408_v3, %v2871_v14  ;;  %v2497_v56 = vsel %vm498_vm3, %v5368_v38, -inf }
 0xc30   :  { %v4518_v44 = vpop.eup %4517  ;;  %4533 = vrcp.f32 %v5382_v12  ;;  %v1691_v52 = vpop.permute.xlu0 %1690  ;;  %v2908_v21 = vsel %vm498_vm3, %v5452_v47, 0.0  ;;  %v2503_v14 = vsel %vm498_vm3, %v5384_v24, -inf }
 0xc31   :  { %v4520_v34 = vpop.eup %4519  ;;  %4535 = vpow2.f32 %v2894_v54  ;;  %v2896_v6 = vmul.f32 1.442695, %v2883_v51  ;;  %2909 = vadd.xlane.f32.xlu0 %v2908_v21  ;;  %v1674_v46 = vmul.f32 %v4518_v44, %v5311_v48  ;;  %v2506_v54 = vsel %vm498_vm3, %v5388_v28, -inf }
 0xc32   :  { %v4522_v45 = vpop.eup %4521  ;;  %4537 = vrcp.f32 %v1663_v62  ;;  %v1689_v50 = vpop.permute.xlu1 %1688  ;;  %v1677_v35 = vmul.f32 %v4520_v34, %v5319_v41  ;;  %v2509_v51 = vsel %vm498_vm3, %v5380_v13, -inf  ;;  %v2512_v44 = vsel %vm498_vm3, %v5386_v5, -inf  ;;  %v5531_v34 = vld [vmem:[%s6088_s2 + $0x10] sm:$0xf] }
 0xc33   :  { %v5458_v63 = vpop.eup %4523  ;;  %4539 = vpow2.f32 %v2896_v6  ;;  %4096 = vmatprep.subr.bf16.mxu1 %v1689_v50  ;;  %v1676_v49 = vmul.f32 %v4522_v45, %v5323_v57  ;;  %v1681_v23 = vpack.c.bf16 %v1675_v4, %v1674_v46 }
 0xc34   :  { %v5460_v19 = vpop.eup %4525  ;;  %v2947_v3 = vpop.permute.xlu0 %2946  ;;  %4097 = vmatpush3.bf16.msra.mxu1 %v1689_v50  ;;  %v2902_v12 = vsel %vm498_vm3, %v5458_v63, 0.0 }
 0xc35   :  { %v5464_v53 = vpop.eup %4527  ;;  %4200 = vmatprep.subr.bf16.mxu0 %v2947_v3  ;;  %2903 = vadd.xlane.f32.xlu1 %v2902_v12  ;;  %v2911_v48 = vsel %vm498_vm3, %v5460_v19, 0.0  ;;  %v1682_v59 = vpack.c.bf16 %v1677_v35, %v1676_v49 }
 0xc36   :  { %4098 = vmatprep.subr.bf16.mxu1 %v1691_v52  ;;  %4201 = vmatpush3.bf16.msra.mxu0 %v2947_v3  ;;  %v2949_v62 = vpop.permute.xlu1 %2948  ;;  %v2905_v8 = vsel %vm498_vm3, %v5464_v53, 0.0 }
 0xc37   :  { %v5470_v36 = vpop.eup %4529  ;;  %2906 = vadd.xlane.f32.xlu0 %v2905_v8  ;;  %4202 = vmatprep.subr.bf16.mxu0 %v2949_v62 }
 0xc38   :  { %4099 = vmatpush3.bf16.msra.mxu1 %v1691_v52  ;;  %v2920_v57 = vsel %vm498_vm3, %v5470_v36, 0.0  ;;  %v1777_v52 = vld [vmem:[%s6088_s2 + $0x1c] sm:$0xf] }
 0xc39   :  { %v5476_v9 = vpop.eup %4531  ;;  %2912 = vadd.xlane.f32.xlu1 %v2911_v48  ;;  %4341 = vmatprep.subr.msk.bf16.mxu1 %vm429_vm1, %v1777_v52  ;;  %v1791_v21 = vsel %vm429_vm1, %v1777_v52, 0 }
 0xc3a   :  { %v4534_v7 = vpop.eup %4533  ;;  %4203 = vmatpush3.bf16.msra.mxu0 %v2949_v62  ;;  %v2923_v41 = vsel %vm498_vm3, %v5476_v9, 0.0 }
 0xc3b   :  { %v5480_v2 = vpop.eup %4535  ;;  %2921 = vadd.xlane.f32.xlu0 %v2920_v57  ;;  %4101 = vmatmul.mubr.msk.bf16.vlgmr.msra.gmra.mrb[28].mxu1 %vm498_vm3, %v1681_v23  ;;  %v1678_v39 = vmul.f32 %v4534_v7, %v5331_v32  ;;  %v2491_v32 = vsel %vm498_vm3, %v5372_v30, -inf }
 0xc3c   :  { %v4538_v42 = vpop.eup %4537  ;;  %4104 = vmatprep.mubr.msk.bf16.mxu1 %vm498_vm3, %v1682_v59  ;;  %v2914_v37 = vsel %vm498_vm3, %v5480_v2, 0.0  ;;  %4109 = vmatpush3.bf16.msra.mxu1 %v1791_v21  ;;  %v393_v59 = vadd.f32 %v4794_v40, %v5067_v26 }
 0xc3d   :  { %v5486_v43 = vpop.eup %4539  ;;  %2924 = vadd.xlane.f32.xlu1 %v2923_v41  ;;  %v1679_v29 = vmul.f32 %v4538_v42, %v5327_v25  ;;  %v2494_v25 = vsel %vm498_vm3, %v5376_v20, -inf  ;;  %4343 = vmatprep.subr.msk.bf16.mxu1 %vm429_vm1, %v5531_v34 }
 0xc3e   :  { %v2917_v15 = vsel %vm498_vm3, %v5486_v43, 0.0 }
 0xc3f   :  { %2915 = vadd.xlane.f32.xlu0 %v2914_v37  ;;  %v1683_v55 = vpack.c.bf16 %v1679_v29, %v1678_v39 }
 0xc41   :  { %2918 = vadd.xlane.f32.xlu1 %v2917_v15 }
 0xc43   :  { %4105 = vmatmul.mubr.msk.bf16.gmra.mrb[32].mxu1 %vm498_vm3, %v1683_v55 }
 0xc52   :  { %2950 = vrot.lane.b32.xlu1 %v4953_v58, %s4658_s8 }
 0xc55   :  { %2952 = vrot.lane.b32.xlu0 %v4951_v10, %s4658_s8 }
 0xc56   :  { %3129 = vrot.lane.b32.xlu1 %v4945_v1, %s4659_s9 }
 0xc59   :  { %3131 = vrot.lane.b32.xlu0 %v4943_v0, %s4659_s9 }
 0xc5a   :  { %3133 = vrot.lane.b32.xlu1 %v4953_v58, %s4659_s9 }
 0xc5d   :  { %3135 = vrot.lane.b32.xlu0 %v4951_v10, %s4659_s9 }
 0xc7c   :  { %2495 = vmax.xlane.f32.xlu0 %v2494_v25 }
 0xc7e   :  { %2492 = vmax.xlane.f32.xlu1 %v2491_v32 }
 0xc80   :  { %2498 = vmax.xlane.f32.xlu0 %v2497_v56 }
 0xc82   :  { %2501 = vmax.xlane.f32.xlu1 %v2500_v61 }
 0xc84   :  { %2504 = vmax.xlane.f32.xlu0 %v2503_v14 }
 0xc86   :  { %2507 = vmax.xlane.f32.xlu1 %v2506_v54 }
 0xc88   :  { %2510 = vmax.xlane.f32.xlu0 %v2509_v51 }
 0xc8a   :  { %2513 = vmax.xlane.f32.xlu1 %v2512_v44 }
 0xcbe   :  { %v2910_v6 = vpop.xlane.xlu0 %2909 }
 0xcc2   :  { %v2904_v45 = vpop.xlane.xlu1 %2903 }
 0xcc3   :  { %4541 = vrcp.f32 %v2904_v45 }
 0xcc4   :  { %v2907_v50 = vpop.xlane.xlu0 %2906 }
 0xcc5   :  { %4543 = vrcp.f32 %v2907_v50 }
 0xcc6   :  { %v2913_v3 = vpop.xlane.xlu1 %2912 }
 0xcc7   :  { %4545 = vrcp.f32 %v2913_v3 }
 0xcc8   :  { %v2922_v12 = vpop.xlane.xlu0 %2921  ;;  %4547 = vrcp.f32 %v2910_v6 }
 0xcca   :  { %v2925_v46 = vpop.xlane.xlu1 %2924 }
 0xccc   :  { %v2916_v62 = vpop.xlane.xlu0 %2915 }
 0xccd   :  { %v4542_v8 = vpop.eup %4541  ;;  %4549 = vrcp.f32 %v2916_v62 }
 0xcce   :  { %v2919_v49 = vpop.xlane.xlu1 %2918  ;;  %v2934_v48 = vmul.f32 %v4542_v8, %v5458_v63  ;;  %v3128_v63 = vpack.c.bf16 %v393_v59, %v393_v59 }
 0xccf   :  { %v4544_v4 = vpop.eup %4543  ;;  %4551 = vrcp.f32 %v2919_v49 }
 0xcd0   :  { %4553 = vrcp.f32 %v2925_v46  ;;  %v2935_v35 = vmul.f32 %v4544_v4, %v5464_v53  ;;  %v2953_v41 = vpop.permute.xlu0 %2952  ;;  %v3150_v25 = vsel %vm429_vm1, %v3128_v63, 0 }
 0xcd1   :  { %v4546_v23 = vpop.eup %4545  ;;  %4555 = vrcp.f32 %v2922_v12 }
 0xcd2   :  { %v2951_v7 = vpop.permute.xlu1 %2950  ;;  %v2942_v57 = vpack.c.bf16 %v2935_v35, %v2934_v48  ;;  %v4548_v42 = vpop.eup %4547  ;;  %v2937_v39 = vmul.f32 %v4546_v23, %v5460_v19 }
 0xcd3   :  { %4204 = vmatprep.subr.bf16.mxu0 %v2951_v7  ;;  %v2936_v53 = vmul.f32 %v4548_v42, %v5452_v47 }
 0xcd4   :  { %4205 = vmatpush3.bf16.msra.mxu0 %v2951_v7  ;;  %4208 = vmatprep.mubr.msk.bf16.mxu0 %vm498_vm3, %v2942_v57 }
 0xcd5   :  { %4206 = vmatprep.subr.bf16.mxu0 %v2953_v41  ;;  %v2943_v15 = vpack.c.bf16 %v2937_v39, %v2936_v53 }
 0xcd6   :  { %v3130_v14 = vpop.permute.xlu1 %3129 }
 0xcd7   :  { %v4550_v37 = vpop.eup %4549 }
 0xcd8   :  { %4207 = vmatpush3.bf16.msra.mxu0 %v2953_v41  ;;  %v2938_v40 = vmul.f32 %v4550_v37, %v5480_v2  ;;  %v3132_v2 = vpop.permute.xlu0 %3131 }
 0xcd9   :  { %v4552_v29 = vpop.eup %4551  ;;  %4348 = vmatprep.subr.msk.bf16.mxu0 %vm429_vm1, %v3128_v63 }
 0xcda   :  { %v4554_v55 = vpop.eup %4553  ;;  %v2939_v26 = vmul.f32 %v4552_v29, %v5486_v43  ;;  %v3134_v43 = vpop.permute.xlu1 %3133 }
 0xcdb   :  { %4209 = vmatmul.mubr.msk.bf16.vlgmr.msra.gmra.mrb[92].mxu0 %vm498_vm3, %v2943_v15  ;;  %v4556_v19 = vpop.eup %4555  ;;  %v2941_v56 = vmul.f32 %v4554_v55, %v5476_v9 }
 0xcdc   :  { %4227 = vmatpush3.bf16.msra.mxu0 %v3150_v25  ;;  %v2944_v32 = vpack.c.bf16 %v2939_v26, %v2938_v40  ;;  %v2940_v47 = vmul.f32 %v4556_v19, %v5470_v36  ;;  %v3136_v54 = vpop.permute.xlu0 %3135  ;;  %v6132_v19 = vpack.c.bf16 %v5352_v22, %v5346_v16 }
 0xcde   :  { %4212 = vmatprep.mubr.msk.bf16.mxu0 %vm498_vm3, %v2944_v32  ;;  %v2945_v61 = vpack.c.bf16 %v2941_v56, %v2940_v47 }
 0xce3   :  { %4213 = vmatmul.mubr.msk.bf16.gmra.mrb[96].mxu0 %vm498_vm3, %v2945_v61 }
 0xce4   :  { %4228 = vmatprep.mubr.msk.bf16.mxu0 %vm416_vm2, %v3130_v14 }
 0xceb   :  { %4229 = vmatmul.mubr.msk.bf16.vlgmr.msra.gmra.mrb[100].mxu0 %vm416_vm2, %v3132_v2  ;;  %v6133_v2 = vpack.c.bf16 %v5348_v18, %v5344_v17  ;;  %v6135_v17 = vpack.c.bf16 %v5360_v33, %v5356_v11 }
 0xcec   :  { %4232 = vmatprep.mubr.msk.bf16.mxu0 %vm416_vm2, %v3134_v43 }
 0xcf3   :  { %4233 = vmatmul.mubr.msk.bf16.gmra.mrb[104].mxu0 %vm416_vm2, %v3136_v54  ;;  %v6134_v54 = vpack.c.bf16 %v5364_v60, %v5358_v27 }
 0xd09   :  { %v2496_v9 = vpop.xlane.xlu0 %2495 }
 0xd0a   :  { %v2516_v51 = vsub.f32 %v5376_v20, %v2496_v9 }
 0xd0b   :  { %v2493_v44 = vpop.xlane.xlu1 %2492 }
 0xd0c   :  { %v2525_v36 = vmul.f32 1.442695, %v2516_v51  ;;  %v2515_v52 = vsub.f32 %v5372_v30, %v2493_v44 }
 0xd0d   :  { %v2499_v21 = vpop.xlane.xlu0 %2498 }
 0xd0e   :  { %4557 = vpow2.f32 %v2525_v36  ;;  %v2523_v6 = vmul.f32 1.442695, %v2515_v52  ;;  %v2517_v45 = vsub.f32 %v5368_v38, %v2499_v21  ;;  %v4102_v50 = vpop.f32.mrb[28].mxu1  ;;  %v2327_v38 = vsel %vm429_vm1, %v5531_v34, 0 }
 0xd0f   :  { %v1742_v3 = vpop.f32.mrb[29].mxu1  ;;  %v2502_v12 = vpop.xlane.xlu1 %2501 }
 0xd10   :  { %4559 = vpow2.f32 %v2523_v6  ;;  %v2527_v46 = vmul.f32 1.442695, %v2517_v45  ;;  %v2518_v62 = vsub.f32 %v5374_v31, %v2502_v12  ;;  %v4103_v8 = vpop.f32.mrb[30].mxu1 }
 0xd11   :  { %v1774_v49 = vpack.c.bf16 %v4103_v8, %v4102_v50  ;;  %v2505_v4 = vpop.xlane.xlu0 %2504  ;;  %v1745_v20 = vpop.f32.mrb[31].mxu1 }
 0xd12   :  { %4561 = vpow2.f32 %v2527_v46  ;;  %v2529_v48 = vmul.f32 1.442695, %v2518_v62  ;;  %v2519_v30 = vsub.f32 %v5384_v24, %v2505_v4  ;;  %v1773_v35 = vpack.c.bf16 %v1745_v20, %v1742_v3 }
 0xd13   :  { %v2508_v23 = vpop.xlane.xlu1 %2507 }
 0xd14   :  { %4563 = vpow2.f32 %v2529_v48  ;;  %v2531_v7 = vmul.f32 1.442695, %v2519_v30  ;;  %v2520_v57 = vsub.f32 %v5388_v28, %v2508_v23  ;;  %4110 = vmatprep.mubr.msk.bf16.mxu1 %vm416_vm2, %v1773_v35 }
 0xd15   :  { %v2511_v31 = vpop.xlane.xlu0 %2510  ;;  %4111 = vmatmul.mubr.msk.bf16.vlgmr.msra.gmra.mrb[16].mxu1 %vm416_vm2, %v1774_v49 }
 0xd16   :  { %4565 = vpow2.f32 %v2531_v7  ;;  %v2533_v59 = vmul.f32 1.442695, %v2520_v57  ;;  %v2521_v42 = vsub.f32 %v5380_v13, %v2511_v31  ;;  %v4106_v41 = vpop.f32.mrb[32].mxu1  ;;  %4145 = vmatpush3.bf16.msra.mxu1 %v2327_v38 }
 0xd17   :  { %v1758_v24 = vpop.f32.mrb[33].mxu1  ;;  %v2514_v39 = vpop.xlane.xlu1 %2513 }
 0xd18   :  { %v4558_v37 = vpop.eup %4557  ;;  %4567 = vpow2.f32 %v2533_v59  ;;  %v2535_v34 = vmul.f32 1.442695, %v2521_v42  ;;  %v2522_v63 = vsub.f32 %v5386_v5, %v2514_v39  ;;  %v4107_v53 = vpop.f32.mrb[34].mxu1 }
 0xd19   :  { %v1776_v28 = vpack.c.bf16 %v4107_v53, %v4106_v41  ;;  %v1761_v29 = vpop.f32.mrb[35].mxu1  ;;  %v2542_v15 = vsel %vm498_vm3, %v4558_v37, 0.0 }
 0xd1a   :  { %v4560_v55 = vpop.eup %4559  ;;  %4569 = vpow2.f32 %v2535_v34  ;;  %v2537_v40 = vmul.f32 1.442695, %v2522_v63  ;;  %v1775_v26 = vpack.c.bf16 %v1761_v29, %v1758_v24  ;;  %2543 = vadd.xlane.f32.xlu1 %v2542_v15 }
 0xd1b   :  { %v2539_v13 = vsel %vm498_vm3, %v4560_v55, 0.0 }
 0xd1c   :  { %v5569_v25 = vpop.eup %4561  ;;  %4571 = vpow2.f32 %v2537_v40  ;;  %4114 = vmatprep.mubr.msk.bf16.mxu1 %vm416_vm2, %v1775_v26  ;;  %2540 = vadd.xlane.f32.xlu0 %v2539_v13 }
 0xd1d   :  { %4115 = vmatmul.mubr.msk.bf16.gmra.mrb[20].mxu1 %vm416_vm2, %v1776_v28  ;;  %v2545_v32 = vsel %vm498_vm3, %v5569_v25, 0.0 }
 0xd1e   :  { %v5573_v5 = vpop.eup %4563  ;;  %4146 = vmatprep.mubr.msk.bf16.mxu1 %vm416_vm2, %v6132_v19 }
 0xd1f   :  { %v2548_v56 = vsel %vm498_vm3, %v5573_v5, 0.0 }
 0xd20   :  { %v5583_v47 = vpop.eup %4565  ;;  %2546 = vadd.xlane.f32.xlu0 %v2545_v32  ;;  %2549 = vadd.xlane.f32.xlu1 %v2548_v56 }
 0xd21   :  { %v2551_v14 = vsel %vm498_vm3, %v5583_v47, 0.0 }
 0xd22   :  { %v5585_v61 = vpop.eup %4567 }
 0xd23   :  { %v2554_v16 = vsel %vm498_vm3, %v5585_v61, 0.0 }
 0xd24   :  { %v5591_v22 = vpop.eup %4569  ;;  %2552 = vadd.xlane.f32.xlu0 %v2551_v14  ;;  %2555 = vadd.xlane.f32.xlu1 %v2554_v16 }
 0xd25   :  { %4147 = vmatmul.mubr.msk.bf16.vlgmr.msra.gmra.mrb[36].mxu1 %vm416_vm2, %v6133_v2  ;;  %v2557_v9 = vsel %vm498_vm3, %v5591_v22, 0.0 }
 0xd26   :  { %v5597_v43 = vpop.eup %4571  ;;  %4150 = vmatprep.mubr.msk.bf16.mxu1 %vm416_vm2, %v6134_v54 }
 0xd27   :  { %v2560_v51 = vsel %vm498_vm3, %v5597_v43, 0.0 }
 0xd28   :  { %2558 = vadd.xlane.f32.xlu0 %v2557_v9  ;;  %2561 = vadd.xlane.f32.xlu1 %v2560_v51 }
 0xd2d   :  { %4151 = vmatmul.mubr.msk.bf16.gmra.mrb[40].mxu1 %vm416_vm2, %v6135_v17 }
 0xd39   :  { %2585 = vrot.lane.b32.xlu1 %v4943_v0, %s4657_s7 }
 0xd3d   :  { %2587 = vrot.lane.b32.xlu1 %v4953_v58, %s4657_s7 }
 0xd3e   :  { %2583 = vrot.lane.b32.xlu0 %v4945_v1, %s4657_s7 }
 0xd42   :  { %2589 = vrot.lane.b32.xlu0 %v4951_v10, %s4657_s7 }
 0xda7   :  { %v2544_v18 = vpop.xlane.xlu1 %2543 }
 0xda8   :  { %4573 = vrcp.f32 %v2544_v18 }
 0xda9   :  { %v2541_v27 = vpop.xlane.xlu0 %2540 }
 0xdaa   :  { %4575 = vrcp.f32 %v2541_v27 }
 0xdad   :  { %v2547_v60 = vpop.xlane.xlu0 %2546  ;;  %v2550_v11 = vpop.xlane.xlu1 %2549 }
 0xdae   :  { %v5619_v33 = vpop.f32.mrb[92].mxu0  ;;  %4577 = vrcp.f32 %v2547_v60 }
 0xdaf   :  { %v5621_v44 = vpop.f32.mrb[93].mxu0  ;;  %4579 = vrcp.f32 %v2550_v11 }
 0xdb0   :  { %v5623_v36 = vpop.f32.mrb[94].mxu0 }
 0xdb1   :  { %v3036_v52 = vpack.c.bf16 %v5623_v36, %v5619_v33  ;;  %v5627_v21 = vpop.f32.mrb[95].mxu0  ;;  %v2553_v6 = vpop.xlane.xlu0 %2552 }
 0xdb2   :  { %v4574_v45 = vpop.eup %4573  ;;  %v3035_v50 = vpack.c.bf16 %v5627_v21, %v5621_v44  ;;  %v2556_v3 = vpop.xlane.xlu1 %2555  ;;  %4581 = vrcp.f32 %v2553_v6 }
 0xdb3   :  { %v2572_v8 = vmul.f32 %v4574_v45, %v4558_v37  ;;  %4583 = vrcp.f32 %v2556_v3 }
 0xdb4   :  { %v4576_v12 = vpop.eup %4575 }
 0xdb5   :  { %v2559_v46 = vpop.xlane.xlu0 %2558  ;;  %v2571_v62 = vmul.f32 %v4576_v12, %v4560_v55 }
 0xdb6   :  { %v2562_v49 = vpop.xlane.xlu1 %2561  ;;  %v5631_v4 = vpop.f32.mrb[96].mxu0  ;;  %4585 = vrcp.f32 %v2559_v46  ;;  %v5704_v46 = vld [vmem:[%s6088_s2 + $0x18] sm:$0xf] }
 0xdb7   :  { %v5633_v20 = vpop.f32.mrb[97].mxu0  ;;  %v2579_v48 = vpack.c.bf16 %v2572_v8, %v2571_v62  ;;  %4587 = vrcp.f32 %v2562_v49 }
 0xdb8   :  { %v5635_v30 = vpop.f32.mrb[98].mxu0  ;;  %v4578_v41 = vpop.eup %4577 }
 0xdb9   :  { %v3038_v35 = vpack.c.bf16 %v5635_v30, %v5631_v4  ;;  %v5639_v23 = vpop.f32.mrb[99].mxu0  ;;  %v2584_v38 = vpop.permute.xlu0 %2583  ;;  %4172 = vmatprep.mubr.msk.bf16.mxu1 %vm498_vm3, %v2579_v48  ;;  %v2573_v15 = vmul.f32 %v4578_v41, %v5569_v25 }
 0xdba   :  { %v3037_v7 = vpack.c.bf16 %v5639_v23, %v5633_v20  ;;  %v2586_v57 = vpop.permute.xlu1 %2585  ;;  %4164 = vmatprep.subr.bf16.mxu1 %v2584_v38  ;;  %v4580_v37 = vpop.eup %4579 }
 0xdbb   :  { %4165 = vmatpush3.bf16.msra.mxu1 %v2584_v38  ;;  %v2574_v55 = vmul.f32 %v4580_v37, %v5573_v5 }
 0xdbc   :  { %4166 = vmatprep.subr.bf16.mxu1 %v2586_v57  ;;  %v4582_v63 = vpop.eup %4581 }
 0xdbd   :  { %v4584_v28 = vpop.eup %4583  ;;  %v2590_v29 = vpop.permute.xlu0 %2589  ;;  %v2575_v19 = vmul.f32 %v4582_v63, %v5583_v47  ;;  %v2580_v5 = vpack.c.bf16 %v2574_v55, %v2573_v15 }
 0xdbe   :  { %v5644_v31 = vpop.f32.mrb[100].mxu0  ;;  %v2588_v59 = vpop.permute.xlu1 %2587  ;;  %v2576_v32 = vmul.f32 %v4584_v28, %v5585_v61 }
 0xdbf   :  { %4167 = vmatpush3.bf16.msra.mxu1 %v2586_v57  ;;  %v5646_v42 = vpop.f32.mrb[101].mxu0  ;;  %v3223_v13 = vsel %vm498_vm3, %v5644_v31, -inf }
 0xdc0   :  { %4168 = vmatprep.subr.bf16.mxu1 %v2588_v59  ;;  %v5648_v24 = vpop.f32.mrb[102].mxu0  ;;  %v3217_v39 = vsel %vm498_vm3, %v5646_v42, -inf  ;;  %v4586_v25 = vpop.eup %4585  ;;  %v2581_v51 = vpack.c.bf16 %v2576_v32, %v2575_v19 }
 0xdc1   :  { %v3189_v34 = vpop.f32.mrb[103].mxu0  ;;  %3218 = vmax.xlane.f32.xlu1 %v3217_v39  ;;  %v3226_v40 = vsel %vm498_vm3, %v5648_v24, -inf  ;;  %v4588_v16 = vpop.eup %4587  ;;  %v2577_v47 = vmul.f32 %v4586_v25, %v5591_v22 }
 0xdc2   :  { %v3220_v53 = vsel %vm498_vm3, %v3189_v34, -inf  ;;  %v2578_v61 = vmul.f32 %v4588_v16, %v5597_v43 }
 0xdc3   :  { %3221 = vmax.xlane.f32.xlu0 %v3220_v53  ;;  %4169 = vmatpush3.bf16.msra.mxu1 %v2588_v59 }
 0xdc4   :  { %4170 = vmatprep.subr.bf16.mxu1 %v2590_v29  ;;  %v2582_v27 = vpack.c.bf16 %v2578_v61, %v2577_v47 }
 0xdc5   :  { %3227 = vmax.xlane.f32.xlu1 %v3226_v40 }
 0xdc6   :  { %v5657_v26 = vpop.f32.mrb[104].mxu0 }
 0xdc7   :  { %v5663_v56 = vpop.f32.mrb[105].mxu0  ;;  %3224 = vmax.xlane.f32.xlu0 %v3223_v13  ;;  %4171 = vmatpush3.bf16.msra.mxu1 %v2590_v29  ;;  %v3235_v17 = vsel %vm498_vm3, %v5657_v26, -inf }
 0xdc8   :  { %v4235_v14 = vpop.f32.mrb[106].mxu0  ;;  %v3229_v9 = vsel %vm498_vm3, %v5663_v56, -inf }
 0xdc9   :  { %v3205_v2 = vpop.f32.mrb[107].mxu0  ;;  %v3238_v18 = vsel %vm498_vm3, %v4235_v14, -inf }
 0xdca   :  { %v3232_v54 = vsel %vm498_vm3, %v3205_v2, -inf  ;;  %4173 = vmatmul.mubr.msk.bf16.vlgmr.msra.gmra.mrb[44].mxu1 %vm498_vm3, %v2580_v5 }
 0xdcb   :  { %3230 = vmax.xlane.f32.xlu0 %v3229_v9  ;;  %3233 = vmax.xlane.f32.xlu1 %v3232_v54 }
 0xdcc   :  { %4176 = vmatprep.mubr.msk.bf16.mxu1 %vm498_vm3, %v2581_v51 }
 0xdcf   :  { %3236 = vmax.xlane.f32.xlu0 %v3235_v17  ;;  %3239 = vmax.xlane.f32.xlu1 %v3238_v18 }
 0xdd2   :  { %4177 = vmatmul.mubr.msk.bf16.gmra.mrb[48].mxu1 %vm498_vm3, %v2582_v27 }
 0xde0   :  { %3311 = vrot.lane.b32.xlu1 %v4943_v0, %s4660_s13  ;;  %v2676_v0 = vld [vmem:[%s6088_s2 + $0x14] sm:$0xf] }
 0xde1   :  { %4345 = vmatprep.subr.msk.bf16.mxu1 %vm429_vm1, %v2676_v0 }
 0xde5   :  { %3309 = vrot.lane.b32.xlu0 %v4945_v1, %s4660_s13  ;;  %v2690_v1 = vsel %vm429_vm1, %v2676_v0, 0 }
 0xde6   :  { %4181 = vmatpush3.bf16.msra.mxu1 %v2690_v1  ;;  %v5752_v1 = vld [vmem:[%s6092_s5] ss:$0 sm:$0xff] }
 0xde7   :  { %4347 = vmatprep.subr.msk.bf16.mxu1 %vm429_vm1, %v5704_v46 }
 0xde8   :  { %v5680_v60 = vpop.f32.mrb[16].mxu1 }
 0xde9   :  { %v5682_v22 = vpop.f32.mrb[17].mxu1 }
 0xdea   :  { %v5684_v43 = vpop.f32.mrb[18].mxu1 }
 0xdeb   :  { %v5686_v11 = vpop.f32.mrb[19].mxu1 }
 0xdf0   :  { %v5688_v6 = vpop.f32.mrb[20].mxu1 }
 0xdf1   :  { %v5690_v45 = vpop.f32.mrb[21].mxu1 }
 0xdf2   :  { %v5692_v3 = vpop.f32.mrb[22].mxu1 }
 0xdf3   :  { %v5694_v12 = vpop.f32.mrb[23].mxu1 }
 0xe4e   :  { %v3219_v62 = vpop.xlane.xlu1 %3218 }
 0xe4f   :  { %v3241_v38 = vsub.f32 %v5646_v42, %v3219_v62 }
 0xe50   :  { %v3222_v8 = vpop.xlane.xlu0 %3221 }
 0xe51   :  { %v3242_v49 = vsub.f32 %v3189_v34, %v3222_v8  ;;  %v3249_v63 = vmul.f32 1.442695, %v3241_v38 }
 0xe52   :  { %v3228_v48 = vpop.xlane.xlu1 %3227 }
 0xe53   :  { %v3244_v57 = vsub.f32 %v5648_v24, %v3228_v48  ;;  %v3251_v59 = vmul.f32 1.442695, %v3242_v49  ;;  %v6136_v49 = vld [vmem:[#allocation3_spill] sm:$0xff] }
 0xe54   :  { %v3225_v41 = vpop.xlane.xlu0 %3224  ;;  %v404_v48 = vadd.f32 %v5752_v1, %v6136_v49 }
 0xe55   :  { %v3255_v39 = vmul.f32 1.442695, %v3244_v57  ;;  %v3243_v37 = vsub.f32 %v5644_v31, %v3225_v41  ;;  %v6137_v57 = vld [vmem:[#allocation2_spill] sm:$0xff] }
 0xe57   :  { %4589 = vpow2.f32 %v3255_v39  ;;  %v3253_v53 = vmul.f32 1.442695, %v3243_v37 }
 0xe58   :  { %4591 = vpow2.f32 %v3251_v59  ;;  %v3231_v28 = vpop.xlane.xlu0 %3230  ;;  %v3234_v29 = vpop.xlane.xlu1 %3233  ;;  %v403_v59 = vadd.f32 %v5752_v1, %v6137_v57 }
 0xe59   :  { %4593 = vpow2.f32 %v3253_v53  ;;  %v3245_v34 = vsub.f32 %v5663_v56, %v3231_v28  ;;  %v3246_v15 = vsub.f32 %v3205_v2, %v3234_v29  ;;  %v6138_v53 = vld [vmem:[#allocation4_spill] sm:$0xff] }
 0xe5a   :  { %4595 = vpow2.f32 %v3249_v63  ;;  %v5762_v37 = vadd.f32 %v5682_v22, %v403_v59  ;;  %v3053_v63 = vsel %vm429_vm1, %v5704_v46, 0  ;;  %v405_v28 = vadd.f32 %v5752_v1, %v6138_v53 }
 0xe5b   :  { %v3257_v13 = vmul.f32 1.442695, %v3245_v34  ;;  %v3259_v31 = vmul.f32 1.442695, %v3246_v15 }
 0xe5c   :  { %v3237_v55 = vpop.xlane.xlu0 %3236  ;;  %v3240_v42 = vpop.xlane.xlu1 %3239  ;;  %v5771_v29 = vadd.f32 %v5680_v60, %v405_v28  ;;  %v1866_v46 = vsel %vm128_vm0, %v5762_v37, 0.0 }
 0xe5d   :  { %v3247_v24 = vsub.f32 %v5657_v26, %v3237_v55  ;;  %v3248_v40 = vsub.f32 %v4235_v14, %v3240_v42  ;;  %v6139_v55 = vld [vmem:[#allocation5_spill] sm:$0xff] }
 0xe5e   :  { %v406_v42 = vadd.f32 %v5752_v1, %v6139_v55 }
 0xe5f   :  { %v3261_v19 = vmul.f32 1.442695, %v3247_v24  ;;  %v3263_v32 = vmul.f32 1.442695, %v3248_v40 }
 0xe60   :  { %v3310_v34 = vpop.permute.xlu0 %3309 }
 0xe61   :  { %v5713_v25 = vpop.eup %4589  ;;  %4597 = vpow2.f32 %v3261_v19 }
 0xe62   :  { %v5715_v5 = vpop.eup %4591  ;;  %4599 = vpow2.f32 %v3263_v32  ;;  %v3274_v16 = vsel %vm498_vm3, %v5713_v25, 0.0  ;;  %v1872_v32 = vsel %vm128_vm0, %v5771_v29, 0.0 }
 0xe63   :  { %v5719_v56 = vpop.eup %4593  ;;  %4601 = vpow2.f32 %v3257_v13  ;;  %3275 = vadd.xlane.f32.xlu1 %v3274_v16  ;;  %v3268_v2 = vsel %vm498_vm3, %v5715_v5, 0.0  ;;  %v5780_v13 = vadd.f32 %v5684_v43, %v406_v42  ;;  %v3312_v43 = vpop.permute.xlu1 %3311  ;;  %v6141_v42 = vld [vmem:[#allocation10_spill] sm:$0xff] }
 0xe64   :  { %4603 = vpow2.f32 %v3259_v31  ;;  %v3271_v26 = vsel %vm498_vm3, %v5719_v56, 0.0  ;;  %v5723_v14 = vpop.eup %4595 }
 0xe65   :  { %3272 = vadd.xlane.f32.xlu0 %v3271_v26  ;;  %v3265_v54 = vsel %vm498_vm3, %v5723_v14, 0.0  ;;  %v1875_v31 = vsel %vm128_vm0, %v5780_v13, 0.0 }
 0xe67   :  { %3269 = vadd.xlane.f32.xlu1 %v3268_v2 }
 0xe69   :  { %3266 = vadd.xlane.f32.xlu0 %v3265_v54 }
 0xe6b   :  { %v5729_v9 = vpop.eup %4597 }
 0xe6c   :  { %v5731_v51 = vpop.eup %4599  ;;  %v3283_v47 = vsel %vm498_vm3, %v5729_v9, 0.0 }
 0xe6d   :  { %v5735_v61 = vpop.eup %4601  ;;  %3284 = vadd.xlane.f32.xlu0 %v3283_v47  ;;  %v3286_v17 = vsel %vm498_vm3, %v5731_v51, 0.0 }
 0xe6e   :  { %v5739_v18 = vpop.eup %4603  ;;  %3287 = vadd.xlane.f32.xlu1 %v3286_v17  ;;  %v3277_v27 = vsel %vm498_vm3, %v5735_v61, 0.0 }
 0xe6f   :  { %v3280_v0 = vsel %vm498_vm3, %v5739_v18, 0.0 }
 0xe71   :  { %3278 = vadd.xlane.f32.xlu0 %v3277_v27  ;;  %v3402_v27 = vld [vmem:[%s6088_s2 + $0x1c] sm:$0xf] }
 0xe72   :  { %3281 = vadd.xlane.f32.xlu1 %v3280_v0 }
 0xe83   :  { %3313 = vrot.lane.b32.xlu1 %v4953_v58, %s4660_s13  ;;  %v5759_v58 = vadd.f32 %v5686_v11, %v404_v48 }
 0xe85   :  { %v1869_v22 = vsel %vm128_vm0, %v5759_v58, 0.0 }
 0xe87   :  { %3315 = vrot.lane.b32.xlu0 %v4951_v10, %s4660_s13 }
 0xe9d   :  { %v4174_v62 = vpop.f32.mrb[44].mxu1 }
 0xe9e   :  { %v2641_v8 = vpop.f32.mrb[45].mxu1 }
 0xe9f   :  { %v4175_v38 = vpop.f32.mrb[46].mxu1 }
 0xea0   :  { %v2673_v41 = vpack.c.bf16 %v4175_v38, %v4174_v62  ;;  %v2644_v39 = vpop.f32.mrb[47].mxu1 }
 0xea1   :  { %v2672_v10 = vpack.c.bf16 %v2644_v39, %v2641_v8 }
 0xea3   :  { %4182 = vmatprep.mubr.msk.bf16.mxu1 %vm416_vm2, %v2672_v10 }
 0xea4   :  { %4183 = vmatmul.mubr.msk.bf16.vlgmr.msra.gmra.mrb[36].mxu1 %vm416_vm2, %v2673_v41 }
 0xea5   :  { %4217 = vmatpush3.bf16.msra.mxu1 %v3053_v63  ;;  %v4178_v11 = vpop.f32.mrb[48].mxu1 }
 0xea6   :  { %4236 = vmatprep.subr.bf16.mxu1 %v3310_v34  ;;  %v2657_v15 = vpop.f32.mrb[49].mxu1  ;;  %1870 = vadd.xlane.f32.xlu0 %v1869_v22 }
 0xea7   :  { %1867 = vadd.xlane.f32.xlu1 %v1866_v46  ;;  %v4179_v24 = vpop.f32.mrb[50].mxu1 }
 0xea8   :  { %v2675_v40 = vpack.c.bf16 %v4179_v24, %v4178_v11  ;;  %v2660_v60 = vpop.f32.mrb[51].mxu1  ;;  %v2031_v24 = vadd.f32 %v5752_v1, %v6141_v42 }
 0xea9   :  { %v2674_v19 = vpack.c.bf16 %v2660_v60, %v2657_v15  ;;  %v6140_v15 = vld [vmem:[#allocation12_spill] sm:$0xff] }
 0xeaa   :  { %1873 = vadd.xlane.f32.xlu0 %v1872_v32  ;;  %v2033_v46 = vadd.f32 %v5752_v1, %v6140_v15 }
 0xeab   :  { %4186 = vmatprep.mubr.msk.bf16.mxu1 %vm416_vm2, %v2674_v19  ;;  %v6142_v19 = vld [vmem:[#allocation13_spill] sm:$0xff] }
 0xeac   :  { %4187 = vmatmul.mubr.msk.bf16.gmra.mrb[40].mxu1 %vm416_vm2, %v2675_v40  ;;  %v2034_v32 = vadd.f32 %v5752_v1, %v6142_v19 }
 0xead   :  { %4218 = vmatprep.mubr.msk.bf16.mxu1 %vm416_vm2, %v3035_v50 }
 0xeae   :  { %1876 = vadd.xlane.f32.xlu0 %v1875_v31  ;;  %v6143_v31 = vld [vmem:[#allocation6_spill] sm:$0xff] }
 0xeb4   :  { %4219 = vmatmul.mubr.msk.bf16.vlgmr.msra.gmra.mrb[36].mxu1 %vm416_vm2, %v3036_v52 }
 0xeb5   :  { %4237 = vmatpush3.bf16.msra.mxu1 %v3310_v34  ;;  %4222 = vmatprep.mubr.msk.bf16.mxu1 %vm416_vm2, %v3037_v7 }
 0xeb6   :  { %4238 = vmatprep.subr.bf16.mxu1 %v3312_v43 }
 0xeb9   :  { %4239 = vmatpush3.bf16.msra.mxu1 %v3312_v43  ;;  %v407_v43 = vadd.f32 %v5752_v1, %v6143_v31 }
 0xebc   :  { %4223 = vmatmul.mubr.msk.bf16.gmra.mrb[40].mxu1 %vm416_vm2, %v3038_v35 }
 0xef0   :  { %v3276_v44 = vpop.xlane.xlu1 %3275 }
 0xef2   :  { %v3273_v21 = vpop.xlane.xlu0 %3272 }
 0xef4   :  { %v3270_v50 = vpop.xlane.xlu1 %3269 }
 0xef5   :  { %4605 = vrcp.f32 %v3270_v50 }
 0xef6   :  { %v3267_v33 = vpop.xlane.xlu0 %3266 }
 0xef7   :  { %4607 = vrcp.f32 %v3267_v33 }
 0xef8   :  { %4609 = vrcp.f32 %v3273_v21 }
 0xef9   :  { %4611 = vrcp.f32 %v3276_v44 }
 0xefa   :  { %v3285_v36 = vpop.xlane.xlu0 %3284 }
 0xefb   :  { %v3288_v52 = vpop.xlane.xlu1 %3287  ;;  %4613 = vrcp.f32 %v3285_v36 }
 0xefe   :  { %v3279_v20 = vpop.xlane.xlu0 %3278 }
 0xeff   :  { %v4606_v23 = vpop.eup %4605  ;;  %4615 = vrcp.f32 %v3279_v20  ;;  %v3282_v7 = vpop.xlane.xlu1 %3281 }
 0xf00   :  { %4617 = vrcp.f32 %v3282_v7  ;;  %v3298_v30 = vmul.f32 %v4606_v23, %v5715_v5  ;;  %v6144_v23 = vld [vmem:[#allocation11_spill] sm:$0xff] }
 0xf01   :  { %v4608_v16 = vpop.eup %4607  ;;  %4619 = vrcp.f32 %v3288_v52  ;;  %v5842_v52 = vadd.f32 %v5690_v45, %v407_v43  ;;  %v2032_v7 = vadd.f32 %v5752_v1, %v6144_v23 }
 0xf02   :  { %v3297_v4 = vmul.f32 %v4608_v16, %v5723_v14  ;;  %v4610_v35 = vpop.eup %4609  ;;  %v3316_v47 = vpop.permute.xlu0 %3315  ;;  %v6145_v16 = vld [vmem:[#allocation7_spill] sm:$0xff] }
 0xf03   :  { %v3314_v26 = vpop.permute.xlu1 %3313  ;;  %v4612_v54 = vpop.eup %4611  ;;  %v3299_v17 = vmul.f32 %v4610_v35, %v5719_v56  ;;  %v3416_v56 = vsel %vm429_vm1, %v3402_v27, 0 }
 0xf04   :  { %4240 = vmatprep.subr.bf16.mxu1 %v3314_v26  ;;  %v3305_v2 = vpack.c.bf16 %v3298_v30, %v3297_v4  ;;  %v3300_v14 = vmul.f32 %v4612_v54, %v5713_v25  ;;  %v408_v4 = vadd.f32 %v5752_v1, %v6145_v16  ;;  %v1878_v54 = vsel %vm128_vm0, %v5842_v52, 0.0 }
 0xf05   :  { %4241 = vmatpush3.bf16.msra.mxu1 %v3314_v26  ;;  %v4614_v0 = vpop.eup %4613 }
 0xf06   :  { %4242 = vmatprep.subr.bf16.mxu1 %v3316_v47  ;;  %4244 = vmatprep.mubr.msk.bf16.mxu1 %vm498_vm3, %v3305_v2  ;;  %v3306_v8 = vpack.c.bf16 %v3300_v14, %v3299_v17  ;;  %v3303_v59 = vmul.f32 %v4614_v0, %v5729_v9  ;;  %v5855_v26 = vadd.f32 %v5694_v12, %v408_v4  ;;  %v6146_v17 = vld [vmem:[#allocation16_spill] sm:$0xff] }
 0xf07   :  { %v6147_v14 = vld [vmem:[#allocation8_spill] sm:$0xff] }
 0xf09   :  { %v4616_v5 = vpop.eup %4615  ;;  %4243 = vmatpush3.bf16.msra.mxu1 %v3316_v47 }
 0xf0a   :  { %v4618_v62 = vpop.eup %4617  ;;  %v3301_v49 = vmul.f32 %v4616_v5, %v5735_v61  ;;  %4349 = vmatprep.subr.msk.bf16.mxu1 %vm429_vm1, %v3402_v27  ;;  %v2037_v27 = vadd.f32 %v5752_v1, %v6146_v17  ;;  %v409_v5 = vadd.f32 %v5752_v1, %v6147_v14 }
 0xf0b   :  { %v4620_v48 = vpop.eup %4619  ;;  %v3302_v38 = vmul.f32 %v4618_v62, %v5739_v18 }
 0xf0c   :  { %4245 = vmatmul.mubr.msk.bf16.vlgmr.msra.gmra.mrb[52].mxu1 %vm498_vm3, %v3306_v8  ;;  %v3304_v25 = vmul.f32 %v4620_v48, %v5731_v51 }
 0xf0d   :  { %v3307_v57 = vpack.c.bf16 %v3302_v38, %v3301_v49  ;;  %4253 = vmatpush3.bf16.msra.mxu1 %v3416_v56  ;;  %v5868_v56 = vadd.f32 %v5688_v6, %v409_v5  ;;  %v1881_v38 = vsel %vm128_vm0, %v5855_v26, 0.0 }
 0xf0e   :  { %v3308_v41 = vpack.c.bf16 %v3304_v25, %v3303_v59  ;;  %v6149_v25 = vld [vmem:[#allocation9_spill] sm:$0xff] }
 0xf0f   :  { %4248 = vmatprep.mubr.msk.bf16.mxu1 %vm498_vm3, %v3307_v57  ;;  %v6148_v57 = vld [vmem:[#allocation14_spill] sm:$0xff] }
 0xf10   :  { %v2035_v59 = vadd.f32 %v5752_v1, %v6148_v57 }
 0xf14   :  { %4249 = vmatmul.mubr.msk.bf16.gmra.mrb[56].mxu1 %vm498_vm3, %v3308_v41  ;;  %v410_v41 = vadd.f32 %v5752_v1, %v6149_v25 }
 0xf16   :  { %v5881_v6 = vadd.f32 %v5692_v3, %v410_v41 }
 0xf33   :  { %v1871_v45 = vpop.xlane.xlu0 %1870 }
 0xf34   :  { %v1868_v47 = vpop.xlane.xlu1 %1867 }
 0xf35   :  { %v1891_v48 = vmul.f32 0.03125, %v1868_v47 }
 0xfdf   :  { %v4246_v61 = vpop.f32.mrb[52].mxu1 }
 0xfe0   :  { %v3367_v39 = vpop.f32.mrb[53].mxu1 }
 0xfe1   :  { %v4247_v10 = vpop.f32.mrb[54].mxu1 }
 0xfe2   :  { %v3399_v63 = vpack.c.bf16 %v4247_v10, %v4246_v61  ;;  %v3370_v53 = vpop.f32.mrb[55].mxu1  ;;  %v1874_v61 = vpop.xlane.xlu0 %1873 }
 0xfe3   :  { %v3398_v28 = vpack.c.bf16 %v3370_v53, %v3367_v39  ;;  %v5884_v53 = vsub.f32 %v5762_v37, %v1891_v48  ;;  %v1887_v37 = vsel %vm128_vm0, %v5881_v6, 0.0 }
 0xfe5   :  { %4254 = vmatprep.mubr.msk.bf16.mxu1 %vm416_vm2, %v3398_v28  ;;  %v1884_v28 = vsel %vm128_vm0, %v5868_v56, 0.0 }
 0xfe6   :  { %4255 = vmatmul.mubr.msk.bf16.vlgmr.msra.gmra.mrb[36].mxu1 %vm416_vm2, %v3399_v63  ;;  %v1892_v63 = vmul.f32 0.03125, %v1871_v45  ;;  %v1877_v15 = vpop.xlane.xlu0 %1876 }
 0xfe7   :  { %v4250_v18 = vpop.f32.mrb[56].mxu1 }
 0xfe8   :  { %v3383_v34 = vpop.f32.mrb[57].mxu1  ;;  %v5895_v3 = vsub.f32 %v5759_v58, %v1892_v63 }
 0xfe9   :  { %v4251_v9 = vpop.f32.mrb[58].mxu1 }
 0xfea   :  { %v3401_v11 = vpack.c.bf16 %v4251_v9, %v4250_v18  ;;  %v3386_v51 = vpop.f32.mrb[59].mxu1  ;;  %v6150_v18 = vld [vmem:[#allocation15_spill] sm:$0xff] }
 0xfeb   :  { %v3400_v22 = vpack.c.bf16 %v3386_v51, %v3383_v34  ;;  %v2036_v34 = vadd.f32 %v5752_v1, %v6150_v18  ;;  %v1893_v51 = vmul.f32 0.03125, %v1874_v61 }
 0xfed   :  { %4258 = vmatprep.mubr.msk.bf16.mxu1 %vm416_vm2, %v3400_v22  ;;  %v1907_v22 = vmul.f32 %v5884_v53, %v5884_v53  ;;  %v5908_v58 = vsub.f32 %v5771_v29, %v1893_v51 }
 0xfee   :  { %4259 = vmatmul.mubr.msk.bf16.gmra.mrb[40].mxu1 %vm416_vm2, %v3401_v11 }
 0xfef   :  { %v1915_v19 = vsel %vm128_vm0, %v1907_v22, 0.0  ;;  %v1909_v29 = vmul.f32 %v5908_v58, %v5908_v58 }
0x10b9   :  { %v4256_v55 = vpop.f32.mrb[36].mxu1 }
0x10ba   :  { %v5829_v40 = vadd.f32 %v4256_v55, %v2033_v46  ;;  %v3452_v60 = vpop.f32.mrb[37].mxu1  ;;  %v6151_v46 = vld [vmem:[#allocation17_spill] sm:$0xff] }
0x10bb   :  { %v5835_v44 = vadd.f32 %v3452_v60, %v2031_v24  ;;  %v4257_v21 = vpop.f32.mrb[38].mxu1  ;;  %v2038_v55 = vadd.f32 %v5752_v1, %v6151_v46  ;;  %v1894_v60 = vmul.f32 0.03125, %v1877_v15 }
0x10bc   :  { %v5837_v50 = vadd.f32 %v4257_v21, %v2034_v32  ;;  %v3455_v33 = vpop.f32.mrb[39].mxu1  ;;  %v3497_v36 = vsel %vm128_vm0, %v5829_v40, 0.0  ;;  %v1908_v32 = vmul.f32 %v5895_v3, %v5895_v3  ;;  %v1921_v21 = vsel %vm128_vm0, %v1909_v29, 0.0 }
0x10bd   :  { %3498 = vadd.xlane.f32.xlu1 %v3497_v36  ;;  %v3491_v20 = vsel %vm128_vm0, %v5835_v44, 0.0  ;;  %v5850_v30 = vadd.f32 %v3455_v33, %v2032_v7  ;;  %v5916_v31 = vsub.f32 %v5780_v13, %v1894_v60 }
0x10be   :  { %3492 = vadd.xlane.f32.xlu0 %v3491_v20  ;;  %v3500_v35 = vsel %vm128_vm0, %v5837_v50, 0.0  ;;  %v1918_v43 = vsel %vm128_vm0, %v1908_v32, 0.0 }
0x10bf   :  { %v3494_v49 = vsel %vm128_vm0, %v5850_v30, 0.0  ;;  %v1910_v33 = vmul.f32 %v5916_v31, %v5916_v31 }
0x10c1   :  { %3501 = vadd.xlane.f32.xlu1 %v3500_v35  ;;  %v4260_v2 = vpop.f32.mrb[40].mxu1  ;;  %v1924_v36 = vsel %vm128_vm0, %v1910_v33, 0.0 }
0x10c2   :  { %1879 = vadd.xlane.f32.xlu0 %v1878_v54  ;;  %v3468_v0 = vpop.f32.mrb[41].mxu1  ;;  %v5863_v8 = vadd.f32 %v4260_v2, %v2037_v27 }
0x10c3   :  { %v4261_v62 = vpop.f32.mrb[42].mxu1  ;;  %v5876_v39 = vadd.f32 %v3468_v0, %v2035_v59 }
0x10c4   :  { %v3471_v12 = vpop.f32.mrb[43].mxu1  ;;  %v3509_v10 = vsel %vm128_vm0, %v5863_v8, 0.0  ;;  %v5903_v42 = vadd.f32 %v4261_v62, %v2038_v55 }
0x10c5   :  { %3495 = vadd.xlane.f32.xlu1 %v3494_v49  ;;  %v5890_v9 = vadd.f32 %v3471_v12, %v2036_v34  ;;  %v3503_v11 = vsel %vm128_vm0, %v5876_v39, 0.0 }
0x10c6   :  { %1882 = vadd.xlane.f32.xlu0 %v1881_v38  ;;  %v3512_v1 = vsel %vm128_vm0, %v5903_v42, 0.0 }
0x10c7   :  { %v3506_v24 = vsel %vm128_vm0, %v5890_v9, 0.0 }
0x10c9   :  { %3510 = vadd.xlane.f32.xlu1 %v3509_v10 }
0x10ca   :  { %1885 = vadd.xlane.f32.xlu0 %v1884_v28 }
0x10cd   :  { %3504 = vadd.xlane.f32.xlu1 %v3503_v11 }
0x10ce   :  { %1888 = vadd.xlane.f32.xlu0 %v1887_v37 }
0x10d1   :  { %3507 = vadd.xlane.f32.xlu1 %v3506_v24 }
0x10d2   :  { %1916 = vadd.xlane.f32.xlu0 %v1915_v19 }
0x10d5   :  { %3513 = vadd.xlane.f32.xlu1 %v3512_v1 }
0x10d6   :  { %1919 = vadd.xlane.f32.xlu0 %v1918_v43 }
0x10da   :  { %1922 = vadd.xlane.f32.xlu0 %v1921_v21 }
0x10de   :  { %1925 = vadd.xlane.f32.xlu0 %v1924_v36 }
0x114a   :  { %v3499_v20 = vpop.xlane.xlu1 %3498 }
0x114b   :  { %v3517_v23 = vmul.f32 0.03125, %v3499_v20  ;;  %v3493_v13 = vpop.xlane.xlu0 %3492 }
0x114c   :  { %v3515_v7 = vmul.f32 0.03125, %v3493_v13 }
0x114d   :  { %v5926_v16 = vsub.f32 %v5829_v40, %v3517_v23 }
0x114e   :  { %v5929_v4 = vsub.f32 %v5835_v44, %v3515_v7  ;;  %v3502_v35 = vpop.xlane.xlu1 %3501 }
0x114f   :  { %v3518_v45 = vmul.f32 0.03125, %v3502_v35  ;;  %v1880_v2 = vpop.xlane.xlu0 %1879  ;;  %v3533_v54 = vmul.f32 %v5926_v16, %v5926_v16 }
0x1150   :  { %v1895_v47 = vmul.f32 0.03125, %v1880_v2  ;;  %v3531_v0 = vmul.f32 %v5929_v4, %v5929_v4 }
0x1151   :  { %v5934_v17 = vsub.f32 %v5837_v50, %v3518_v45  ;;  %v3545_v27 = vsel %vm128_vm0, %v3533_v54, 0.0 }
0x1152   :  { %v5940_v40 = vsub.f32 %v5842_v52, %v1895_v47  ;;  %3546 = vadd.xlane.f32.xlu1 %v3545_v27  ;;  %v3496_v44 = vpop.xlane.xlu1 %3495  ;;  %v3539_v50 = vsel %vm128_vm0, %v3531_v0, 0.0 }
0x1153   :  { %v3516_v14 = vmul.f32 0.03125, %v3496_v44  ;;  %v1883_v5 = vpop.xlane.xlu0 %1882  ;;  %v3534_v48 = vmul.f32 %v5934_v17, %v5934_v17 }
0x1154   :  { %v1896_v62 = vmul.f32 0.03125, %v1883_v5  ;;  %v1911_v12 = vmul.f32 %v5940_v40, %v5940_v40 }
0x1155   :  { %v5945_v49 = vsub.f32 %v5850_v30, %v3516_v14  ;;  %v3548_v10 = vsel %vm128_vm0, %v3534_v48, 0.0 }
0x1156   :  { %v5951_v38 = vsub.f32 %v5855_v26, %v1896_v62  ;;  %3540 = vadd.xlane.f32.xlu1 %v3539_v50  ;;  %v3511_v52 = vpop.xlane.xlu1 %3510  ;;  %v1927_v57 = vsel %vm128_vm0, %v1911_v12, 0.0  ;;  %v6001_v12 = vld [vmem:[%s6092_s5 + $0x1] ss:$0 sm:$0xff] }
0x1157   :  { %v3521_v59 = vmul.f32 0.03125, %v3511_v52  ;;  %v1886_v25 = vpop.xlane.xlu0 %1885  ;;  %1928 = vadd.xlane.f32.xlu0 %v1927_v57  ;;  %v3532_v26 = vmul.f32 %v5945_v49, %v5945_v49  ;;  %v6008_v57 = vld [vmem:[%s6092_s5 + $0x2] ss:$0 sm:$0xff] }
0x1158   :  { %v1897_v41 = vmul.f32 0.03125, %v1886_v25  ;;  %v1912_v30 = vmul.f32 %v5951_v38, %v5951_v38 }
0x1159   :  { %v5957_v61 = vsub.f32 %v5863_v8, %v3521_v59  ;;  %v3542_v22 = vsel %vm128_vm0, %v3532_v26, 0.0 }
0x115a   :  { %v5963_v63 = vsub.f32 %v5868_v56, %v1897_v41  ;;  %3549 = vadd.xlane.f32.xlu1 %v3548_v10  ;;  %v3505_v28 = vpop.xlane.xlu1 %3504  ;;  %v1930_v18 = vsel %vm128_vm0, %v1912_v30, 0.0 }
0x115b   :  { %v3519_v34 = vmul.f32 0.03125, %v3505_v28  ;;  %v1889_v11 = vpop.xlane.xlu0 %1888  ;;  %1931 = vadd.xlane.f32.xlu0 %v1930_v18  ;;  %v3537_v56 = vmul.f32 %v5957_v61, %v5957_v61 }
0x115c   :  { %v1898_v51 = vmul.f32 0.03125, %v1889_v11  ;;  %v1913_v8 = vmul.f32 %v5963_v63, %v5963_v63 }
0x115d   :  { %v5969_v37 = vsub.f32 %v5876_v39, %v3519_v34  ;;  %v3557_v19 = vsel %vm128_vm0, %v3537_v56, 0.0 }
0x115e   :  { %v5975_v15 = vsub.f32 %v5881_v6, %v1898_v51  ;;  %3543 = vadd.xlane.f32.xlu1 %v3542_v22  ;;  %v3508_v46 = vpop.xlane.xlu1 %3507  ;;  %v1933_v55 = vsel %vm128_vm0, %v1913_v8, 0.0 }
0x115f   :  { %v3520_v24 = vmul.f32 0.03125, %v3508_v46  ;;  %1934 = vadd.xlane.f32.xlu0 %v1933_v55  ;;  %v3535_v32 = vmul.f32 %v5969_v37, %v5969_v37  ;;  %v1917_v33 = vpop.xlane.xlu0 %1916 }
0x1160   :  { %v1914_v60 = vmul.f32 %v5975_v15, %v5975_v15  ;;  %v1939_v7 = vmul.f32 0.03125, %v1917_v33 }
0x1161   :  { %v5981_v39 = vsub.f32 %v5890_v9, %v3520_v24  ;;  %v3551_v21 = vsel %vm128_vm0, %v3535_v32, 0.0 }
0x1162   :  { %3558 = vadd.xlane.f32.xlu1 %v3557_v19  ;;  %v3514_v6 = vpop.xlane.xlu1 %3513  ;;  %v1936_v1 = vsel %vm128_vm0, %v1914_v60, 0.0  ;;  %v1947_v35 = vadd.f32 1e-05, %v1939_v7 }
0x1163   :  { %v3522_v43 = vmul.f32 0.03125, %v3514_v6  ;;  %1937 = vadd.xlane.f32.xlu0 %v1936_v1  ;;  %v3536_v9 = vmul.f32 %v5981_v39, %v5981_v39  ;;  %v1920_v13 = vpop.xlane.xlu0 %1919 }
0x1164   :  { %v1940_v45 = vmul.f32 0.03125, %v1920_v13  ;;  %4621 = vrsqrt.f32 %v1947_v35 }
0x1165   :  { %v5988_v29 = vsub.f32 %v5903_v42, %v3522_v43  ;;  %v3554_v36 = vsel %vm128_vm0, %v3536_v9, 0.0 }
0x1166   :  { %3552 = vadd.xlane.f32.xlu1 %v3551_v21  ;;  %v1948_v2 = vadd.f32 1e-05, %v1940_v45 }
0x1167   :  { %v3538_v20 = vmul.f32 %v5988_v29, %v5988_v29  ;;  %v1923_v42 = vpop.xlane.xlu0 %1922 }
0x1168   :  { %v1941_v54 = vmul.f32 0.03125, %v1923_v42  ;;  %4623 = vrsqrt.f32 %v1948_v2 }
0x1169   :  { %v3560_v23 = vsel %vm128_vm0, %v3538_v20, 0.0 }
0x116a   :  { %3555 = vadd.xlane.f32.xlu1 %v3554_v36  ;;  %v1949_v27 = vadd.f32 1e-05, %v1941_v54 }
0x116b   :  { %v1926_v47 = vpop.xlane.xlu0 %1925 }
0x116c   :  { %v1942_v0 = vmul.f32 0.03125, %v1926_v47  ;;  %4625 = vrsqrt.f32 %v1949_v27 }
0x116e   :  { %3561 = vadd.xlane.f32.xlu1 %v3560_v23  ;;  %v1950_v44 = vadd.f32 1e-05, %v1942_v0  ;;  %v4622_v14 = vpop.eup %4621 }
0x116f   :  { %v1963_v5 = vmul.f32 %v4622_v14, %v5884_v53 }
0x1170   :  { %4627 = vrsqrt.f32 %v1950_v44 }
0x1171   :  { %v1975_v48 = vmul.f32 %v6001_v12, %v1963_v5 }
0x1172   :  { %v4624_v62 = vpop.eup %4623 }
0x1173   :  { %v1964_v50 = vmul.f32 %v4624_v62, %v5895_v3  ;;  %v1987_v53 = vadd.f32 %v6008_v57, %v1975_v48 }
0x1175   :  { %v1976_v25 = vmul.f32 %v6001_v12, %v1964_v50 }
0x1176   :  { %v4626_v52 = vpop.eup %4625 }
0x1177   :  { %v1965_v59 = vmul.f32 %v4626_v52, %v5908_v58  ;;  %v1988_v3 = vadd.f32 %v6008_v57, %v1976_v25 }
0x1179   :  { %v1977_v10 = vmul.f32 %v6001_v12, %v1965_v59 }
0x117a   :  { %v4628_v41 = vpop.eup %4627 }
0x117b   :  { %v1966_v30 = vmul.f32 %v4628_v41, %v5916_v31  ;;  %v1989_v26 = vadd.f32 %v6008_v57, %v1977_v10 }
0x117d   :  { %v1978_v28 = vmul.f32 %v6001_v12, %v1966_v30 }
0x117f   :  { %v1990_v58 = vadd.f32 %v6008_v57, %v1978_v28 }
0x1190   :  { %1995 = vxpose.xlu0.b32.start [1/8] (short) (narrow) %v1987_v53, 32 }
0x1194   :  { %1996 = vxpose.xlu0.b32.cont [2/8] (short) (narrow) %v1988_v3, 32 }
0x1198   :  { %1997 = vxpose.xlu0.b32.cont [3/8] (short) (narrow) %v1989_v26, 32 }
0x119c   :  { %1998 = vxpose.xlu0.b32.cont [4/8] (short) (narrow) %v1990_v58, 32 }
0x11df   :  { %v3547_v18 = vpop.xlane.xlu1 %3546 }
0x11e0   :  { %v3565_v22 = vmul.f32 0.03125, %v3547_v18 }
0x11e2   :  { %v3573_v60 = vadd.f32 1e-05, %v3565_v22 }
0x11e3   :  { %v3541_v34 = vpop.xlane.xlu1 %3540 }
0x11e4   :  { %v3563_v11 = vmul.f32 0.03125, %v3541_v34  ;;  %v1929_v51 = vpop.xlane.xlu0 %1928 }
0x11e5   :  { %v1943_v8 = vmul.f32 0.03125, %v1929_v51 }
0x11e6   :  { %v3571_v31 = vadd.f32 1e-05, %v3563_v11 }
0x11e7   :  { %v1951_v56 = vadd.f32 1e-05, %v1943_v8  ;;  %v3550_v46 = vpop.xlane.xlu1 %3549 }
0x11e8   :  { %4629 = vrsqrt.f32 %v3571_v31  ;;  %v1932_v55 = vpop.xlane.xlu0 %1931  ;;  %v3566_v19 = vmul.f32 0.03125, %v3550_v46 }
0x11e9   :  { %4631 = vrsqrt.f32 %v1951_v56  ;;  %v1944_v24 = vmul.f32 0.03125, %v1932_v55 }
0x11ea   :  { %v3574_v9 = vadd.f32 1e-05, %v3566_v19 }
0x11eb   :  { %v1952_v32 = vadd.f32 1e-05, %v1944_v24  ;;  %v3544_v6 = vpop.xlane.xlu1 %3543 }
0x11ec   :  { %v3564_v1 = vmul.f32 0.03125, %v3544_v6  ;;  %v1935_v43 = vpop.xlane.xlu0 %1934 }
0x11ed   :  { %4633 = vrsqrt.f32 %v1952_v32  ;;  %v1945_v21 = vmul.f32 0.03125, %v1935_v43 }
0x11ee   :  { %4635 = vrsqrt.f32 %v3573_v60  ;;  %v3572_v33 = vadd.f32 1e-05, %v3564_v1 }
0x11ef   :  { %v1953_v36 = vadd.f32 1e-05, %v1945_v21  ;;  %v3559_v20 = vpop.xlane.xlu1 %3558 }
0x11f0   :  { %4637 = vrsqrt.f32 %v3572_v33  ;;  %v1938_v23 = vpop.xlane.xlu0 %1937  ;;  %v3569_v0 = vmul.f32 0.03125, %v3559_v20 }
0x11f1   :  { %4639 = vrsqrt.f32 %v1953_v36  ;;  %v1946_v13 = vmul.f32 0.03125, %v1938_v23 }
0x11f2   :  { %v4630_v7 = vpop.eup %4629  ;;  %4641 = vrsqrt.f32 %v3574_v9  ;;  %v3577_v53 = vadd.f32 1e-05, %v3569_v0 }
0x11f3   :  { %v4632_v42 = vpop.eup %4631  ;;  %v3587_v35 = vmul.f32 %v4630_v7, %v5929_v4  ;;  %v1954_v45 = vadd.f32 1e-05, %v1946_v13  ;;  %v3553_v2 = vpop.xlane.xlu1 %3552 }
0x11f4   :  { %v1967_v54 = vmul.f32 %v4632_v42, %v5940_v40  ;;  %v3567_v47 = vmul.f32 0.03125, %v3553_v2 }
0x11f5   :  { %4643 = vrsqrt.f32 %v1954_v45  ;;  %v3595_v27 = vmul.f32 %v6001_v12, %v3587_v35 }
0x11f6   :  { %v3575_v44 = vadd.f32 1e-05, %v3567_v47  ;;  %v1979_v14 = vmul.f32 %v6001_v12, %v1967_v54 }
0x11f7   :  { %v4634_v5 = vpop.eup %4633  ;;  %v3556_v62 = vpop.xlane.xlu1 %3555  ;;  %v3603_v50 = vadd.f32 %v6008_v57, %v3595_v27 }
0x11f8   :  { %v4636_v48 = vpop.eup %4635  ;;  %v1968_v52 = vmul.f32 %v4634_v5, %v5951_v38  ;;  %4645 = vrsqrt.f32 %v3575_v44  ;;  %v3568_v4 = vmul.f32 0.03125, %v3556_v62  ;;  %v1991_v59 = vadd.f32 %v6008_v57, %v1979_v14 }
0x11f9   :  { %3611 = vxpose.xlu1.b32.start [1/8] (short) (narrow) %v3603_v50, 32  ;;  %v3589_v3 = vmul.f32 %v4636_v48, %v5926_v16 }
0x11fa   :  { %v4638_v40 = vpop.eup %4637  ;;  %v3576_v25 = vadd.f32 1e-05, %v3568_v4  ;;  %1999 = vxpose.xlu0.b32.cont [5/8] (short) (narrow) %v1991_v59, 32  ;;  %v1980_v41 = vmul.f32 %v6001_v12, %v1968_v52 }
0x11fb   :  { %v4640_v30 = vpop.eup %4639  ;;  %v3588_v10 = vmul.f32 %v4638_v40, %v5945_v49  ;;  %v3562_v26 = vpop.xlane.xlu1 %3561  ;;  %v3597_v22 = vmul.f32 %v6001_v12, %v3589_v3 }
0x11fc   :  { %v4642_v28 = vpop.eup %4641  ;;  %v1969_v38 = vmul.f32 %v4640_v30, %v5963_v63  ;;  %4647 = vrsqrt.f32 %v3576_v25  ;;  %v3570_v58 = vmul.f32 0.03125, %v3562_v26  ;;  %v1992_v18 = vadd.f32 %v6008_v57, %v1980_v41 }
0x11fd   :  { %v3596_v34 = vmul.f32 %v6001_v12, %v3588_v10  ;;  %4649 = vrsqrt.f32 %v3577_v53  ;;  %v3590_v16 = vmul.f32 %v4642_v28, %v5934_v17  ;;  %v3605_v24 = vadd.f32 %v6008_v57, %v3597_v22 }
0x11fe   :  { %v3578_v11 = vadd.f32 1e-05, %v3570_v58  ;;  %2000 = vxpose.xlu0.b32.cont [6/8] (short) (narrow) %v1992_v18, 32  ;;  %v1981_v51 = vmul.f32 %v6001_v12, %v1969_v38 }
0x11ff   :  { %v4644_v8 = vpop.eup %4643  ;;  %v3604_v49 = vadd.f32 %v6008_v57, %v3596_v34  ;;  %v3598_v17 = vmul.f32 %v6001_v12, %v3590_v16 }
0x1200   :  { %v1970_v63 = vmul.f32 %v4644_v8, %v5975_v15  ;;  %v1993_v31 = vadd.f32 %v6008_v57, %v1981_v51  ;;  %4651 = vrsqrt.f32 %v3578_v11 }
0x1201   :  { %3612 = vxpose.xlu1.b32.cont [2/8] (short) (narrow) %v3604_v49, 32  ;;  %v3606_v32 = vadd.f32 %v6008_v57, %v3598_v17 }
0x1202   :  { %v4646_v56 = vpop.eup %4645  ;;  %2001 = vxpose.xlu0.b32.cont [7/8] (short) (narrow) %v1993_v31, 32  ;;  %v1982_v46 = vmul.f32 %v6001_v12, %v1970_v63 }
0x1203   :  { %v3591_v55 = vmul.f32 %v4646_v56, %v5969_v37 }
0x1204   :  { %v1994_v60 = vadd.f32 %v6008_v57, %v1982_v46 }
0x1205   :  { %3613 = vxpose.xlu1.b32.cont [3/8] (short) (narrow) %v3605_v24, 32  ;;  %v3599_v6 = vmul.f32 %v6001_v12, %v3591_v55 }
0x1206   :  { %v4648_v19 = vpop.eup %4647  ;;  %2002 = vxpose.xlu0.b32.end [8/8] (short) (narrow) %v1994_v60, 32 }
0x1207   :  { %v3592_v15 = vmul.f32 %v4648_v19, %v5981_v39  ;;  %v4650_v1 = vpop.eup %4649  ;;  %v3607_v37 = vadd.f32 %v6008_v57, %v3599_v6 }
0x1208   :  { %v3593_v43 = vmul.f32 %v4650_v1, %v5957_v61 }
0x1209   :  { %3614 = vxpose.xlu1.b32.cont [4/8] (short) (narrow) %v3606_v32, 32  ;;  %v3600_v21 = vmul.f32 %v6001_v12, %v3592_v15 }
0x120a   :  { %v4652_v9 = vpop.eup %4651  ;;  %v3601_v39 = vmul.f32 %v6001_v12, %v3593_v43 }
0x120b   :  { %v3594_v33 = vmul.f32 %v4652_v9, %v5988_v29  ;;  %v3608_v36 = vadd.f32 %v6008_v57, %v3600_v21 }
0x120c   :  { %v3609_v20 = vadd.f32 %v6008_v57, %v3601_v39 }
0x120d   :  { %3615 = vxpose.xlu1.b32.cont [5/8] (short) (narrow) %v3607_v37, 32  ;;  %v3602_v23 = vmul.f32 %v6001_v12, %v3594_v33 }
0x120f   :  { %v3610_v61 = vadd.f32 %v6008_v57, %v3602_v23 }
0x1211   :  { %3616 = vxpose.xlu1.b32.cont [6/8] (short) (narrow) %v3608_v36, 32 }
0x1215   :  { %3617 = vxpose.xlu1.b32.cont [7/8] (short) (narrow) %v3609_v20, 32 }
0x1219   :  { %3618 = vxpose.xlu1.b32.end [8/8] (short) (narrow) %v3610_v61, 32 }
0x126a   :  { %v2011_v13 = vpop.trf.xlu0 }
0x126b   :  { %2027 = vst.msk [vmem:[%s6093_s6] sm:$0xff] %vm498_vm3, %v2011_v13 }
0x126e   :  { %v2012_v29 = vpop.trf.xlu0 }
0x126f   :  { %2028 = vst.msk [vmem:[%s6093_s6 + $0x8] sm:$0xff] %vm498_vm3, %v2012_v29 }
0x1272   :  { %v2013_v7 = vpop.trf.xlu0 }
0x1273   :  { %2029 = vst.msk [vmem:[%s6093_s6 + $0x10] sm:$0xff] %vm498_vm3, %v2013_v7 }
0x1276   :  { %v2014_v12 = vpop.trf.xlu0 }
0x1277   :  { %2030 = vst.msk [vmem:[%s6093_s6 + $0x18] sm:$0xff] %vm498_vm3, %v2014_v12 }
0x127d   :  { %v3627_v57 = vpop.trf.xlu1 }
0x127e   :  { %3772 = vst.msk [vmem:[%s6093_s6 + $0x20] sm:$0xff] %vm498_vm3, %v3627_v57 }
0x1281   :  { %v3628_v42 = vpop.trf.xlu1 }
0x1282   :  { %3773 = vst.msk [vmem:[%s6093_s6 + $0x28] sm:$0xff] %vm498_vm3, %v3628_v42 }
0x1285   :  { %v3629_v35 = vpop.trf.xlu1 }
0x1286   :  { %3774 = vst.msk [vmem:[%s6093_s6 + $0x30] sm:$0xff] %vm498_vm3, %v3629_v35 }
0x1289   :  { %v3630_v45 = vpop.trf.xlu1 }
0x128a   :  { %3775 = vst.msk [vmem:[%s6093_s6 + $0x38] sm:$0xff] %vm498_vm3, %v3630_v45 }

</bundles_post_ra>
